<compile_context>
chip_gen: v7x
topology: tpu7x:2x2x1
jax: 0.10.0
libtpu: 0.0.40
codegen_flags: <defaults>
</compile_context>

<pallas_src>
import functools

import numpy as np

import jax
import jax.numpy as jnp
from jax.experimental import pallas as pl
from jax.experimental.pallas import tpu as pltpu


IN_CH, HIDDEN, EMBED_DIM, N_CODES, BETA = 4, 32, 8, 128, 0.25

# Sub-pixel decomposition of ConvTranspose2d(k=4, s=2, p=1): output row 2*m + a
# reads input row m + d with kernel row k for (d, k) in _DECONV_TAPS[a].
_DECONV_TAPS = (((0, 1), (-1, 3)), ((1, 0), (0, 2)))
_TAP_K = tuple(dict(taps) for taps in _DECONV_TAPS)   # per phase: d -> kernel row


# ----------------------------------------------------------------------------
# The fused Pallas kernel
# ----------------------------------------------------------------------------
def _vqvae_kernel(p_ref, hmask_ref, w1_ref, b1_ref, w2_ref, b2_ref,
                  e_ref, esq_ref, w1d_ref, b1d_ref, w2d_ref, b2d_ref,
                  smask_ref, out_ref, loss_ref, qpad_ref, dpad_ref,
                  *, R, PAD, loss_scale, shifts, slabs):
    f32 = jnp.float32
    smask = smask_ref[...]                       # (R, 9): 0/1 validity per row shift

    # ---------------- encoder: 2 GEMMs ----------------
    # conv1 (4->32, k3, s2, p1) as one block-diagonal GEMM over all 9 conv2 taps,
    # then ReLU + per-tap validity mask (== conv2 zero padding on the hidden map).
    y1 = jnp.dot(p_ref[...], w1_ref[...], preferred_element_type=f32) + b1_ref[...]
    y1 = jnp.maximum(y1, 0.0) * hmask_ref[...]   # (R, 9*HIDDEN)
    # conv2 (32->8, k3, s2, p1) as a single K=288 GEMM.
    z = jnp.dot(y1, w2_ref[...], preferred_element_type=f32) + b2_ref[...]

    # ---------------- vector quantizer ----------------
    e = e_ref[...]                               # (N_CODES, EMBED_DIM)
    cross = jax.lax.dot_general(z, e, (((1,), (1,)), ((), ())),
                                preferred_element_type=f32)       # (R, N_CODES)
    dist = esq_ref[...] - 2.0 * cross            # ||z||^2 dropped (row constant)
    iota = jax.lax.broadcasted_iota(jnp.int32, dist.shape, 1)
    dmin = jnp.min(dist, axis=-1, keepdims=True)
    idx = jnp.min(jnp.where(dist <= dmin, iota, dist.shape[1]),
                  axis=-1, keepdims=True)
    onehot = (iota == idx).astype(f32)
    q = jnp.dot(onehot, e, preferred_element_type=f32)            # (R, EMBED_DIM)
    diff = q - z
    loss_ref[...] = jnp.sum(diff * diff, keepdims=True) * loss_scale

    # ---- padded latent scratch (PAD is a multiple of 8; zero only pad rows) ----
    qpad_ref[0:PAD, :] = jnp.zeros((PAD, q.shape[1]), f32)
    qpad_ref[PAD + R:2 * PAD + R, :] = jnp.zeros((PAD, q.shape[1]), f32)
    qpad_ref[PAD:PAD + R, :] = q
    qp = qpad_ref[...]

    # ---- decoder layer 1: ConvT(8->32, k4, s2, p1) + ReLU --------------------
    # 9 accumulating GEMMs (one per latent row shift), each producing all 4
    # output phases lane-dense (N = 4*HIDDEN = 128).
    acc1 = None
    for s, k in enumerate(shifts):
        slab = qp[PAD + k:PAD + k + R, :] * smask[:, s:s + 1]
        t = jnp.dot(slab, w1d_ref[s], preferred_element_type=f32)
        acc1 = t if acc1 is None else acc1 + t
    dall = jnp.maximum(acc1 + b1d_ref[...], 0.0)                  # (R, 4*HIDDEN)

    # ---- padded decoder-hidden scratch (lane-dense: 4 phases side by side) ----
    dpad_ref[0:PAD, :] = jnp.zeros((PAD, dall.shape[1]), f32)
    dpad_ref[PAD + R:2 * PAD + R, :] = jnp.zeros((PAD, dall.shape[1]), f32)
    dpad_ref[PAD:PAD + R, :] = dall
    dp = dpad_ref[...]

    # ---- decoder layer 2: ConvT(32->4, k4, s2, p1) ---------------------------
    # 16 accumulating GEMMs, one per distinct (phase, row-shift) slab; each
    # produces all 16 output pixel groups lane-dense (lanes 0..63 used,
    # 64..127 are zero so the single output store is unmasked / full width).
    acc2 = None
    for i, (ph, k, jm) in enumerate(slabs):
        slab = (dp[PAD + k:PAD + k + R, ph * HIDDEN:(ph + 1) * HIDDEN]
                * smask[:, jm:jm + 1])
        t = jnp.dot(slab, w2d_ref[i], preferred_element_type=f32)
        acc2 = t if acc2 is None else acc2 + t
    out_ref[...] = acc2 + b2d_ref[...]


# ----------------------------------------------------------------------------
# Boundary-only helpers (tiny: 8 KB patch gather, masks, weight packing)
# ----------------------------------------------------------------------------
def _shift_masks(n, hl, wl):
    """(R, 9) 0/1 masks: column (sy+1)*3+(sx+1) marks rows whose shifted latent
    position (m+sy, v+sx) stays inside the hl x wl grid (and same image)."""
    r = np.arange(n * hl * wl)
    m, v = (r // wl) % hl, r % wl
    cols = []
    for sy in (-1, 0, 1):
        for sx in (-1, 0, 1):
            cols.append(((m + sy >= 0) & (m + sy < hl) &
                         (v + sx >= 0) & (v + sx < wl)).astype(np.float32))
    return np.stack(cols, axis=1)


def _h_valid_mask(n, hl, wl, hh, wh, hidden):
    """(R, 9*hidden) mask: block s marks whether the hidden-map position used by
    conv2 tap s at latent position r lies inside the hh x wh hidden grid."""
    r = np.arange(n * hl * wl)
    m, v = (r // wl) % hl, r % wl
    cols = []
    for ky in range(3):
        for kx in range(3):
            hy, hx = 2 * m + ky - 1, 2 * v + kx - 1
            cols.append(((hy >= 0) & (hy < hh) & (hx >= 0) & (hx < wh))
                        .astype(np.float32))
    return np.repeat(np.stack(cols, axis=1), hidden, axis=1)


def _encoder_patches(x_nhwc, hl, wl):
    """(R, 9*9*C) patch matrix: row r holds, for each conv2 tap s, the 3x3xC
    input window of the hidden-map position that tap needs (tap-major blocks)."""
    n, h, w, c = x_nhwc.shape
    hh, wh = h // 2, w // 2
    xp = jnp.pad(x_nhwc, ((0, 0), (1, 1), (1, 1), (0, 0)))
    taps = [xp[:, ky:ky + 2 * hh:2, kx:kx + 2 * wh:2, :]
            for ky in range(3) for kx in range(3)]
    hpatch = jnp.stack(taps, axis=3).reshape(n, hh, wh, 9 * c)
    hpatch = jnp.pad(hpatch, ((0, 0), (1, 0), (1, 0), (0, 0)))  # hidden index -1 -> 0
    blocks = [hpatch[:, ky:ky + 2 * hl:2, kx:kx + 2 * wl:2, :]
              .reshape(n * hl * wl, 9 * c) for ky in range(3) for kx in range(3)]
    return jnp.concatenate(blocks, axis=1)


def _pack_dec1(dec_w1, wl):
    """Fused deconv-1 weights: (9 shifts, EMBED_DIM, 4*HIDDEN); returns shifts."""
    taps = dec_w1.transpose(2, 3, 0, 1).reshape(16, EMBED_DIM, HIDDEN)  # (t,E,H)
    sel = np.zeros((9, 4, 16), np.float32)                              # (s,phase,t)
    shifts = []
    for si, (dy, dx) in enumerate([(a, b) for a in (-1, 0, 1) for b in (-1, 0, 1)]):
        shifts.append(dy * wl + dx)
        for a in range(2):
            ky = _TAP_K[a].get(dy)
            if ky is None:
                continue
            for b in range(2):
                kx = _TAP_K[b].get(dx)
                if kx is None:
                    continue
                sel[si, a * 2 + b, ky * 4 + kx] += 1.0
    w1big = jnp.einsum('spt,teh->seph', jnp.asarray(sel), taps)
    return tuple(shifts), w1big.reshape(9, EMBED_DIM, 4 * HIDDEN)


def _combo_table():
    """Distinct (parity, latent-shift) combos of the deconv-2 row decomposition
    plus, per combo, the (phase, out-parity, kernel-row) triples that use it."""
    combos, uses = [], []
    for par in range(2):
        for a in range(2):
            for d, kk in _DECONV_TAPS[a]:
                key = ((par + d) % 2, (par + d) // 2)
                if key not in combos:
                    combos.append(key)
                    uses.append([])
                uses[combos.index(key)].append((par, a, kk))
    return combos, uses


def _pack_dec2(dec_w2, wl, out_lanes):
    """Fused deconv-2 weights: (16 slabs, HIDDEN, out_lanes); returns slab specs
    (phase index, latent row shift, shift-mask column) in matching order."""
    taps = dec_w2.transpose(2, 3, 0, 1).reshape(16, HIDDEN, IN_CH)     # (t,H,C)
    combos, uses = _combo_table()
    sel = np.zeros((16, 16, 16), np.float32)                           # (slab,grp,t)
    slabs = []
    for i, (ry, qy) in enumerate(combos):
        for j, (rx, qx) in enumerate(combos):
            si = i * 4 + j
            slabs.append((ry * 2 + rx, qy * wl + qx, (qy + 1) * 3 + (qx + 1)))
            for al, A, kY in uses[i]:
                for be, B, kX in uses[j]:
                    g = ((A * 2 + al) * 2 + B) * 2 + be
                    sel[si, g, kY * 4 + kX] += 1.0
    w2big = jnp.einsum('sgt,thc->shgc', jnp.asarray(sel), taps)
    w2big = w2big.reshape(16, HIDDEN, 16 * IN_CH)
    w2big = jnp.pad(w2big, ((0, 0), (0, 0), (0, out_lanes - 16 * IN_CH)))
    return tuple(slabs), w2big


# ----------------------------------------------------------------------------
# VQVAEModel forward
# ----------------------------------------------------------------------------
def init_params(key):
    ks = jax.random.split(key, 9)
    return {
        "enc_w1": 0.1 * jax.random.normal(ks[0], (HIDDEN, IN_CH, 3, 3), jnp.float32),
        "enc_b1": 0.05 * jax.random.normal(ks[1], (HIDDEN,), jnp.float32),
        "enc_w2": 0.1 * jax.random.normal(ks[2], (EMBED_DIM, HIDDEN, 3, 3), jnp.float32),
        "enc_b2": 0.05 * jax.random.normal(ks[3], (EMBED_DIM,), jnp.float32),
        "codebook": jax.random.normal(ks[4], (N_CODES, EMBED_DIM), jnp.float32),
        "dec_w1": 0.1 * jax.random.normal(ks[5], (EMBED_DIM, HIDDEN, 4, 4), jnp.float32),
        "dec_b1": 0.05 * jax.random.normal(ks[6], (HIDDEN,), jnp.float32),
        "dec_w2": 0.1 * jax.random.normal(ks[7], (HIDDEN, IN_CH, 4, 4), jnp.float32),
        "dec_b2": 0.05 * jax.random.normal(ks[8], (IN_CH,), jnp.float32),
    }


def vqvae_forward(params, x):
    n, c, h, w = x.shape
    hh, wh = h // 2, w // 2            # hidden map after conv1
    hl, wl = hh // 2, wh // 2          # latent map after conv2
    r = n * hl * wl                    # latent rows handled by the kernel
    pad = 8                            # sublane-aligned, covers every |dy*wl+dx|
    assert pad >= wl + 1, "pad must cover the largest latent row shift"
    out_lanes = 128                    # lane-dense output slab (16*IN_CH used)
    loss_scale = (1.0 + BETA) / float(r * EMBED_DIM)

    # --- boundary-only XLA prep: patch gather, masks, weight packing ---
    x_nhwc = jnp.transpose(x, (0, 2, 3, 1))
    p_enc = _encoder_patches(x_nhwc, hl, wl)                        # (r, 81*c)
    hmask = jnp.asarray(_h_valid_mask(n, hl, wl, hh, wh, HIDDEN))   # (r, 9*HIDDEN)
    smask = jnp.asarray(_shift_masks(n, hl, wl))                    # (r, 9)

    w1_small = params["enc_w1"].transpose(2, 3, 1, 0).reshape(9 * c, HIDDEN)
    w1_bd = jnp.kron(jnp.eye(9, dtype=jnp.float32), w1_small)       # block-diagonal
    b1_w = jnp.tile(params["enc_b1"], 9).reshape(1, 9 * HIDDEN)
    w2_flat = params["enc_w2"].transpose(2, 3, 1, 0).reshape(9 * HIDDEN, EMBED_DIM)
    b2 = params["enc_b2"].reshape(1, EMBED_DIM)
    e = params["codebook"]
    esq = jnp.sum(e * e, axis=-1).reshape(1, N_CODES)
    shifts, w1big = _pack_dec1(params["dec_w1"], wl)
    b1d_w = jnp.tile(params["dec_b1"], 4).reshape(1, 4 * HIDDEN)
    slabs, w2big = _pack_dec2(params["dec_w2"], wl, out_lanes)
    b2d_w = jnp.pad(jnp.tile(params["dec_b2"], 16),
                    (0, out_lanes - 16 * IN_CH)).reshape(1, out_lanes)

    kernel = functools.partial(_vqvae_kernel, R=r, PAD=pad,
                               loss_scale=loss_scale, shifts=shifts, slabs=slabs)
    # Gridless single invocation: the whole working set (~1 MB) is VMEM-resident
    # on v5e/v6e/v7x, so no pipelining / weight double-buffering is wanted.
    out, loss = pl.pallas_call(
        kernel,
        out_shape=(jax.ShapeDtypeStruct((r, out_lanes), jnp.float32),
                   jax.ShapeDtypeStruct((1, 1), jnp.float32)),
        scratch_shapes=[
            pltpu.VMEM((r + 2 * pad, EMBED_DIM), jnp.float32),    # padded latent
            pltpu.VMEM((r + 2 * pad, 4 * HIDDEN), jnp.float32),   # padded d phases
        ],
    )(p_enc, hmask, w1_bd, b1_w, w2_flat, b2, e, esq,
      w1big, b1d_w, w2big, b2d_w, smask)

    # --- boundary-only XLA epilogue: lane-packed (r, 64) slab -> NCHW image ---
    o = out[:, :16 * IN_CH].reshape(n, hl, wl, 2, 2, 2, 2, IN_CH)
    res_image = o.transpose(0, 7, 1, 4, 3, 2, 6, 5).reshape(n, IN_CH, h, w)
    return res_image, {"vq_loss": loss[0, 0]}


# ----------------------------------------------------------------------------
# Pure-XLA reference (PyTorch conv semantics) -- runtime correctness check only
# ----------------------------------------------------------------------------
def _reference_forward(params, x):
    dn = ("NCHW", "OIHW", "NCHW")

    def conv(inp, wgt, bias, stride, padding):
        out = jax.lax.conv_general_dilated(inp, wgt, (stride, stride),
                                           [(padding, padding)] * 2,
                                           dimension_numbers=dn)
        return out + bias.reshape(1, -1, 1, 1)

    def conv_t(inp, wgt, bias, k, stride, padding):
        w_eq = jnp.flip(wgt, (2, 3)).transpose(1, 0, 2, 3)
        p = k - 1 - padding
        out = jax.lax.conv_general_dilated(inp, w_eq, (1, 1), [(p, p)] * 2,
                                           lhs_dilation=(stride, stride),
                                           dimension_numbers=dn)
        return out + bias.reshape(1, -1, 1, 1)

    hid = jax.nn.relu(conv(x, params["enc_w1"], params["enc_b1"], 2, 1))
    z = conv(hid, params["enc_w2"], params["enc_b2"], 2, 1)
    n, d, hl, wl = z.shape
    zf = z.transpose(0, 2, 3, 1).reshape(-1, d)
    e = params["codebook"]
    dist = jnp.sum(e * e, axis=-1)[None, :] - 2.0 * zf @ e.T
    qf = e[jnp.argmin(dist, axis=-1)]
    vq_loss = (1.0 + BETA) * jnp.mean((qf - zf) ** 2)
    q = qf.reshape(n, hl, wl, d).transpose(0, 3, 1, 2)
    dec = jax.nn.relu(conv_t(q, params["dec_w1"], params["dec_b1"], 4, 2, 1))
    res = conv_t(dec, params["dec_w2"], params["dec_b2"], 4, 2, 1)
    return res, vq_loss


if __name__ == "__main__":
    key = jax.random.PRNGKey(0)
    k_param, k_x = jax.random.split(key)
    params = init_params(k_param)
    x = jax.random.normal(k_x, (2, IN_CH, 16, 16), jnp.float32)

    res_image, aux = jax.jit(vqvae_forward)(params, x)
    jax.block_until_ready((res_image, aux))

    assert res_image.shape == (2, IN_CH, 16, 16)
    assert res_image.dtype == jnp.float32
    assert aux["vq_loss"].shape == ()
    assert bool(jnp.isfinite(res_image).all()) and bool(jnp.isfinite(aux["vq_loss"]))

    # Cross-check the fused Pallas kernel against the pure-XLA reference.
    ref_img, ref_loss = _reference_forward(params, x)
    assert bool(jnp.allclose(res_image, ref_img, atol=1e-4, rtol=1e-4)), \
        float(jnp.max(jnp.abs(res_image - ref_img)))
    assert bool(jnp.allclose(aux["vq_loss"], ref_loss, atol=1e-5, rtol=1e-4))

    print("KERNEL_OK")
</pallas_src>

<mosaic_0001>
module attributes {stable_mosaic.version = 11 : i64} {
  func.func @_vqvae_kernel(%arg0: memref<32x324xf32, #tpu.memory_space<vmem>>, %arg1: memref<32x288xf32, #tpu.memory_space<vmem>>, %arg2: memref<324x288xf32, #tpu.memory_space<vmem>>, %arg3: memref<1x288xf32, #tpu.memory_space<vmem>>, %arg4: memref<288x8xf32, #tpu.memory_space<vmem>>, %arg5: memref<1x8xf32, #tpu.memory_space<vmem>>, %arg6: memref<128x8xf32, #tpu.memory_space<vmem>>, %arg7: memref<1x128xf32, #tpu.memory_space<vmem>>, %arg8: memref<9x8x128xf32, #tpu.memory_space<vmem>>, %arg9: memref<1x128xf32, #tpu.memory_space<vmem>>, %arg10: memref<16x32x128xf32, #tpu.memory_space<vmem>>, %arg11: memref<1x128xf32, #tpu.memory_space<vmem>>, %arg12: memref<32x9xf32, #tpu.memory_space<vmem>>, %arg13: memref<32x128xf32, #tpu.memory_space<vmem>>, %arg14: memref<1x1xf32, #tpu.memory_space<vmem>>, %arg15: memref<48x8xf32, #tpu.memory_space<vmem>>, %arg16: memref<48x128xf32, #tpu.memory_space<vmem>>) attributes {dimension_semantics = [], scalar_prefetch = 0 : i64, scratch_operands = 2 : i64, tpu.core_type = #tpu.core_type<tc>} {
    %c0 = arith.constant 0 : index
    %c0_0 = arith.constant 0 : index
    %0 = vector.load %arg12[%c0, %c0_0] : memref<32x9xf32, #tpu.memory_space<vmem>>, vector<32x9xf32>
    %c0_1 = arith.constant 0 : index
    %c0_2 = arith.constant 0 : index
    %1 = vector.load %arg0[%c0_1, %c0_2] : memref<32x324xf32, #tpu.memory_space<vmem>>, vector<32x324xf32>
    %c0_3 = arith.constant 0 : index
    %c0_4 = arith.constant 0 : index
    %2 = vector.load %arg2[%c0_3, %c0_4] : memref<324x288xf32, #tpu.memory_space<vmem>>, vector<324x288xf32>
    %cst = arith.constant dense<0.000000e+00> : vector<32x288xf32>
    %3 = tpu.matmul %1, %2, %cst {dimension_numbers = #tpu.dot_dimension_numbers<[1], [0], [0], [1], [0, 0, 1, 1], [], []>} : vector<32x324xf32>, vector<324x288xf32>, vector<32x288xf32> -> vector<32x288xf32>
    %c0_5 = arith.constant 0 : index
    %c0_6 = arith.constant 0 : index
    %4 = vector.load %arg3[%c0_5, %c0_6] : memref<1x288xf32, #tpu.memory_space<vmem>>, vector<1x288xf32>
    %5 = vector.broadcast %4 : vector<1x288xf32> to vector<32x288xf32>
    %6 = arith.addf %3, %5 : vector<32x288xf32>
    %cst_7 = arith.constant 0.000000e+00 : f32
    %7 = vector.broadcast %cst_7 : f32 to vector<32x288xf32>
    %8 = arith.maximumf %6, %7 : vector<32x288xf32>
    %c0_8 = arith.constant 0 : index
    %c0_9 = arith.constant 0 : index
    %9 = vector.load %arg1[%c0_8, %c0_9] : memref<32x288xf32, #tpu.memory_space<vmem>>, vector<32x288xf32>
    %10 = arith.mulf %8, %9 : vector<32x288xf32>
    %c0_10 = arith.constant 0 : index
    %c0_11 = arith.constant 0 : index
    %11 = vector.load %arg4[%c0_10, %c0_11] : memref<288x8xf32, #tpu.memory_space<vmem>>, vector<288x8xf32>
    %cst_12 = arith.constant dense<0.000000e+00> : vector<32x8xf32>
    %12 = tpu.matmul %10, %11, %cst_12 {dimension_numbers = #tpu.dot_dimension_numbers<[1], [0], [0], [1], [0, 0, 1, 1], [], []>} : vector<32x288xf32>, vector<288x8xf32>, vector<32x8xf32> -> vector<32x8xf32>
    %c0_13 = arith.constant 0 : index
    %c0_14 = arith.constant 0 : index
    %13 = vector.load %arg5[%c0_13, %c0_14] : memref<1x8xf32, #tpu.memory_space<vmem>>, vector<1x8xf32>
    %14 = vector.broadcast %13 : vector<1x8xf32> to vector<32x8xf32>
    %15 = arith.addf %12, %14 : vector<32x8xf32>
    %c0_15 = arith.constant 0 : index
    %c0_16 = arith.constant 0 : index
    %16 = vector.load %arg6[%c0_15, %c0_16] : memref<128x8xf32, #tpu.memory_space<vmem>>, vector<128x8xf32>
    %cst_17 = arith.constant dense<0.000000e+00> : vector<32x128xf32>
    %17 = tpu.matmul %15, %16, %cst_17 {dimension_numbers = #tpu.dot_dimension_numbers<[1], [1], [0], [0], [0, 0, 1, 0], [], []>} : vector<32x8xf32>, vector<128x8xf32>, vector<32x128xf32> -> vector<32x128xf32>
    %c0_18 = arith.constant 0 : index
    %c0_19 = arith.constant 0 : index
    %18 = vector.load %arg7[%c0_18, %c0_19] : memref<1x128xf32, #tpu.memory_space<vmem>>, vector<1x128xf32>
    %cst_20 = arith.constant 2.000000e+00 : f32
    %19 = vector.broadcast %cst_20 : f32 to vector<32x128xf32>
    %20 = arith.mulf %19, %17 : vector<32x128xf32>
    %21 = vector.broadcast %18 : vector<1x128xf32> to vector<32x128xf32>
    %22 = arith.subf %21, %20 : vector<32x128xf32>
    %23 = tpu.iota {dimensions = array<i32: 1>} : vector<32x128xi32>
    %cst_21 = arith.constant dense<0x7F800000> : vector<32xf32>
    %24 = vector.multi_reduction <minimumf>, %22, %cst_21 [1] : vector<32x128xf32> to vector<32xf32>
    %25 = vector.shape_cast %24 : vector<32xf32> to vector<32x1xf32>
    %26 = vector.broadcast %25 : vector<32x1xf32> to vector<32x128xf32>
    %27 = arith.cmpf ole, %22, %26 : vector<32x128xf32>
    %c128_i32 = arith.constant 128 : i32
    %28 = vector.broadcast %c128_i32 : i32 to vector<32x128xi32>
    %29 = arith.select %27, %23, %28 : vector<32x128xi1>, vector<32x128xi32>
    %cst_22 = arith.constant dense<2147483647> : vector<32xi32>
    %30 = vector.multi_reduction <minsi>, %29, %cst_22 [1] : vector<32x128xi32> to vector<32xi32>
    %31 = vector.shape_cast %30 : vector<32xi32> to vector<32x1xi32>
    %32 = vector.broadcast %31 : vector<32x1xi32> to vector<32x128xi32>
    %33 = arith.cmpi eq, %23, %32 : vector<32x128xi32>
    %34 = arith.extui %33 : vector<32x128xi1> to vector<32x128xi32>
    %35 = arith.sitofp %34 : vector<32x128xi32> to vector<32x128xf32>
    %cst_23 = arith.constant dense<0.000000e+00> : vector<32x8xf32>
    %36 = tpu.matmul %35, %16, %cst_23 {dimension_numbers = #tpu.dot_dimension_numbers<[1], [0], [0], [1], [0, 0, 1, 1], [], []>} : vector<32x128xf32>, vector<128x8xf32>, vector<32x8xf32> -> vector<32x8xf32>
    %37 = arith.subf %36, %15 : vector<32x8xf32>
    %38 = arith.mulf %37, %37 : vector<32x8xf32>
    %39 = vector.shape_cast %38 : vector<32x8xf32> to vector<1x32x8xf32>
    %cst_24 = arith.constant dense<0.000000e+00> : vector<1xf32>
    %40 = vector.multi_reduction <add>, %39, %cst_24 [1, 2] : vector<1x32x8xf32> to vector<1xf32>
    %41 = vector.shape_cast %40 : vector<1xf32> to vector<1x1x1xf32>
    %42 = vector.extract %41[0, 0, 0] : f32 from vector<1x1x1xf32>
    %43 = vector.broadcast %42 : f32 to vector<1x1xf32>
    %cst_25 = arith.constant 0.0048828125 : f32
    %44 = vector.broadcast %cst_25 : f32 to vector<1x1xf32>
    %45 = arith.mulf %43, %44 : vector<1x1xf32>
    %c0_26 = arith.constant 0 : index
    %c0_27 = arith.constant 0 : index
    %46 = vector.load %arg14[%c0_26, %c0_27] : memref<1x1xf32, #tpu.memory_space<vmem>>, vector<1x1xf32>
    tpu.vector_store %arg14[%c0_26, %c0_27], %45 {strides = array<i32>} : memref<1x1xf32, #tpu.memory_space<vmem>>, vector<1x1xf32>,
    %cst_28 = arith.constant 0.000000e+00 : f32
    %47 = vector.broadcast %cst_28 : f32 to vector<8x8xf32>
    %c0_29 = arith.constant 0 : index
    %c0_30 = arith.constant 0 : index
    %48 = vector.load %arg15[%c0_29, %c0_30] : memref<48x8xf32, #tpu.memory_space<vmem>>, vector<8x8xf32>
    tpu.vector_store %arg15[%c0_29, %c0_30], %47 {strides = array<i32>} : memref<48x8xf32, #tpu.memory_space<vmem>>, vector<8x8xf32>,
    %cst_31 = arith.constant 0.000000e+00 : f32
    %49 = vector.broadcast %cst_31 : f32 to vector<8x8xf32>
    %c40 = arith.constant 40 : index
    %c0_32 = arith.constant 0 : index
    %50 = vector.load %arg15[%c40, %c0_32] : memref<48x8xf32, #tpu.memory_space<vmem>>, vector<8x8xf32>
    tpu.vector_store %arg15[%c40, %c0_32], %49 {strides = array<i32>} : memref<48x8xf32, #tpu.memory_space<vmem>>, vector<8x8xf32>,
    %c8 = arith.constant 8 : index
    %c0_33 = arith.constant 0 : index
    %51 = vector.load %arg15[%c8, %c0_33] : memref<48x8xf32, #tpu.memory_space<vmem>>, vector<32x8xf32>
    tpu.vector_store %arg15[%c8, %c0_33], %36 {strides = array<i32>} : memref<48x8xf32, #tpu.memory_space<vmem>>, vector<32x8xf32>,
    %c0_34 = arith.constant 0 : index
    %c0_35 = arith.constant 0 : index
    %52 = vector.load %arg15[%c0_34, %c0_35] : memref<48x8xf32, #tpu.memory_space<vmem>>, vector<48x8xf32>
    %53 = vector.extract_strided_slice %52 {offsets = [3, 0], sizes = [32, 8], strides = [1, 1]} : vector<48x8xf32> to vector<32x8xf32>
    %54 = vector.extract_strided_slice %0 {offsets = [0, 0], sizes = [32, 1], strides = [1, 1]} : vector<32x9xf32> to vector<32x1xf32>
    %55 = vector.broadcast %54 : vector<32x1xf32> to vector<32x8xf32>
    %56 = arith.mulf %53, %55 : vector<32x8xf32>
    %c0_36 = arith.constant 0 : index
    %c0_37 = arith.constant 0 : index
    %c0_38 = arith.constant 0 : index
    %57 = vector.load %arg8[%c0_36, %c0_37, %c0_38] : memref<9x8x128xf32, #tpu.memory_space<vmem>>, vector<1x8x128xf32>
    %58 = vector.shape_cast %57 : vector<1x8x128xf32> to vector<8x128xf32>
    %cst_39 = arith.constant dense<0.000000e+00> : vector<32x128xf32>
    %59 = tpu.matmul %56, %58, %cst_39 {dimension_numbers = #tpu.dot_dimension_numbers<[1], [0], [0], [1], [0, 0, 1, 1], [], []>} : vector<32x8xf32>, vector<8x128xf32>, vector<32x128xf32> -> vector<32x128xf32>
    %60 = vector.extract_strided_slice %52 {offsets = [4, 0], sizes = [32, 8], strides = [1, 1]} : vector<48x8xf32> to vector<32x8xf32>
    %61 = vector.extract_strided_slice %0 {offsets = [0, 1], sizes = [32, 1], strides = [1, 1]} : vector<32x9xf32> to vector<32x1xf32>
    %62 = vector.broadcast %61 : vector<32x1xf32> to vector<32x8xf32>
    %63 = arith.mulf %60, %62 : vector<32x8xf32>
    %c1 = arith.constant 1 : index
    %c0_40 = arith.constant 0 : index
    %c0_41 = arith.constant 0 : index
    %64 = vector.load %arg8[%c1, %c0_40, %c0_41] : memref<9x8x128xf32, #tpu.memory_space<vmem>>, vector<1x8x128xf32>
    %65 = vector.shape_cast %64 : vector<1x8x128xf32> to vector<8x128xf32>
    %cst_42 = arith.constant dense<0.000000e+00> : vector<32x128xf32>
    %66 = tpu.matmul %63, %65, %cst_42 {dimension_numbers = #tpu.dot_dimension_numbers<[1], [0], [0], [1], [0, 0, 1, 1], [], []>} : vector<32x8xf32>, vector<8x128xf32>, vector<32x128xf32> -> vector<32x128xf32>
    %67 = arith.addf %59, %66 : vector<32x128xf32>
    %68 = vector.extract_strided_slice %52 {offsets = [5, 0], sizes = [32, 8], strides = [1, 1]} : vector<48x8xf32> to vector<32x8xf32>
    %69 = vector.extract_strided_slice %0 {offsets = [0, 2], sizes = [32, 1], strides = [1, 1]} : vector<32x9xf32> to vector<32x1xf32>
    %70 = vector.broadcast %69 : vector<32x1xf32> to vector<32x8xf32>
    %71 = arith.mulf %68, %70 : vector<32x8xf32>
    %c2 = arith.constant 2 : index
    %c0_43 = arith.constant 0 : index
    %c0_44 = arith.constant 0 : index
    %72 = vector.load %arg8[%c2, %c0_43, %c0_44] : memref<9x8x128xf32, #tpu.memory_space<vmem>>, vector<1x8x128xf32>
    %73 = vector.shape_cast %72 : vector<1x8x128xf32> to vector<8x128xf32>
    %cst_45 = arith.constant dense<0.000000e+00> : vector<32x128xf32>
    %74 = tpu.matmul %71, %73, %cst_45 {dimension_numbers = #tpu.dot_dimension_numbers<[1], [0], [0], [1], [0, 0, 1, 1], [], []>} : vector<32x8xf32>, vector<8x128xf32>, vector<32x128xf32> -> vector<32x128xf32>
    %75 = arith.addf %67, %74 : vector<32x128xf32>
    %76 = vector.extract_strided_slice %52 {offsets = [7, 0], sizes = [32, 8], strides = [1, 1]} : vector<48x8xf32> to vector<32x8xf32>
    %77 = vector.extract_strided_slice %0 {offsets = [0, 3], sizes = [32, 1], strides = [1, 1]} : vector<32x9xf32> to vector<32x1xf32>
    %78 = vector.broadcast %77 : vector<32x1xf32> to vector<32x8xf32>
    %79 = arith.mulf %76, %78 : vector<32x8xf32>
    %c3 = arith.constant 3 : index
    %c0_46 = arith.constant 0 : index
    %c0_47 = arith.constant 0 : index
    %80 = vector.load %arg8[%c3, %c0_46, %c0_47] : memref<9x8x128xf32, #tpu.memory_space<vmem>>, vector<1x8x128xf32>
    %81 = vector.shape_cast %80 : vector<1x8x128xf32> to vector<8x128xf32>
    %cst_48 = arith.constant dense<0.000000e+00> : vector<32x128xf32>
    %82 = tpu.matmul %79, %81, %cst_48 {dimension_numbers = #tpu.dot_dimension_numbers<[1], [0], [0], [1], [0, 0, 1, 1], [], []>} : vector<32x8xf32>, vector<8x128xf32>, vector<32x128xf32> -> vector<32x128xf32>
    %83 = arith.addf %75, %82 : vector<32x128xf32>
    %84 = vector.extract_strided_slice %52 {offsets = [8, 0], sizes = [32, 8], strides = [1, 1]} : vector<48x8xf32> to vector<32x8xf32>
    %85 = vector.extract_strided_slice %0 {offsets = [0, 4], sizes = [32, 1], strides = [1, 1]} : vector<32x9xf32> to vector<32x1xf32>
    %86 = vector.broadcast %85 : vector<32x1xf32> to vector<32x8xf32>
    %87 = arith.mulf %84, %86 : vector<32x8xf32>
    %c4 = arith.constant 4 : index
    %c0_49 = arith.constant 0 : index
    %c0_50 = arith.constant 0 : index
    %88 = vector.load %arg8[%c4, %c0_49, %c0_50] : memref<9x8x128xf32, #tpu.memory_space<vmem>>, vector<1x8x128xf32>
    %89 = vector.shape_cast %88 : vector<1x8x128xf32> to vector<8x128xf32>
    %cst_51 = arith.constant dense<0.000000e+00> : vector<32x128xf32>
    %90 = tpu.matmul %87, %89, %cst_51 {dimension_numbers = #tpu.dot_dimension_numbers<[1], [0], [0], [1], [0, 0, 1, 1], [], []>} : vector<32x8xf32>, vector<8x128xf32>, vector<32x128xf32> -> vector<32x128xf32>
    %91 = arith.addf %83, %90 : vector<32x128xf32>
    %92 = vector.extract_strided_slice %52 {offsets = [9, 0], sizes = [32, 8], strides = [1, 1]} : vector<48x8xf32> to vector<32x8xf32>
    %93 = vector.extract_strided_slice %0 {offsets = [0, 5], sizes = [32, 1], strides = [1, 1]} : vector<32x9xf32> to vector<32x1xf32>
    %94 = vector.broadcast %93 : vector<32x1xf32> to vector<32x8xf32>
    %95 = arith.mulf %92, %94 : vector<32x8xf32>
    %c5 = arith.constant 5 : index
    %c0_52 = arith.constant 0 : index
    %c0_53 = arith.constant 0 : index
    %96 = vector.load %arg8[%c5, %c0_52, %c0_53] : memref<9x8x128xf32, #tpu.memory_space<vmem>>, vector<1x8x128xf32>
    %97 = vector.shape_cast %96 : vector<1x8x128xf32> to vector<8x128xf32>
    %cst_54 = arith.constant dense<0.000000e+00> : vector<32x128xf32>
    %98 = tpu.matmul %95, %97, %cst_54 {dimension_numbers = #tpu.dot_dimension_numbers<[1], [0], [0], [1], [0, 0, 1, 1], [], []>} : vector<32x8xf32>, vector<8x128xf32>, vector<32x128xf32> -> vector<32x128xf32>
    %99 = arith.addf %91, %98 : vector<32x128xf32>
    %100 = vector.extract_strided_slice %52 {offsets = [11, 0], sizes = [32, 8], strides = [1, 1]} : vector<48x8xf32> to vector<32x8xf32>
    %101 = vector.extract_strided_slice %0 {offsets = [0, 6], sizes = [32, 1], strides = [1, 1]} : vector<32x9xf32> to vector<32x1xf32>
    %102 = vector.broadcast %101 : vector<32x1xf32> to vector<32x8xf32>
    %103 = arith.mulf %100, %102 : vector<32x8xf32>
    %c6 = arith.constant 6 : index
    %c0_55 = arith.constant 0 : index
    %c0_56 = arith.constant 0 : index
    %104 = vector.load %arg8[%c6, %c0_55, %c0_56] : memref<9x8x128xf32, #tpu.memory_space<vmem>>, vector<1x8x128xf32>
    %105 = vector.shape_cast %104 : vector<1x8x128xf32> to vector<8x128xf32>
    %cst_57 = arith.constant dense<0.000000e+00> : vector<32x128xf32>
    %106 = tpu.matmul %103, %105, %cst_57 {dimension_numbers = #tpu.dot_dimension_numbers<[1], [0], [0], [1], [0, 0, 1, 1], [], []>} : vector<32x8xf32>, vector<8x128xf32>, vector<32x128xf32> -> vector<32x128xf32>
    %107 = arith.addf %99, %106 : vector<32x128xf32>
    %108 = vector.extract_strided_slice %52 {offsets = [12, 0], sizes = [32, 8], strides = [1, 1]} : vector<48x8xf32> to vector<32x8xf32>
    %109 = vector.extract_strided_slice %0 {offsets = [0, 7], sizes = [32, 1], strides = [1, 1]} : vector<32x9xf32> to vector<32x1xf32>
    %110 = vector.broadcast %109 : vector<32x1xf32> to vector<32x8xf32>
    %111 = arith.mulf %108, %110 : vector<32x8xf32>
    %c7 = arith.constant 7 : index
    %c0_58 = arith.constant 0 : index
    %c0_59 = arith.constant 0 : index
    %112 = vector.load %arg8[%c7, %c0_58, %c0_59] : memref<9x8x128xf32, #tpu.memory_space<vmem>>, vector<1x8x128xf32>
    %113 = vector.shape_cast %112 : vector<1x8x128xf32> to vector<8x128xf32>
    %cst_60 = arith.constant dense<0.000000e+00> : vector<32x128xf32>
    %114 = tpu.matmul %111, %113, %cst_60 {dimension_numbers = #tpu.dot_dimension_numbers<[1], [0], [0], [1], [0, 0, 1, 1], [], []>} : vector<32x8xf32>, vector<8x128xf32>, vector<32x128xf32> -> vector<32x128xf32>
    %115 = arith.addf %107, %114 : vector<32x128xf32>
    %116 = vector.extract_strided_slice %52 {offsets = [13, 0], sizes = [32, 8], strides = [1, 1]} : vector<48x8xf32> to vector<32x8xf32>
    %117 = vector.extract_strided_slice %0 {offsets = [0, 8], sizes = [32, 1], strides = [1, 1]} : vector<32x9xf32> to vector<32x1xf32>
    %118 = vector.broadcast %117 : vector<32x1xf32> to vector<32x8xf32>
    %119 = arith.mulf %116, %118 : vector<32x8xf32>
    %c8_61 = arith.constant 8 : index
    %c0_62 = arith.constant 0 : index
    %c0_63 = arith.constant 0 : index
    %120 = vector.load %arg8[%c8_61, %c0_62, %c0_63] : memref<9x8x128xf32, #tpu.memory_space<vmem>>, vector<1x8x128xf32>
    %121 = vector.shape_cast %120 : vector<1x8x128xf32> to vector<8x128xf32>
    %cst_64 = arith.constant dense<0.000000e+00> : vector<32x128xf32>
    %122 = tpu.matmul %119, %121, %cst_64 {dimension_numbers = #tpu.dot_dimension_numbers<[1], [0], [0], [1], [0, 0, 1, 1], [], []>} : vector<32x8xf32>, vector<8x128xf32>, vector<32x128xf32> -> vector<32x128xf32>
    %123 = arith.addf %115, %122 : vector<32x128xf32>
    %c0_65 = arith.constant 0 : index
    %c0_66 = arith.constant 0 : index
    %124 = vector.load %arg9[%c0_65, %c0_66] : memref<1x128xf32, #tpu.memory_space<vmem>>, vector<1x128xf32>
    %125 = vector.broadcast %124 : vector<1x128xf32> to vector<32x128xf32>
    %126 = arith.addf %123, %125 : vector<32x128xf32>
    %cst_67 = arith.constant 0.000000e+00 : f32
    %127 = vector.broadcast %cst_67 : f32 to vector<32x128xf32>
    %128 = arith.maximumf %126, %127 : vector<32x128xf32>
    %cst_68 = arith.constant 0.000000e+00 : f32
    %129 = vector.broadcast %cst_68 : f32 to vector<8x128xf32>
    %c0_69 = arith.constant 0 : index
    %c0_70 = arith.constant 0 : index
    %130 = vector.load %arg16[%c0_69, %c0_70] : memref<48x128xf32, #tpu.memory_space<vmem>>, vector<8x128xf32>
    tpu.vector_store %arg16[%c0_69, %c0_70], %129 {strides = array<i32>} : memref<48x128xf32, #tpu.memory_space<vmem>>, vector<8x128xf32>,
    %cst_71 = arith.constant 0.000000e+00 : f32
    %131 = vector.broadcast %cst_71 : f32 to vector<8x128xf32>
    %c40_72 = arith.constant 40 : index
    %c0_73 = arith.constant 0 : index
    %132 = vector.load %arg16[%c40_72, %c0_73] : memref<48x128xf32, #tpu.memory_space<vmem>>, vector<8x128xf32>
    tpu.vector_store %arg16[%c40_72, %c0_73], %131 {strides = array<i32>} : memref<48x128xf32, #tpu.memory_space<vmem>>, vector<8x128xf32>,
    %c8_74 = arith.constant 8 : index
    %c0_75 = arith.constant 0 : index
    %133 = vector.load %arg16[%c8_74, %c0_75] : memref<48x128xf32, #tpu.memory_space<vmem>>, vector<32x128xf32>
    tpu.vector_store %arg16[%c8_74, %c0_75], %128 {strides = array<i32>} : memref<48x128xf32, #tpu.memory_space<vmem>>, vector<32x128xf32>,
    %c0_76 = arith.constant 0 : index
    %c0_77 = arith.constant 0 : index
    %134 = vector.load %arg16[%c0_76, %c0_77] : memref<48x128xf32, #tpu.memory_space<vmem>>, vector<48x128xf32>
    %135 = vector.extract_strided_slice %134 {offsets = [8, 0], sizes = [32, 32], strides = [1, 1]} : vector<48x128xf32> to vector<32x32xf32>
    %136 = vector.extract_strided_slice %0 {offsets = [0, 4], sizes = [32, 1], strides = [1, 1]} : vector<32x9xf32> to vector<32x1xf32>
    %137 = vector.broadcast %136 : vector<32x1xf32> to vector<32x32xf32>
    %138 = arith.mulf %135, %137 : vector<32x32xf32>
    %c0_78 = arith.constant 0 : index
    %c0_79 = arith.constant 0 : index
    %c0_80 = arith.constant 0 : index
    %139 = vector.load %arg10[%c0_78, %c0_79, %c0_80] : memref<16x32x128xf32, #tpu.memory_space<vmem>>, vector<1x32x128xf32>
    %140 = vector.shape_cast %139 : vector<1x32x128xf32> to vector<32x128xf32>
    %cst_81 = arith.constant dense<0.000000e+00> : vector<32x128xf32>
    %141 = tpu.matmul %138, %140, %cst_81 {dimension_numbers = #tpu.dot_dimension_numbers<[1], [0], [0], [1], [0, 0, 1, 1], [], []>} : vector<32x32xf32>, vector<32x128xf32>, vector<32x128xf32> -> vector<32x128xf32>
    %142 = vector.extract_strided_slice %134 {offsets = [7, 32], sizes = [32, 32], strides = [1, 1]} : vector<48x128xf32> to vector<32x32xf32>
    %143 = vector.extract_strided_slice %0 {offsets = [0, 3], sizes = [32, 1], strides = [1, 1]} : vector<32x9xf32> to vector<32x1xf32>
    %144 = vector.broadcast %143 : vector<32x1xf32> to vector<32x32xf32>
    %145 = arith.mulf %142, %144 : vector<32x32xf32>
    %c1_82 = arith.constant 1 : index
    %c0_83 = arith.constant 0 : index
    %c0_84 = arith.constant 0 : index
    %146 = vector.load %arg10[%c1_82, %c0_83, %c0_84] : memref<16x32x128xf32, #tpu.memory_space<vmem>>, vector<1x32x128xf32>
    %147 = vector.shape_cast %146 : vector<1x32x128xf32> to vector<32x128xf32>
    %cst_85 = arith.constant dense<0.000000e+00> : vector<32x128xf32>
    %148 = tpu.matmul %145, %147, %cst_85 {dimension_numbers = #tpu.dot_dimension_numbers<[1], [0], [0], [1], [0, 0, 1, 1], [], []>} : vector<32x32xf32>, vector<32x128xf32>, vector<32x128xf32> -> vector<32x128xf32>
    %149 = arith.addf %141, %148 : vector<32x128xf32>
    %150 = vector.extract_strided_slice %134 {offsets = [8, 32], sizes = [32, 32], strides = [1, 1]} : vector<48x128xf32> to vector<32x32xf32>
    %151 = vector.extract_strided_slice %0 {offsets = [0, 4], sizes = [32, 1], strides = [1, 1]} : vector<32x9xf32> to vector<32x1xf32>
    %152 = vector.broadcast %151 : vector<32x1xf32> to vector<32x32xf32>
    %153 = arith.mulf %150, %152 : vector<32x32xf32>
    %c2_86 = arith.constant 2 : index
    %c0_87 = arith.constant 0 : index
    %c0_88 = arith.constant 0 : index
    %154 = vector.load %arg10[%c2_86, %c0_87, %c0_88] : memref<16x32x128xf32, #tpu.memory_space<vmem>>, vector<1x32x128xf32>
    %155 = vector.shape_cast %154 : vector<1x32x128xf32> to vector<32x128xf32>
    %cst_89 = arith.constant dense<0.000000e+00> : vector<32x128xf32>
    %156 = tpu.matmul %153, %155, %cst_89 {dimension_numbers = #tpu.dot_dimension_numbers<[1], [0], [0], [1], [0, 0, 1, 1], [], []>} : vector<32x32xf32>, vector<32x128xf32>, vector<32x128xf32> -> vector<32x128xf32>
    %157 = arith.addf %149, %156 : vector<32x128xf32>
    %158 = vector.extract_strided_slice %134 {offsets = [9, 0], sizes = [32, 32], strides = [1, 1]} : vector<48x128xf32> to vector<32x32xf32>
    %159 = vector.extract_strided_slice %0 {offsets = [0, 5], sizes = [32, 1], strides = [1, 1]} : vector<32x9xf32> to vector<32x1xf32>
    %160 = vector.broadcast %159 : vector<32x1xf32> to vector<32x32xf32>
    %161 = arith.mulf %158, %160 : vector<32x32xf32>
    %c3_90 = arith.constant 3 : index
    %c0_91 = arith.constant 0 : index
    %c0_92 = arith.constant 0 : index
    %162 = vector.load %arg10[%c3_90, %c0_91, %c0_92] : memref<16x32x128xf32, #tpu.memory_space<vmem>>, vector<1x32x128xf32>
    %163 = vector.shape_cast %162 : vector<1x32x128xf32> to vector<32x128xf32>
    %cst_93 = arith.constant dense<0.000000e+00> : vector<32x128xf32>
    %164 = tpu.matmul %161, %163, %cst_93 {dimension_numbers = #tpu.dot_dimension_numbers<[1], [0], [0], [1], [0, 0, 1, 1], [], []>} : vector<32x32xf32>, vector<32x128xf32>, vector<32x128xf32> -> vector<32x128xf32>
    %165 = arith.addf %157, %164 : vector<32x128xf32>
    %166 = vector.extract_strided_slice %134 {offsets = [4, 64], sizes = [32, 32], strides = [1, 1]} : vector<48x128xf32> to vector<32x32xf32>
    %167 = vector.extract_strided_slice %0 {offsets = [0, 1], sizes = [32, 1], strides = [1, 1]} : vector<32x9xf32> to vector<32x1xf32>
    %168 = vector.broadcast %167 : vector<32x1xf32> to vector<32x32xf32>
    %169 = arith.mulf %166, %168 : vector<32x32xf32>
    %c4_94 = arith.constant 4 : index
    %c0_95 = arith.constant 0 : index
    %c0_96 = arith.constant 0 : index
    %170 = vector.load %arg10[%c4_94, %c0_95, %c0_96] : memref<16x32x128xf32, #tpu.memory_space<vmem>>, vector<1x32x128xf32>
    %171 = vector.shape_cast %170 : vector<1x32x128xf32> to vector<32x128xf32>
    %cst_97 = arith.constant dense<0.000000e+00> : vector<32x128xf32>
    %172 = tpu.matmul %169, %171, %cst_97 {dimension_numbers = #tpu.dot_dimension_numbers<[1], [0], [0], [1], [0, 0, 1, 1], [], []>} : vector<32x32xf32>, vector<32x128xf32>, vector<32x128xf32> -> vector<32x128xf32>
    %173 = arith.addf %165, %172 : vector<32x128xf32>
    %174 = vector.extract_strided_slice %134 {offsets = [3, 96], sizes = [32, 32], strides = [1, 1]} : vector<48x128xf32> to vector<32x32xf32>
    %175 = vector.extract_strided_slice %0 {offsets = [0, 0], sizes = [32, 1], strides = [1, 1]} : vector<32x9xf32> to vector<32x1xf32>
    %176 = vector.broadcast %175 : vector<32x1xf32> to vector<32x32xf32>
    %177 = arith.mulf %174, %176 : vector<32x32xf32>
    %c5_98 = arith.constant 5 : index
    %c0_99 = arith.constant 0 : index
    %c0_100 = arith.constant 0 : index
    %178 = vector.load %arg10[%c5_98, %c0_99, %c0_100] : memref<16x32x128xf32, #tpu.memory_space<vmem>>, vector<1x32x128xf32>
    %179 = vector.shape_cast %178 : vector<1x32x128xf32> to vector<32x128xf32>
    %cst_101 = arith.constant dense<0.000000e+00> : vector<32x128xf32>
    %180 = tpu.matmul %177, %179, %cst_101 {dimension_numbers = #tpu.dot_dimension_numbers<[1], [0], [0], [1], [0, 0, 1, 1], [], []>} : vector<32x32xf32>, vector<32x128xf32>, vector<32x128xf32> -> vector<32x128xf32>
    %181 = arith.addf %173, %180 : vector<32x128xf32>
    %182 = vector.extract_strided_slice %134 {offsets = [4, 96], sizes = [32, 32], strides = [1, 1]} : vector<48x128xf32> to vector<32x32xf32>
    %183 = vector.extract_strided_slice %0 {offsets = [0, 1], sizes = [32, 1], strides = [1, 1]} : vector<32x9xf32> to vector<32x1xf32>
    %184 = vector.broadcast %183 : vector<32x1xf32> to vector<32x32xf32>
    %185 = arith.mulf %182, %184 : vector<32x32xf32>
    %c6_102 = arith.constant 6 : index
    %c0_103 = arith.constant 0 : index
    %c0_104 = arith.constant 0 : index
    %186 = vector.load %arg10[%c6_102, %c0_103, %c0_104] : memref<16x32x128xf32, #tpu.memory_space<vmem>>, vector<1x32x128xf32>
    %187 = vector.shape_cast %186 : vector<1x32x128xf32> to vector<32x128xf32>
    %cst_105 = arith.constant dense<0.000000e+00> : vector<32x128xf32>
    %188 = tpu.matmul %185, %187, %cst_105 {dimension_numbers = #tpu.dot_dimension_numbers<[1], [0], [0], [1], [0, 0, 1, 1], [], []>} : vector<32x32xf32>, vector<32x128xf32>, vector<32x128xf32> -> vector<32x128xf32>
    %189 = arith.addf %181, %188 : vector<32x128xf32>
    %190 = vector.extract_strided_slice %134 {offsets = [5, 64], sizes = [32, 32], strides = [1, 1]} : vector<48x128xf32> to vector<32x32xf32>
    %191 = vector.extract_strided_slice %0 {offsets = [0, 2], sizes = [32, 1], strides = [1, 1]} : vector<32x9xf32> to vector<32x1xf32>
    %192 = vector.broadcast %191 : vector<32x1xf32> to vector<32x32xf32>
    %193 = arith.mulf %190, %192 : vector<32x32xf32>
    %c7_106 = arith.constant 7 : index
    %c0_107 = arith.constant 0 : index
    %c0_108 = arith.constant 0 : index
    %194 = vector.load %arg10[%c7_106, %c0_107, %c0_108] : memref<16x32x128xf32, #tpu.memory_space<vmem>>, vector<1x32x128xf32>
    %195 = vector.shape_cast %194 : vector<1x32x128xf32> to vector<32x128xf32>
    %cst_109 = arith.constant dense<0.000000e+00> : vector<32x128xf32>
    %196 = tpu.matmul %193, %195, %cst_109 {dimension_numbers = #tpu.dot_dimension_numbers<[1], [0], [0], [1], [0, 0, 1, 1], [], []>} : vector<32x32xf32>, vector<32x128xf32>, vector<32x128xf32> -> vector<32x128xf32>
    %197 = arith.addf %189, %196 : vector<32x128xf32>
    %198 = vector.extract_strided_slice %134 {offsets = [8, 64], sizes = [32, 32], strides = [1, 1]} : vector<48x128xf32> to vector<32x32xf32>
    %199 = vector.extract_strided_slice %0 {offsets = [0, 4], sizes = [32, 1], strides = [1, 1]} : vector<32x9xf32> to vector<32x1xf32>
    %200 = vector.broadcast %199 : vector<32x1xf32> to vector<32x32xf32>
    %201 = arith.mulf %198, %200 : vector<32x32xf32>
    %c8_110 = arith.constant 8 : index
    %c0_111 = arith.constant 0 : index
    %c0_112 = arith.constant 0 : index
    %202 = vector.load %arg10[%c8_110, %c0_111, %c0_112] : memref<16x32x128xf32, #tpu.memory_space<vmem>>, vector<1x32x128xf32>
    %203 = vector.shape_cast %202 : vector<1x32x128xf32> to vector<32x128xf32>
    %cst_113 = arith.constant dense<0.000000e+00> : vector<32x128xf32>
    %204 = tpu.matmul %201, %203, %cst_113 {dimension_numbers = #tpu.dot_dimension_numbers<[1], [0], [0], [1], [0, 0, 1, 1], [], []>} : vector<32x32xf32>, vector<32x128xf32>, vector<32x128xf32> -> vector<32x128xf32>
    %205 = arith.addf %197, %204 : vector<32x128xf32>
    %206 = vector.extract_strided_slice %134 {offsets = [7, 96], sizes = [32, 32], strides = [1, 1]} : vector<48x128xf32> to vector<32x32xf32>
    %207 = vector.extract_strided_slice %0 {offsets = [0, 3], sizes = [32, 1], strides = [1, 1]} : vector<32x9xf32> to vector<32x1xf32>
    %208 = vector.broadcast %207 : vector<32x1xf32> to vector<32x32xf32>
    %209 = arith.mulf %206, %208 : vector<32x32xf32>
    %c9 = arith.constant 9 : index
    %c0_114 = arith.constant 0 : index
    %c0_115 = arith.constant 0 : index
    %210 = vector.load %arg10[%c9, %c0_114, %c0_115] : memref<16x32x128xf32, #tpu.memory_space<vmem>>, vector<1x32x128xf32>
    %211 = vector.shape_cast %210 : vector<1x32x128xf32> to vector<32x128xf32>
    %cst_116 = arith.constant dense<0.000000e+00> : vector<32x128xf32>
    %212 = tpu.matmul %209, %211, %cst_116 {dimension_numbers = #tpu.dot_dimension_numbers<[1], [0], [0], [1], [0, 0, 1, 1], [], []>} : vector<32x32xf32>, vector<32x128xf32>, vector<32x128xf32> -> vector<32x128xf32>
    %213 = arith.addf %205, %212 : vector<32x128xf32>
    %214 = vector.extract_strided_slice %134 {offsets = [8, 96], sizes = [32, 32], strides = [1, 1]} : vector<48x128xf32> to vector<32x32xf32>
    %215 = vector.extract_strided_slice %0 {offsets = [0, 4], sizes = [32, 1], strides = [1, 1]} : vector<32x9xf32> to vector<32x1xf32>
    %216 = vector.broadcast %215 : vector<32x1xf32> to vector<32x32xf32>
    %217 = arith.mulf %214, %216 : vector<32x32xf32>
    %c10 = arith.constant 10 : index
    %c0_117 = arith.constant 0 : index
    %c0_118 = arith.constant 0 : index
    %218 = vector.load %arg10[%c10, %c0_117, %c0_118] : memref<16x32x128xf32, #tpu.memory_space<vmem>>, vector<1x32x128xf32>
    %219 = vector.shape_cast %218 : vector<1x32x128xf32> to vector<32x128xf32>
    %cst_119 = arith.constant dense<0.000000e+00> : vector<32x128xf32>
    %220 = tpu.matmul %217, %219, %cst_119 {dimension_numbers = #tpu.dot_dimension_numbers<[1], [0], [0], [1], [0, 0, 1, 1], [], []>} : vector<32x32xf32>, vector<32x128xf32>, vector<32x128xf32> -> vector<32x128xf32>
    %221 = arith.addf %213, %220 : vector<32x128xf32>
    %222 = vector.extract_strided_slice %134 {offsets = [9, 64], sizes = [32, 32], strides = [1, 1]} : vector<48x128xf32> to vector<32x32xf32>
    %223 = vector.extract_strided_slice %0 {offsets = [0, 5], sizes = [32, 1], strides = [1, 1]} : vector<32x9xf32> to vector<32x1xf32>
    %224 = vector.broadcast %223 : vector<32x1xf32> to vector<32x32xf32>
    %225 = arith.mulf %222, %224 : vector<32x32xf32>
    %c11 = arith.constant 11 : index
    %c0_120 = arith.constant 0 : index
    %c0_121 = arith.constant 0 : index
    %226 = vector.load %arg10[%c11, %c0_120, %c0_121] : memref<16x32x128xf32, #tpu.memory_space<vmem>>, vector<1x32x128xf32>
    %227 = vector.shape_cast %226 : vector<1x32x128xf32> to vector<32x128xf32>
    %cst_122 = arith.constant dense<0.000000e+00> : vector<32x128xf32>
    %228 = tpu.matmul %225, %227, %cst_122 {dimension_numbers = #tpu.dot_dimension_numbers<[1], [0], [0], [1], [0, 0, 1, 1], [], []>} : vector<32x32xf32>, vector<32x128xf32>, vector<32x128xf32> -> vector<32x128xf32>
    %229 = arith.addf %221, %228 : vector<32x128xf32>
    %230 = vector.extract_strided_slice %134 {offsets = [12, 0], sizes = [32, 32], strides = [1, 1]} : vector<48x128xf32> to vector<32x32xf32>
    %231 = vector.extract_strided_slice %0 {offsets = [0, 7], sizes = [32, 1], strides = [1, 1]} : vector<32x9xf32> to vector<32x1xf32>
    %232 = vector.broadcast %231 : vector<32x1xf32> to vector<32x32xf32>
    %233 = arith.mulf %230, %232 : vector<32x32xf32>
    %c12 = arith.constant 12 : index
    %c0_123 = arith.constant 0 : index
    %c0_124 = arith.constant 0 : index
    %234 = vector.load %arg10[%c12, %c0_123, %c0_124] : memref<16x32x128xf32, #tpu.memory_space<vmem>>, vector<1x32x128xf32>
    %235 = vector.shape_cast %234 : vector<1x32x128xf32> to vector<32x128xf32>
    %cst_125 = arith.constant dense<0.000000e+00> : vector<32x128xf32>
    %236 = tpu.matmul %233, %235, %cst_125 {dimension_numbers = #tpu.dot_dimension_numbers<[1], [0], [0], [1], [0, 0, 1, 1], [], []>} : vector<32x32xf32>, vector<32x128xf32>, vector<32x128xf32> -> vector<32x128xf32>
    %237 = arith.addf %229, %236 : vector<32x128xf32>
    %238 = vector.extract_strided_slice %134 {offsets = [11, 32], sizes = [32, 32], strides = [1, 1]} : vector<48x128xf32> to vector<32x32xf32>
    %239 = vector.extract_strided_slice %0 {offsets = [0, 6], sizes = [32, 1], strides = [1, 1]} : vector<32x9xf32> to vector<32x1xf32>
    %240 = vector.broadcast %239 : vector<32x1xf32> to vector<32x32xf32>
    %241 = arith.mulf %238, %240 : vector<32x32xf32>
    %c13 = arith.constant 13 : index
    %c0_126 = arith.constant 0 : index
    %c0_127 = arith.constant 0 : index
    %242 = vector.load %arg10[%c13, %c0_126, %c0_127] : memref<16x32x128xf32, #tpu.memory_space<vmem>>, vector<1x32x128xf32>
    %243 = vector.shape_cast %242 : vector<1x32x128xf32> to vector<32x128xf32>
    %cst_128 = arith.constant dense<0.000000e+00> : vector<32x128xf32>
    %244 = tpu.matmul %241, %243, %cst_128 {dimension_numbers = #tpu.dot_dimension_numbers<[1], [0], [0], [1], [0, 0, 1, 1], [], []>} : vector<32x32xf32>, vector<32x128xf32>, vector<32x128xf32> -> vector<32x128xf32>
    %245 = arith.addf %237, %244 : vector<32x128xf32>
    %246 = vector.extract_strided_slice %134 {offsets = [12, 32], sizes = [32, 32], strides = [1, 1]} : vector<48x128xf32> to vector<32x32xf32>
    %247 = vector.extract_strided_slice %0 {offsets = [0, 7], sizes = [32, 1], strides = [1, 1]} : vector<32x9xf32> to vector<32x1xf32>
    %248 = vector.broadcast %247 : vector<32x1xf32> to vector<32x32xf32>
    %249 = arith.mulf %246, %248 : vector<32x32xf32>
    %c14 = arith.constant 14 : index
    %c0_129 = arith.constant 0 : index
    %c0_130 = arith.constant 0 : index
    %250 = vector.load %arg10[%c14, %c0_129, %c0_130] : memref<16x32x128xf32, #tpu.memory_space<vmem>>, vector<1x32x128xf32>
    %251 = vector.shape_cast %250 : vector<1x32x128xf32> to vector<32x128xf32>
    %cst_131 = arith.constant dense<0.000000e+00> : vector<32x128xf32>
    %252 = tpu.matmul %249, %251, %cst_131 {dimension_numbers = #tpu.dot_dimension_numbers<[1], [0], [0], [1], [0, 0, 1, 1], [], []>} : vector<32x32xf32>, vector<32x128xf32>, vector<32x128xf32> -> vector<32x128xf32>
    %253 = arith.addf %245, %252 : vector<32x128xf32>
    %254 = vector.extract_strided_slice %134 {offsets = [13, 0], sizes = [32, 32], strides = [1, 1]} : vector<48x128xf32> to vector<32x32xf32>
    %255 = vector.extract_strided_slice %0 {offsets = [0, 8], sizes = [32, 1], strides = [1, 1]} : vector<32x9xf32> to vector<32x1xf32>
    %256 = vector.broadcast %255 : vector<32x1xf32> to vector<32x32xf32>
    %257 = arith.mulf %254, %256 : vector<32x32xf32>
    %c15 = arith.constant 15 : index
    %c0_132 = arith.constant 0 : index
    %c0_133 = arith.constant 0 : index
    %258 = vector.load %arg10[%c15, %c0_132, %c0_133] : memref<16x32x128xf32, #tpu.memory_space<vmem>>, vector<1x32x128xf32>
    %259 = vector.shape_cast %258 : vector<1x32x128xf32> to vector<32x128xf32>
    %cst_134 = arith.constant dense<0.000000e+00> : vector<32x128xf32>
    %260 = tpu.matmul %257, %259, %cst_134 {dimension_numbers = #tpu.dot_dimension_numbers<[1], [0], [0], [1], [0, 0, 1, 1], [], []>} : vector<32x32xf32>, vector<32x128xf32>, vector<32x128xf32> -> vector<32x128xf32>
    %261 = arith.addf %253, %260 : vector<32x128xf32>
    %c0_135 = arith.constant 0 : index
    %c0_136 = arith.constant 0 : index
    %262 = vector.load %arg11[%c0_135, %c0_136] : memref<1x128xf32, #tpu.memory_space<vmem>>, vector<1x128xf32>
    %263 = vector.broadcast %262 : vector<1x128xf32> to vector<32x128xf32>
    %264 = arith.addf %261, %263 : vector<32x128xf32>
    %c0_137 = arith.constant 0 : index
    %c0_138 = arith.constant 0 : index
    %265 = vector.load %arg13[%c0_137, %c0_138] : memref<32x128xf32, #tpu.memory_space<vmem>>, vector<32x128xf32>
    tpu.vector_store %arg13[%c0_137, %c0_138], %264 {strides = array<i32>} : memref<32x128xf32, #tpu.memory_space<vmem>>, vector<32x128xf32>,
    return
  }
}

</mosaic_0001>

<bundles_post_ra>
// kernel: mul.4
= control target key start
LH: loop header
LB: loop body
LE: loop exit
PB: predicated region body
PF: predicated region fallthrough
CT: control target
= control target key end

     0   :  { %vm46_vm0 = vcmask 261120   ;;  %s184_s0 = inlined_call_operand.vmem [shape: f32[3,3,4,32], index: 0, kind: input, shape index: {}]   ;;  %s185_s1 = inlined_call_operand.vmem [shape: f32[36,32], index: 1, kind: output, shape index: {}]  }
   0x1   :  { %v95_v0 = vld [vmem:[%s184_s0 + $0x20] sm:$0xf]  ;;  %v96_v1 = vld [vmem:[%s184_s0 + $0x1c] sm:$0xf]  ;;  %v97_v2 = vld [vmem:[%s184_s0 + $0x18] sm:$0xf] }
   0x2   :  { %8 = vst [vmem:[#allocation0 + $0x40] sm:$0xf] %v95_v0  ;;  %13 = vst [vmem:[#allocation0 + $0x38] sm:$0xf] %v96_v1  ;;  %v98_v3 = vld [vmem:[%s184_s0 + $0x14] sm:$0xf] }
   0x3   :  { %18 = vst [vmem:[#allocation0 + $0x30] sm:$0xf] %v97_v2  ;;  %v99_v4 = vld [vmem:[%s184_s0 + $0x10] sm:$0xf]  ;;  %v100_v5 = vld [vmem:[%s184_s0 + $0xc] sm:$0xf] }
   0x4   :  { %23 = vst [vmem:[#allocation0 + $0x28] sm:$0xf] %v98_v3  ;;  %28 = vst [vmem:[#allocation0 + $0x20] sm:$0xf] %v99_v4  ;;  %v101_v6 = vld [vmem:[%s184_s0 + $0x8] sm:$0xf] }
   0x5   :  { %33 = vst [vmem:[#allocation0 + $0x18] sm:$0xf] %v100_v5  ;;  %v102_v7 = vld [vmem:[%s184_s0 + $0x4] sm:$0xf]  ;;  %v43_v8 = vld [vmem:[%s184_s0] sm:$0xf] }
   0x6   :  { %38 = vst [vmem:[#allocation0 + $0x10] sm:$0xf] %v101_v6  ;;  %42 = vst [vmem:[#allocation0 + $0x8] sm:$0xf] %v102_v7 }
   0x7   :  { %44 = vst [vmem:[#allocation0] sm:$0xf] %v43_v8 }
   0x9   :  { %v79_v10 = vld [vmem:[#allocation0 + $0x38] sm:$0xf]   ;;  %v84_v11 = vld [vmem:[#allocation0 + $0x40] sm:$0xf]  }
   0xa   :  { %v74_v9 = vld [vmem:[#allocation0 + $0x30] sm:$0xf]   ;;  %109 = vst.msk [vmem:[%s185_s1 + $0x1c] sm:$0xf] %vm46_vm0, %v79_v10   ;;  %110 = vst.msk [vmem:[%s185_s1 + $0x20] sm:$0xf] %vm46_vm0, %v84_v11  }
   0xb   :  { %v64_v13 = vld [vmem:[#allocation0 + $0x20] sm:$0xf]   ;;  %v69_v14 = vld [vmem:[#allocation0 + $0x28] sm:$0xf]   ;;  %108 = vst.msk [vmem:[%s185_s1 + $0x18] sm:$0xf] %vm46_vm0, %v74_v9  }
   0xc   :  { %v59_v12 = vld [vmem:[#allocation0 + $0x18] sm:$0xf]   ;;  %106 = vst.msk [vmem:[%s185_s1 + $0x10] sm:$0xf] %vm46_vm0, %v64_v13   ;;  %107 = vst.msk [vmem:[%s185_s1 + $0x14] sm:$0xf] %vm46_vm0, %v69_v14  }
   0xd   :  { %v49_v16 = vld [vmem:[#allocation0 + $0x8] sm:$0xf]   ;;  %v54_v17 = vld [vmem:[#allocation0 + $0x10] sm:$0xf]   ;;  %105 = vst.msk [vmem:[%s185_s1 + $0xc] sm:$0xf] %vm46_vm0, %v59_v12  }
   0xe   :  { %v45_v15 = vld [vmem:[#allocation0] sm:$0xf]   ;;  %103 = vst.msk [vmem:[%s185_s1 + $0x4] sm:$0xf] %vm46_vm0, %v49_v16   ;;  %104 = vst.msk [vmem:[%s185_s1 + $0x8] sm:$0xf] %vm46_vm0, %v54_v17  }
   0xf   :  { %47 = vst.msk [vmem:[%s185_s1] sm:$0xf] %vm46_vm0, %v45_v15  }

// kernel: tile.18
= control target key start
LH: loop header
LB: loop body
LE: loop exit
PB: predicated region body
PF: predicated region fallthrough
CT: control target
= control target key end

     0   :  { %s28_s0 = inlined_call_operand.vmem [shape: f32[32], index: 0, kind: input, shape index: {}]   ;;  %s29_s1 = inlined_call_operand.vmem [shape: f32[9,32], index: 1, kind: output, shape index: {}]  }
   0x1   :  { %v4_v0 = vld [vmem:[%s28_s0] ss:$0 sm:$0xff] }
   0x2   :  { %5 = vst [vmem:[%s29_s1] sm:$0xff] %v4_v0  ;;  %8 = vst [vmem:[%s29_s1 + $0x8] sm:$0xff] %v4_v0 }

// kernel: tile.19
= control target key start
LH: loop header
LB: loop body
LE: loop exit
PB: predicated region body
PF: predicated region fallthrough
CT: control target
= control target key end

     0   :  { %s6_s6 = smov 3  ;;  %s13_s11 = smov 3  ;;  %vm3_vm0 = vcmask 261120   ;;  %vm10_vm1 = vcmask 1048320   ;;  %vm17_vm2 = vcmask 785920   ;;  %vm24_vm3 = vcmask 523520   ;;  %s86_s0 = inlined_call_operand.vmem [shape: f32[9,32], index: 0, kind: input, shape index: {}]   ;;  %s87_s1 = inlined_call_operand.vmem [shape: f32[1,288], index: 1, kind: output, shape index: {}]  }
   0x1   :  { %v2_v0 = vld [vmem:[%s86_s0] ss:$4 sm:$0x7]   ;;  %v44_v1 = vld [vmem:[%s86_s0 + $0x3] ss:$4 sm:%s6_s6]   ;;  %s52_s12 = smov 96  }
   0x2   :  { %8 = vrot.lane.b32.xlu0 %v44_v1, %s52_s12  ;;  %s20_s13 = smov 3  ;;  %4 = vst.msk [vmem:[#allocation0] ss:$8 sm:$0x7] %vm3_vm0, %v2_v0   ;;  %v45_v2 = vld [vmem:[%s86_s0 + $0x2] ss:$4 sm:%s13_s11]  }
   0x3   :  { %v46_v3 = vld [vmem:[%s86_s0 + $0x1] ss:$4 sm:%s20_s13]   ;;  %s53_s0 = smov 32   ;;  %s54_s18 = smov 64  }
   0x4   :  { %22 = vrot.lane.b32.xlu1 %v46_v3, %s53_s0 }
   0x6   :  { %15 = vrot.lane.b32.xlu0 %v45_v2, %s54_s18 }
   0x9   :  { %v38_v4 = vld [vmem:[#allocation0 + $0x10] sm:$0x1] }
   0xa   :  { %48 = vst [vmem:[%s87_s1 + $0x2] sm:$0x1] %v38_v4 }
  0x74   :  { %v9_v5 = vpop.permute.xlu0 %8  }
  0x75   :  { %11 = vst.msk [vmem:[#allocation0] ss:$8 sm:$0x3] %vm10_vm1, %v9_v5  }
  0x76   :  { %v23_v6 = vpop.permute.xlu1 %22  }
  0x78   :  { %v16_v7 = vpop.permute.xlu0 %15  }
  0x79   :  { %18 = vst.msk [vmem:[#allocation0] ss:$8 sm:$0x3] %vm17_vm2, %v16_v7  }
  0x7a   :  { %25 = vst.msk [vmem:[#allocation0] ss:$8 sm:$0x3] %vm24_vm3, %v23_v6  }
  0x81   :  { %v29_v8 = vld [vmem:[#allocation0] sm:$0x1]  ;;  %v33_v9 = vld [vmem:[#allocation0 + $0x8] sm:$0x1] }
  0x82   :  { %31 = vst [vmem:[%s87_s1] sm:$0x1] %v29_v8  ;;  %47 = vst [vmem:[%s87_s1 + $0x1] sm:$0x1] %v33_v9 }

// kernel: tile.28
= control target key start
LH: loop header
LB: loop body
LE: loop exit
PB: predicated region body
PF: predicated region fallthrough
CT: control target
= control target key end

     0   :  { %s28_s0 = inlined_call_operand.vmem [shape: f32[4], index: 0, kind: input, shape index: {}]   ;;  %s29_s1 = inlined_call_operand.vmem [shape: f32[16,4], index: 1, kind: output, shape index: {}]  }
   0x1   :  { %v4_v0 = vld [vmem:[%s28_s0] ss:$0 sm:$0xff] }
   0x2   :  { %5 = vst [vmem:[%s29_s1] sm:$0xff] %v4_v0  ;;  %8 = vst [vmem:[%s29_s1 + $0x8] sm:$0xff] %v4_v0 }

// kernel: tile.29
= control target key start
LH: loop header
LB: loop body
LE: loop exit
PB: predicated region body
PF: predicated region fallthrough
CT: control target
= control target key end

     0   :  { %s131_s10 = smov 60   ;;  %s132_s11 = smov 52   ;;  %vm3_vm0 = vcmask 31744   ;;  %vm9_vm1 = vcmask 523744   ;;  %vm15_vm2 = vcmask 490944   ;;  %vm21_vm3 = vcmask 458144   ;;  %s207_s0 = inlined_call_operand.vmem [shape: f32[16,4], index: 0, kind: input, shape index: {}]   ;;  %s208_s1 = inlined_call_operand.vmem [shape: f32[64], index: 1, kind: output, shape index: {}]  }
   0x1   :  { %v101_v0 = vld [vmem:[%s207_s0 + $0xf] sm:$0x1]   ;;  %v103_v1 = vld [vmem:[%s207_s0 + $0xd] sm:$0x1]   ;;  %v102_v2 = vld [vmem:[%s207_s0 + $0xe] sm:$0x1]  }
   0x2   :  { %7 = vrot.lane.b32.xlu0 %v101_v0, %s131_s10  ;;  %19 = vrot.lane.b32.xlu1 %v103_v1, %s132_s11  ;;  %v104_v3 = vld [vmem:[%s207_s0 + $0xc] sm:$0x1]   ;;  %s133_s16 = smov 56   ;;  %s134_s17 = smov 48   ;;  %v105_v4 = vld [vmem:[%s207_s0 + $0xb] sm:$0x1]  }
   0x3   :  { %v106_v5 = vld [vmem:[%s207_s0 + $0xa] sm:$0x1]   ;;  %v2_v6 = vld [vmem:[%s207_s0] sm:$0x1]   ;;  %s135_s24 = smov 44   ;;  %s136_s25 = smov 40  }
   0x4   :  { %4 = vst.msk [vmem:[#allocation0] sm:$0x1] %vm3_vm0, %v2_v6   ;;  %v107_v7 = vld [vmem:[%s207_s0 + $0x9] sm:$0x1]   ;;  %v108_v8 = vld [vmem:[%s207_s0 + $0x8] sm:$0x1]  }
   0x5   :  { %s137_s30 = smov 36   ;;  %s138_s2 = smov 32   ;;  %v109_v9 = vld [vmem:[%s207_s0 + $0x7] sm:$0x1]   ;;  %v110_v10 = vld [vmem:[%s207_s0 + $0x6] sm:$0x1]  }
   0x6   :  { %13 = vrot.lane.b32.xlu0 %v102_v2, %s133_s16  ;;  %25 = vrot.lane.b32.xlu1 %v104_v3, %s134_s17  ;;  %s139_s7 = smov 28   ;;  %s140_s8 = smov 24   ;;  %v111_v11 = vld [vmem:[%s207_s0 + $0x5] sm:$0x1]   ;;  %v112_v12 = vld [vmem:[%s207_s0 + $0x4] sm:$0x1]  }
   0x7   :  { %s141_s13 = smov 20   ;;  %s142_s14 = smov 16   ;;  %v113_v13 = vld [vmem:[%s207_s0 + $0x3] sm:$0x1]   ;;  %v114_v14 = vld [vmem:[%s207_s0 + $0x2] sm:$0x1]  }
   0x8   :  { %s143_s19 = smov 12   ;;  %s144_s20 = smov 8   ;;  %v115_v15 = vld [vmem:[%s207_s0 + $0x1] sm:$0x1]   ;;  %vm27_vm4 = vcmask 425344   ;;  %vm33_vm5 = vcmask 392544  }
   0x9   :  { %s145_s0 = smov 4   ;;  %vm39_vm6 = vcmask 359744   ;;  %vm45_vm7 = vcmask 326944   ;;  %vm51_vm8 = vcmask 294144   ;;  %vm57_vm9 = vcmask 261344  }
   0xa   :  { %31 = vrot.lane.b32.xlu0 %v105_v4, %s135_s24  ;;  %37 = vrot.lane.b32.xlu1 %v106_v5, %s136_s25  ;;  %vm63_vm10 = vcmask 228544   ;;  %vm69_vm11 = vcmask 195744   ;;  %vm75_vm12 = vcmask 162944   ;;  %vm81_vm13 = vcmask 130144  }
   0xb   :  { %vm87_vm14 = vcmask 97344   ;;  %vm93_vm15 = vcmask 64544  }
   0xe   :  { %43 = vrot.lane.b32.xlu0 %v107_v7, %s137_s30  ;;  %49 = vrot.lane.b32.xlu1 %v108_v8, %s138_s2 }
  0x12   :  { %55 = vrot.lane.b32.xlu0 %v109_v9, %s139_s7  ;;  %61 = vrot.lane.b32.xlu1 %v110_v10, %s140_s8 }
  0x16   :  { %67 = vrot.lane.b32.xlu0 %v111_v11, %s141_s13  ;;  %73 = vrot.lane.b32.xlu1 %v112_v12, %s142_s14 }
  0x1a   :  { %79 = vrot.lane.b32.xlu0 %v113_v13, %s143_s19  ;;  %85 = vrot.lane.b32.xlu1 %v114_v14, %s144_s20 }
  0x1e   :  { %91 = vrot.lane.b32.xlu0 %v115_v15, %s145_s0 }
  0x74   :  { %v8_v16 = vpop.permute.xlu0 %7   ;;  %v20_v17 = vpop.permute.xlu1 %19  }
  0x75   :  { %10 = vst.msk [vmem:[#allocation0] sm:$0x1] %vm9_vm1, %v8_v16  }
  0x78   :  { %v14_v18 = vpop.permute.xlu0 %13   ;;  %v26_v19 = vpop.permute.xlu1 %25  }
  0x79   :  { %16 = vst.msk [vmem:[#allocation0] sm:$0x1] %vm15_vm2, %v14_v18  }
  0x7a   :  { %22 = vst.msk [vmem:[#allocation0] sm:$0x1] %vm21_vm3, %v20_v17  }
  0x7b   :  { %28 = vst.msk [vmem:[#allocation0] sm:$0x1] %vm27_vm4, %v26_v19  }
  0x7c   :  { %v32_v20 = vpop.permute.xlu0 %31   ;;  %v38_v21 = vpop.permute.xlu1 %37  }
  0x7d   :  { %34 = vst.msk [vmem:[#allocation0] sm:$0x1] %vm33_vm5, %v32_v20  }
  0x7e   :  { %40 = vst.msk [vmem:[#allocation0] sm:$0x1] %vm39_vm6, %v38_v21  }
  0x80   :  { %v44_v22 = vpop.permute.xlu0 %43   ;;  %v50_v23 = vpop.permute.xlu1 %49  }
  0x81   :  { %46 = vst.msk [vmem:[#allocation0] sm:$0x1] %vm45_vm7, %v44_v22  }
  0x82   :  { %52 = vst.msk [vmem:[#allocation0] sm:$0x1] %vm51_vm8, %v50_v23  }
  0x84   :  { %v56_v24 = vpop.permute.xlu0 %55   ;;  %v62_v25 = vpop.permute.xlu1 %61  }
  0x85   :  { %58 = vst.msk [vmem:[#allocation0] sm:$0x1] %vm57_vm9, %v56_v24  }
  0x86   :  { %64 = vst.msk [vmem:[#allocation0] sm:$0x1] %vm63_vm10, %v62_v25  }
  0x88   :  { %v68_v26 = vpop.permute.xlu0 %67   ;;  %v74_v27 = vpop.permute.xlu1 %73  }
  0x89   :  { %70 = vst.msk [vmem:[#allocation0] sm:$0x1] %vm69_vm11, %v68_v26  }
  0x8a   :  { %76 = vst.msk [vmem:[#allocation0] sm:$0x1] %vm75_vm12, %v74_v27  }
  0x8c   :  { %v80_v28 = vpop.permute.xlu0 %79   ;;  %v86_v29 = vpop.permute.xlu1 %85  }
  0x8d   :  { %82 = vst.msk [vmem:[#allocation0] sm:$0x1] %vm81_vm13, %v80_v28  }
  0x8e   :  { %88 = vst.msk [vmem:[#allocation0] sm:$0x1] %vm87_vm14, %v86_v29  }
  0x90   :  { %v92_v30 = vpop.permute.xlu0 %91  }
  0x91   :  { %94 = vst.msk [vmem:[#allocation0] sm:$0x1] %vm93_vm15, %v92_v30  }
  0x98   :  { %v98_v31 = vld [vmem:[#allocation0] sm:$0x1] }
  0x99   :  { %100 = vst [vmem:[%s208_s1] sm:$0x1] %v98_v31 }

// kernel: tile.23
= control target key start
LH: loop header
LB: loop body
LE: loop exit
PB: predicated region body
PF: predicated region fallthrough
CT: control target
= control target key end

     0   :  { %s22_s0 = inlined_call_operand.vmem [shape: f32[32], index: 0, kind: input, shape index: {}]   ;;  %s23_s1 = inlined_call_operand.vmem [shape: f32[4,32], index: 1, kind: output, shape index: {}]  }
   0x1   :  { %v4_v0 = vld [vmem:[%s22_s0] ss:$0 sm:$0xff] }
   0x2   :  { %5 = vst [vmem:[%s23_s1] sm:$0xf] %v4_v0 }

// kernel: tile.24
= control target key start
LH: loop header
LB: loop body
LE: loop exit
PB: predicated region body
PF: predicated region fallthrough
CT: control target
= control target key end

     0   :  { %vm7_vm0 = vcmask 261120   ;;  %s37_s8 = smov 32   ;;  %s38_s9 = smov 64   ;;  %vm13_vm1 = vcmask 1048320   ;;  %vm19_vm2 = vcmask 785920   ;;  %vm25_vm3 = vcmask 523520   ;;  %s55_s0 = inlined_call_operand.vmem [shape: f32[4,32], index: 0, kind: input, shape index: {}]   ;;  %s56_s1 = inlined_call_operand.vmem [shape: f32[1,128], index: 1, kind: output, shape index: {}]  }
   0x1   :  { %v4_v0 = vld [vmem:[%s55_s0] sm:$0xf]  ;;  %s36_s0 = smov 96  }
   0x2   :  { %5 = vst [vmem:[#allocation1] sm:$0xf] %v4_v0 }
   0x9   :  { %v10_v1 = vld [vmem:[#allocation1 + $0x3] sm:$0x1]   ;;  %v22_v2 = vld [vmem:[#allocation1 + $0x1] sm:$0x1]   ;;  %v6_v3 = vld [vmem:[#allocation1] sm:$0x1]  }
   0xa   :  { %11 = vrot.lane.b32.xlu0 %v10_v1, %s36_s0  ;;  %23 = vrot.lane.b32.xlu1 %v22_v2, %s37_s8  ;;  %v16_v4 = vld [vmem:[#allocation1 + $0x2] sm:$0x1]   ;;  %8 = vst.msk [vmem:[#allocation0] sm:$0x1] %vm7_vm0, %v6_v3  }
   0xe   :  { %17 = vrot.lane.b32.xlu0 %v16_v4, %s38_s9 }
  0x7c   :  { %v12_v5 = vpop.permute.xlu0 %11   ;;  %v24_v6 = vpop.permute.xlu1 %23  }
  0x7d   :  { %14 = vst.msk [vmem:[#allocation0] sm:$0x1] %vm13_vm1, %v12_v5  }
  0x80   :  { %v18_v7 = vpop.permute.xlu0 %17  }
  0x81   :  { %20 = vst.msk [vmem:[#allocation0] sm:$0x1] %vm19_vm2, %v18_v7  }
  0x82   :  { %26 = vst.msk [vmem:[#allocation0] sm:$0x1] %vm25_vm3, %v24_v6  }
  0x89   :  { %v30_v8 = vld [vmem:[#allocation0] sm:$0x1] }
  0x8a   :  { %32 = vst [vmem:[%s56_s1] sm:$0x1] %v30_v8 }

// kernel: vqvae_forward.1
= control target key start
LH: loop header
LB: loop body
LE: loop exit
PB: predicated region body
PF: predicated region fallthrough
CT: control target
= control target key end

     0   :  { %vm852_vm0 = vcmask 64512   ;;  %v5915_v7 = vmov 0.0   ;;  %vm203_vm1 = vcmask 556032   ;;  %s7847_s0 = inlined_call_operand.vmem [shape: f32[32,324], index: 0, kind: input, shape index: {}]   ;;  %s7848_s1 = inlined_call_operand.vmem [shape: f32[32,288], index: 1, kind: input, shape index: {}]   ;;  %s7849_s2 = inlined_call_operand.vmem [shape: f32[324,288], index: 2, kind: input, shape index: {}]   ;;  %s7850_s3 = inlined_call_operand.vmem [shape: f32[1,288], index: 3, kind: input, shape index: {}]   ;;  %s7851_s4 = inlined_call_operand.vmem [shape: f32[288,8], index: 4, kind: input, shape index: {}]   ;;  %s7852_s5 = inlined_call_operand.vmem [shape: f32[1,8], index: 5, kind: input, shape index: {}]   ;;  %s7853_s6 = inlined_call_operand.vmem [shape: f32[128,8], index: 6, kind: input, shape index: {}]   ;;  %s7854_s7 = inlined_call_operand.vmem [shape: f32[1,128], index: 7, kind: input, shape index: {}]   ;;  %s7855_s8 = inlined_call_operand.vmem [shape: f32[9,8,128], index: 8, kind: input, shape index: {}]   ;;  %s7856_s9 = inlined_call_operand.vmem [shape: f32[1,128], index: 9, kind: input, shape index: {}]   ;;  %s7857_s10 = inlined_call_operand.vmem [shape: f32[16,32,128], index: 10, kind: input, shape index: {}]   ;;  %s7858_s11 = inlined_call_operand.vmem [shape: f32[1,128], index: 11, kind: input, shape index: {}]   ;;  %s7859_s12 = inlined_call_operand.vmem [shape: f32[32,9], index: 12, kind: input, shape index: {}]   ;;  %s7860_s13 = inlined_call_operand.vmem [shape: f32[32,128], index: 13, kind: output, shape index: {0}]   ;;  %s7861_s14 = inlined_call_operand.hbm [shape: f32[1,1], index: 14, kind: output, shape index: {1}]  }
   0x1   :  { %v64_v0 = vld [vmem:[%s7849_s2 + $0x8] sm:$0xff]  ;;  %v67_v1 = vld [vmem:[%s7849_s2 + $0x20] sm:$0xff]  ;;  %v66_v4 = vld [vmem:[%s7849_s2 + $0x18] sm:$0xff]  ;;  %1212 = vst.msk [vmem:[#allocation2] sm:$0xff] %vm852_vm0, %v5915_v7 }
   0x2   :  { %v63_v2 = vld [vmem:[%s7849_s2] sm:$0xff]  ;;  %v5368_v3 = vpack.c.bf16 %v67_v1, %v64_v0  ;;  %v70_v5 = vld [vmem:[%s7849_s2 + $0x38] sm:$0xff]  ;;  %v73_v6 = vld [vmem:[%s7849_s2 + $0x50] sm:$0xff]  ;;  %1213 = vst.msk [vmem:[#allocation2 + $0x28] sm:$0xff] %vm852_vm0, %v5915_v7 }
   0x3   :  { %v5370_v8 = vpack.c.bf16 %v66_v4, %v63_v2  ;;  %v5372_v9 = vpack.c.bf16 %v73_v6, %v70_v5  ;;  %v69_v10 = vld [vmem:[%s7849_s2 + $0x30] sm:$0xff]  ;;  %v72_v11 = vld [vmem:[%s7849_s2 + $0x48] sm:$0xff]  ;;  %v79_v13 = vld [vmem:[%s7849_s2 + $0x80] sm:$0xff] }
   0x4   :  { %v76_v12 = vld [vmem:[%s7849_s2 + $0x68] sm:$0xff]  ;;  %5369 = vmatprep.subr.bf16.mxu0 %v5368_v3  ;;  %v5374_v14 = vpack.c.bf16 %v72_v11, %v69_v10  ;;  %v75_v16 = vld [vmem:[%s7849_s2 + $0x60] sm:$0xff]  ;;  %v78_v17 = vld [vmem:[%s7849_s2 + $0x78] sm:$0xff] }
   0x5   :  { %5371 = vmatpush1.bf16.msra.mxu0 %v5370_v8  ;;  %v5376_v15 = vpack.c.bf16 %v79_v13, %v76_v12  ;;  %v82_v18 = vld [vmem:[%s7849_s2 + $0x98] sm:$0xff]  ;;  %v85_v19 = vld [vmem:[%s7849_s2 + $0xb0] sm:$0xff]  ;;  %v5378_v20 = vpack.c.bf16 %v78_v17, %v75_v16  ;;  %v84_v23 = vld [vmem:[%s7849_s2 + $0xa8] sm:$0xff] }
   0x6   :  { %5373 = vmatprep.subr.bf16.mxu0 %v5372_v9  ;;  %v5380_v21 = vpack.c.bf16 %v85_v19, %v82_v18  ;;  %v81_v22 = vld [vmem:[%s7849_s2 + $0x90] sm:$0xff]  ;;  %v88_v24 = vld [vmem:[%s7849_s2 + $0xc8] sm:$0xff]  ;;  %v91_v25 = vld [vmem:[%s7849_s2 + $0xe0] sm:$0xff] }
   0x7   :  { %v5382_v26 = vpack.c.bf16 %v84_v23, %v81_v22  ;;  %v5384_v27 = vpack.c.bf16 %v91_v25, %v88_v24  ;;  %v87_v28 = vld [vmem:[%s7849_s2 + $0xc0] sm:$0xff]  ;;  %v90_v29 = vld [vmem:[%s7849_s2 + $0xd8] sm:$0xff]  ;;  %v97_v31 = vld [vmem:[%s7849_s2 + $0x110] sm:$0xff] }
   0x8   :  { %v94_v30 = vld [vmem:[%s7849_s2 + $0xf8] sm:$0xff]  ;;  %v5386_v32 = vpack.c.bf16 %v90_v29, %v87_v28  ;;  %v93_v34 = vld [vmem:[%s7849_s2 + $0xf0] sm:$0xff]  ;;  %v96_v35 = vld [vmem:[%s7849_s2 + $0x108] sm:$0xff] }
   0x9   :  { %5375 = vmatpush1.bf16.msra.mxu0 %v5374_v14  ;;  %v5388_v33 = vpack.c.bf16 %v97_v31, %v94_v30  ;;  %v100_v36 = vld [vmem:[%s7849_s2 + $0x128] sm:$0xff]  ;;  %v103_v37 = vld [vmem:[%s7849_s2 + $0x140] sm:$0xff]  ;;  %v5390_v38 = vpack.c.bf16 %v96_v35, %v93_v34  ;;  %v102_v41 = vld [vmem:[%s7849_s2 + $0x138] sm:$0xff] }
   0xa   :  { %5377 = vmatprep.subr.bf16.mxu0 %v5376_v15  ;;  %v5392_v39 = vpack.c.bf16 %v103_v37, %v100_v36  ;;  %v99_v40 = vld [vmem:[%s7849_s2 + $0x120] sm:$0xff]  ;;  %v6096_v42 = vld [vmem:[%s7847_s0 + $0x8] sm:$0xff]  ;;  %v106_v43 = vld [vmem:[%s7849_s2 + $0x158] sm:$0xff] }
   0xb   :  { %v109_v44 = vld [vmem:[%s7849_s2 + $0x170] sm:$0xff]  ;;  %290 = vmatprep.mubr.f32.mxu0 %v6096_v42  ;;  %v5394_v45 = vpack.c.bf16 %v102_v41, %v99_v40  ;;  %v108_v48 = vld [vmem:[%s7849_s2 + $0x168] sm:$0xff]  ;;  %v115_v50 = vld [vmem:[%s7849_s2 + $0x1a0] sm:$0xff] }
   0xc   :  { %v5396_v46 = vpack.c.bf16 %v109_v44, %v106_v43  ;;  %v105_v47 = vld [vmem:[%s7849_s2 + $0x150] sm:$0xff]  ;;  %v112_v49 = vld [vmem:[%s7849_s2 + $0x188] sm:$0xff]  ;;  %v111_v53 = vld [vmem:[%s7849_s2 + $0x180] sm:$0xff] }
   0xd   :  { %5379 = vmatpush1.bf16.msra.mxu0 %v5378_v20  ;;  %v5398_v51 = vpack.c.bf16 %v108_v48, %v105_v47  ;;  %v5400_v52 = vpack.c.bf16 %v115_v50, %v112_v49  ;;  %v114_v54 = vld [vmem:[%s7849_s2 + $0x198] sm:$0xff]  ;;  %v121_v56 = vld [vmem:[%s7849_s2 + $0x1d0] sm:$0xff]  ;;  %v120_v61 = vld [vmem:[%s7849_s2 + $0x1c8] sm:$0xff] }
   0xe   :  { %5381 = vmatprep.subr.bf16.mxu0 %v5380_v21  ;;  %v118_v55 = vld [vmem:[%s7849_s2 + $0x1b8] sm:$0xff]  ;;  %v6132_v57 = vld [vmem:[%s7847_s0 + $0x10] sm:$0xff]  ;;  %v5402_v58 = vpack.c.bf16 %v114_v54, %v111_v53  ;;  %v124_v62 = vld [vmem:[%s7849_s2 + $0x1e8] sm:$0xff] }
   0xf   :  { %4976 = vmatprep.mubr.msk.f32.mxu1 %vm203_vm1, %v6132_v57  ;;  %v5404_v59 = vpack.c.bf16 %v121_v56, %v118_v55  ;;  %v117_v60 = vld [vmem:[%s7849_s2 + $0x1b0] sm:$0xff]  ;;  %v127_v63 = vld [vmem:[%s7849_s2 + $0x200] sm:$0xff]  ;;  %v126_v3 = vld [vmem:[%s7849_s2 + $0x1f8] sm:$0xff] }
  0x10   :  { %v5406_v0 = vpack.c.bf16 %v120_v61, %v117_v60  ;;  %v5408_v1 = vpack.c.bf16 %v127_v63, %v124_v62  ;;  %v123_v2 = vld [vmem:[%s7849_s2 + $0x1e0] sm:$0xff]  ;;  %v130_v4 = vld [vmem:[%s7849_s2 + $0x218] sm:$0xff]  ;;  %v133_v5 = vld [vmem:[%s7849_s2 + $0x230] sm:$0xff] }
  0x11   :  { %5383 = vmatpush1.bf16.msra.mxu0 %v5382_v26  ;;  %v161_v6 = vld [vmem:[%s7849_s2 + $0x310] sm:$0xff]  ;;  %v164_v8 = vld [vmem:[%s7849_s2 + $0x328] sm:$0xff]  ;;  %v5410_v10 = vpack.c.bf16 %v126_v3, %v123_v2  ;;  %v167_v11 = vld [vmem:[%s7849_s2 + $0x340] sm:$0xff]  ;;  %v5412_v13 = vpack.c.bf16 %v133_v5, %v130_v4 }
  0x12   :  { %5385 = vmatprep.subr.bf16.mxu0 %v5384_v27  ;;  %v5480_v9 = vpack.c.bf16 %v164_v8, %v161_v6  ;;  %v170_v12 = vld [vmem:[%s7849_s2 + $0x358] sm:$0xff]  ;;  %v129_v14 = vld [vmem:[%s7849_s2 + $0x210] sm:$0xff]  ;;  %v132_v15 = vld [vmem:[%s7849_s2 + $0x228] sm:$0xff] }
  0x13   :  { %v136_v16 = vld [vmem:[%s7849_s2 + $0x248] sm:$0xff]  ;;  %v5484_v17 = vpack.c.bf16 %v170_v12, %v167_v11  ;;  %v139_v18 = vld [vmem:[%s7849_s2 + $0x260] sm:$0xff]  ;;  %v173_v19 = vld [vmem:[%s7849_s2 + $0x370] sm:$0xff]  ;;  %v5414_v22 = vpack.c.bf16 %v132_v15, %v129_v14 }
  0x14   :  { %5481 = vmatprep.subr.bf16.mxu1 %v5480_v9  ;;  %v176_v20 = vld [vmem:[%s7849_s2 + $0x388] sm:$0xff]  ;;  %v179_v23 = vld [vmem:[%s7849_s2 + $0x3a0] sm:$0xff]  ;;  %v182_v24 = vld [vmem:[%s7849_s2 + $0x3b8] sm:$0xff]  ;;  %v5416_v25 = vpack.c.bf16 %v139_v18, %v136_v16 }
  0x15   :  { %5387 = vmatpush1.bf16.msra.mxu0 %v5386_v32  ;;  %5483 = vmatpush3.bf16.msra.mxu1 %v5480_v9  ;;  %v5488_v21 = vpack.c.bf16 %v176_v20, %v173_v19  ;;  %v135_v26 = vld [vmem:[%s7849_s2 + $0x240] sm:$0xff]  ;;  %v138_v27 = vld [vmem:[%s7849_s2 + $0x258] sm:$0xff]  ;;  %v145_v29 = vld [vmem:[%s7849_s2 + $0x290] sm:$0xff]  ;;  %v5492_v30 = vpack.c.bf16 %v182_v24, %v179_v23 }
  0x16   :  { %5389 = vmatprep.subr.bf16.mxu0 %v5388_v33  ;;  %5485 = vmatprep.subr.bf16.mxu1 %v5484_v17  ;;  %v142_v28 = vld [vmem:[%s7849_s2 + $0x278] sm:$0xff]  ;;  %v5418_v31 = vpack.c.bf16 %v138_v27, %v135_v26  ;;  %v141_v33 = vld [vmem:[%s7849_s2 + $0x270] sm:$0xff]  ;;  %v144_v34 = vld [vmem:[%s7849_s2 + $0x288] sm:$0xff] }
  0x17   :  { %v5420_v32 = vpack.c.bf16 %v145_v29, %v142_v28  ;;  %v148_v35 = vld [vmem:[%s7849_s2 + $0x2a8] sm:$0xff]  ;;  %v151_v36 = vld [vmem:[%s7849_s2 + $0x2c0] sm:$0xff]  ;;  %v150_v44 = vld [vmem:[%s7849_s2 + $0x2b8] sm:$0xff] }
  0x18   :  { %v147_v37 = vld [vmem:[%s7849_s2 + $0x2a0] sm:$0xff]  ;;  %v627_v41 = vld [vmem:[%s7851_s4 + $0x88] sm:$0xff]  ;;  %v5424_v43 = vpack.c.bf16 %v151_v36, %v148_v35 }
  0x19   :  { %5391 = vmatpush1.bf16.msra.mxu0 %v5390_v38  ;;  %5487 = vmatpush3.bf16.msra.mxu1 %v5484_v17  ;;  %v5422_v38 = vpack.c.bf16 %v144_v34, %v141_v33  ;;  %v626_v40 = vld [vmem:[%s7851_s4 + $0x80] sm:$0xff] }
  0x1a   :  { %5393 = vmatprep.subr.bf16.mxu0 %v5392_v39  ;;  %5489 = vmatprep.subr.bf16.mxu1 %v5488_v21  ;;  %v185_v39 = vld [vmem:[%s7849_s2 + $0x3d0] sm:$0xf] }
  0x1d   :  { %5395 = vmatpush1.bf16.msra.mxu0 %v5394_v45  ;;  %5491 = vmatpush3.bf16.msra.mxu1 %v5488_v21  ;;  %v154_v45 = vld [vmem:[%s7849_s2 + $0x2d8] sm:$0xff] }
  0x1e   :  { %5397 = vmatprep.subr.bf16.mxu0 %v5396_v46  ;;  %5493 = vmatprep.subr.bf16.mxu1 %v5492_v30 }
  0x21   :  { %5399 = vmatpush1.bf16.msra.mxu0 %v5398_v51 }
  0x22   :  { %5401 = vmatprep.subr.bf16.mxu0 %v5400_v52 }
  0x25   :  { %5403 = vmatpush1.bf16.msra.mxu0 %v5402_v58 }
  0x26   :  { %5405 = vmatprep.subr.bf16.mxu0 %v5404_v59 }
  0x29   :  { %5407 = vmatpush1.bf16.msra.mxu0 %v5406_v0 }
  0x2a   :  { %5409 = vmatprep.subr.bf16.mxu0 %v5408_v1 }
  0x2d   :  { %5411 = vmatpush1.bf16.msra.mxu0 %v5410_v10 }
  0x2e   :  { %5413 = vmatprep.subr.bf16.mxu0 %v5412_v13 }
  0x31   :  { %5415 = vmatpush1.bf16.msra.mxu0 %v5414_v22 }
  0x32   :  { %5417 = vmatprep.subr.bf16.mxu0 %v5416_v25 }
  0x35   :  { %5419 = vmatpush1.bf16.msra.mxu0 %v5418_v31 }
  0x36   :  { %5421 = vmatprep.subr.bf16.mxu0 %v5420_v32 }
  0x37   :  { %20 = vsyncpa [#allocation5], 0  ;;  %v157_v46 = vld [vmem:[%s7849_s2 + $0x2f0] sm:$0xff]  ;;  %vm216_vm2 = vcmask 1043456   ;;  %5495 = vmatpush3.bf16.msra.mxu1 %v5492_v30  ;;  %v610_v47 = vld [vmem:[%s7851_s4] sm:$0xff]  ;;  %v5496_v49 = vpack.c.bf16 %v627_v41, %v626_v40  ;;  %v5426_v52 = vpack.c.bf16 %v150_v44, %v147_v37  ;;  %vm653_vm4 = vcmask 261120  }
  0x38   :  { %v611_v48 = vld [vmem:[%s7851_s4 + $0x8] sm:$0xff]  ;;  %4974 = vmatprep.subr.msk.mxu1 %vm216_vm2, %v185_v39  ;;  %v628_v50 = vld [vmem:[%s7851_s4 + $0x90] sm:$0xff]  ;;  %v629_v51 = vld [vmem:[%s7851_s4 + $0x98] sm:$0xff]  ;;  %v5428_v54 = vpack.c.bf16 %v157_v46, %v154_v45  ;;  %s5927_s25 = smov 64   ;;  %s5929_s26 = smov [#allocation4]  }
  0x39   :  { %5423 = vmatpush1.bf16.msra.mxu0 %v5422_v38  ;;  %v153_v53 = vld [vmem:[%s7849_s2 + $0x2d0] sm:$0xff]  ;;  %v156_v55 = vld [vmem:[%s7849_s2 + $0x2e8] sm:$0xff]  ;;  %v163_v58 = vld [vmem:[%s7849_s2 + $0x320] sm:$0xff]  ;;  %v5498_v59 = vpack.c.bf16 %v611_v48, %v610_v47  ;;  %v5500_v61 = vpack.c.bf16 %v629_v51, %v628_v50 }
  0x3a   :  { %5425 = vmatprep.subr.bf16.mxu0 %v5424_v43  ;;  %v160_v56 = vld [vmem:[%s7849_s2 + $0x308] sm:$0xff]  ;;  %v612_v62 = vld [vmem:[%s7851_s4 + $0x10] sm:$0xff]  ;;  %v613_v63 = vld [vmem:[%s7851_s4 + $0x18] sm:$0xff]  ;;  %v5430_v3 = vpack.c.bf16 %v156_v55, %v153_v53 }
  0x3b   :  { %v6269_v60 = vld [vmem:[%s7847_s0 + $0x28] sm:$0xff]  ;;  %4975 = vmatpush3.msk.msra.mxu1 %vm216_vm2, %v185_v39  ;;  %v6281_v0 = vld [vmem:[%s7847_s0 + $0x40] sm:$0xff]  ;;  %v5432_v5 = vpack.c.bf16 %v163_v58, %v160_v56  ;;  %v162_v6 = vld [vmem:[%s7849_s2 + $0x318] sm:$0xff]  ;;  %v5502_v10 = vpack.c.bf16 %v613_v63, %v612_v62 }
  0x3c   :  { %4977 = vmatmul.mubr.msk.f32.vlgmr.msra.gmra.mrb[0].mxu1 %vm203_vm1, %v6269_v60  ;;  %5497 = vmatprep.subr.bf16.mxu1 %v5496_v49  ;;  %v630_v1 = vld [vmem:[%s7851_s4 + $0xa0] sm:$0xff]  ;;  %v631_v2 = vld [vmem:[%s7851_s4 + $0xa8] sm:$0xff]  ;;  %v166_v8 = vld [vmem:[%s7849_s2 + $0x338] sm:$0xff] }
  0x3d   :  { %5427 = vmatpush1.bf16.msra.mxu0 %v5426_v52  ;;  %v159_v4 = vld [vmem:[%s7849_s2 + $0x300] sm:$0xff]  ;;  %4979 = vmatprep.mubr.msk.f32.mxu1 %vm203_vm1, %v6281_v0  ;;  %v169_v9 = vld [vmem:[%s7849_s2 + $0x350] sm:$0xff]  ;;  %v6308_v11 = vld [vmem:[%s7847_s0 + $0x58] sm:$0xff]  ;;  %v5504_v12 = vpack.c.bf16 %v631_v2, %v630_v1 }
  0x3e   :  { %5429 = vmatprep.subr.bf16.mxu0 %v5428_v54  ;;  %5499 = vmatpush3.bf16.msra.mxu1 %v5498_v59  ;;  %v614_v13 = vld [vmem:[%s7851_s4 + $0x20] sm:$0xff]  ;;  %v615_v14 = vld [vmem:[%s7851_s4 + $0x28] sm:$0xff]  ;;  %v632_v15 = vld [vmem:[%s7851_s4 + $0xb0] sm:$0xff]  ;;  %v5434_v18 = vpack.c.bf16 %v162_v6, %v159_v4  ;;  %v5436_v20 = vpack.c.bf16 %v169_v9, %v166_v8 }
  0x3f   :  { %5501 = vmatprep.subr.bf16.mxu1 %v5500_v61  ;;  %v633_v16 = vld [vmem:[%s7851_s4 + $0xb8] sm:$0xff]  ;;  %v6327_v17 = vld [vmem:[%s7847_s0] sm:$0xff]  ;;  %v165_v21 = vld [vmem:[%s7849_s2 + $0x330] sm:$0xff]  ;;  %v5506_v24 = vpack.c.bf16 %v615_v14, %v614_v13 }
  0x40   :  { %4980 = vmatmul.mubr.msk.f32.gmra.mrb[2].mxu1 %vm203_vm1, %v6308_v11  ;;  %v6332_v19 = vld [vmem:[%s7847_s0 + $0x20] sm:$0xff]  ;;  %v168_v22 = vld [vmem:[%s7849_s2 + $0x348] sm:$0xff]  ;;  %v5508_v26 = vpack.c.bf16 %v633_v16, %v632_v15  ;;  %v616_v27 = vld [vmem:[%s7851_s4 + $0x30] sm:$0xff] }
  0x41   :  { %5431 = vmatpush1.bf16.msra.mxu0 %v5430_v3  ;;  %v172_v23 = vld [vmem:[%s7849_s2 + $0x368] sm:$0xff]  ;;  %v175_v25 = vld [vmem:[%s7849_s2 + $0x380] sm:$0xff]  ;;  %v617_v28 = vld [vmem:[%s7851_s4 + $0x38] sm:$0xff]  ;;  %v5438_v31 = vpack.c.bf16 %v168_v22, %v165_v21 }
  0x42   :  { %5433 = vmatprep.subr.bf16.mxu0 %v5432_v5  ;;  %5503 = vmatpush3.bf16.msra.mxu1 %v5502_v10  ;;  %v634_v29 = vld [vmem:[%s7851_s4 + $0xc0] sm:$0xff]  ;;  %v635_v30 = vld [vmem:[%s7851_s4 + $0xc8] sm:$0xff]  ;;  %v6363_v32 = vld [vmem:[%s7847_s0 + $0x18] sm:$0xff]  ;;  %v5440_v34 = vpack.c.bf16 %v175_v25, %v172_v23  ;;  %v5510_v38 = vpack.c.bf16 %v617_v28, %v616_v27 }
  0x43   :  { %5505 = vmatprep.subr.bf16.mxu1 %v5504_v12  ;;  %v6368_v33 = vld [vmem:[%s7847_s0 + $0x38] sm:$0xff]  ;;  %v171_v35 = vld [vmem:[%s7849_s2 + $0x360] sm:$0xff]  ;;  %v181_v39 = vld [vmem:[%s7849_s2 + $0x3b0] sm:$0xff]  ;;  %v5512_v40 = vpack.c.bf16 %v635_v30, %v634_v29 }
  0x44   :  { %291 = vmatmul.mubr.f32.vlgmr.msra.gmra.mrb[0].mxu0 %v6327_v17  ;;  %v174_v36 = vld [vmem:[%s7849_s2 + $0x378] sm:$0xff]  ;;  %v618_v41 = vld [vmem:[%s7851_s4 + $0x40] sm:$0xff]  ;;  %v619_v43 = vld [vmem:[%s7851_s4 + $0x48] sm:$0xff] }
  0x45   :  { %5435 = vmatpush1.bf16.msra.mxu0 %v5434_v18  ;;  %296 = vmatprep.mubr.f32.mxu0 %v6332_v19  ;;  %v178_v37 = vld [vmem:[%s7849_s2 + $0x398] sm:$0xff]  ;;  %v636_v44 = vld [vmem:[%s7851_s4 + $0xd0] sm:$0xff]  ;;  %v5442_v46 = vpack.c.bf16 %v174_v36, %v171_v35  ;;  %v180_v51 = vld [vmem:[%s7849_s2 + $0x3a8] sm:$0xff]  ;;  %v5514_v52 = vpack.c.bf16 %v619_v43, %v618_v41 }
  0x46   :  { %5437 = vmatprep.subr.bf16.mxu0 %v5436_v20  ;;  %5507 = vmatpush3.bf16.msra.mxu1 %v5506_v24  ;;  %v637_v45 = vld [vmem:[%s7851_s4 + $0xd8] sm:$0xff]  ;;  %v6399_v47 = vld [vmem:[%s7847_s0 + $0x30] sm:$0xff]  ;;  %v5444_v48 = vpack.c.bf16 %v181_v39, %v178_v37  ;;  %v6423_v58 = vld [vmem:[%s7847_s0 + $0x48] sm:$0xff] }
  0x47   :  { %5509 = vmatprep.subr.bf16.mxu1 %v5508_v26  ;;  %v6404_v49 = vld [vmem:[%s7847_s0 + $0x50] sm:$0xff]  ;;  %v5516_v53 = vpack.c.bf16 %v637_v45, %v636_v44  ;;  %v621_v55 = vld [vmem:[%s7851_s4 + $0x58] sm:$0xff]  ;;  %v184_v61 = vld [vmem:[%s7849_s2 + $0x3c8] sm:$0xf] }
  0x48   :  { %297 = vmatmul.mubr.f32.gmra.mrb[2].mxu0 %v6363_v32  ;;  %v177_v50 = vld [vmem:[%s7849_s2 + $0x390] sm:$0xff]  ;;  %v116_v63 = vld [vmem:[%s7849_s2 + $0x1a8] sm:$0xff]  ;;  %v119_v3 = vld [vmem:[%s7849_s2 + $0x1c0] sm:$0xff] }
  0x49   :  { %5439 = vmatpush1.bf16.msra.mxu0 %v5438_v31  ;;  %302 = vmatprep.mubr.f32.mxu0 %v6368_v33  ;;  %v620_v54 = vld [vmem:[%s7851_s4 + $0x50] sm:$0xff]  ;;  %v5446_v56 = vpack.c.bf16 %v180_v51, %v177_v50  ;;  %v68_v2 = vld [vmem:[%s7849_s2 + $0x28] sm:$0xff]  ;;  %v122_v4 = vld [vmem:[%s7849_s2 + $0x1d8] sm:$0xff] }
  0x4a   :  { %5441 = vmatprep.subr.bf16.mxu0 %v5440_v34  ;;  %5511 = vmatpush3.bf16.msra.mxu1 %v5510_v38  ;;  %v5518_v59 = vpack.c.bf16 %v621_v55, %v620_v54  ;;  %v113_v62 = vld [vmem:[%s7849_s2 + $0x190] sm:$0xff]  ;;  %v183_v5 = vld [vmem:[%s7849_s2 + $0x3c0] sm:$0xf]  ;;  %v5452_v9 = vpack.c.bf16 %v122_v4, %v119_v3  ;;  %v74_v12 = vld [vmem:[%s7849_s2 + $0x58] sm:$0xff] }
  0x4b   :  { %5513 = vmatprep.subr.bf16.mxu1 %v5512_v40  ;;  %v65_v1 = vld [vmem:[%s7849_s2 + $0x10] sm:$0xff]  ;;  %v5448_v6 = vpack.c.bf16 %v116_v63, %v113_v62  ;;  %v71_v10 = vld [vmem:[%s7849_s2 + $0x40] sm:$0xff]  ;;  %v128_v14 = vld [vmem:[%s7849_s2 + $0x208] sm:$0xff] }
  0x4c   :  { %303 = vmatmul.mubr.f32.gmra.mrb[4].mxu0 %v6399_v47  ;;  %v5450_v8 = vpack.c.bf16 %v68_v2, %v65_v1  ;;  %v125_v13 = vld [vmem:[%s7849_s2 + $0x1f0] sm:$0xff]  ;;  %v5454_v15 = vpack.c.bf16 %v74_v12, %v71_v10  ;;  %v80_v20 = vld [vmem:[%s7849_s2 + $0x88] sm:$0xff]  ;;  %v131_v21 = vld [vmem:[%s7849_s2 + $0x220] sm:$0xff]  ;;  %v188_v12 = vlaneseq }
  0x4d   :  { %5443 = vmatpush1.bf16.msra.mxu0 %v5442_v46  ;;  %308 = vmatprep.mubr.f32.mxu0 %v6404_v49  ;;  %v5456_v16 = vpack.c.bf16 %v128_v14, %v125_v13  ;;  %v77_v18 = vld [vmem:[%s7849_s2 + $0x70] sm:$0xff]  ;;  %v83_v24 = vld [vmem:[%s7849_s2 + $0xa0] sm:$0xff]  ;;  %v86_v25 = vld [vmem:[%s7849_s2 + $0xb8] sm:$0xff] }
  0x4e   :  { %5445 = vmatprep.subr.bf16.mxu0 %v5444_v48  ;;  %5515 = vmatpush3.bf16.msra.mxu1 %v5514_v52  ;;  %v5458_v22 = vpack.c.bf16 %v80_v20, %v77_v18  ;;  %v137_v26 = vld [vmem:[%s7849_s2 + $0x250] sm:$0xff]  ;;  %v5462_v27 = vpack.c.bf16 %v86_v25, %v83_v24  ;;  %v92_v30 = vld [vmem:[%s7849_s2 + $0xe8] sm:$0xff]  ;;  %v143_v31 = vld [vmem:[%s7849_s2 + $0x280] sm:$0xff]  ;;  %v6613_v13 = vshrl.u32 %v188_v12, 7 }
  0x4f   :  { %5517 = vmatprep.subr.bf16.mxu1 %v5516_v53  ;;  %v89_v29 = vld [vmem:[%s7849_s2 + $0xd0] sm:$0xff]  ;;  %v95_v35 = vld [vmem:[%s7849_s2 + $0x100] sm:$0xff]  ;;  %v98_v36 = vld [vmem:[%s7849_s2 + $0x118] sm:$0xff] }
  0x50   :  { %309 = vmatmul.mubr.f32.gmra.mrb[6].mxu0 %v6423_v58  ;;  %v149_v37 = vld [vmem:[%s7849_s2 + $0x2b0] sm:$0xff]  ;;  %v104_v40 = vld [vmem:[%s7849_s2 + $0x148] sm:$0xff]  ;;  %v155_v41 = vld [vmem:[%s7849_s2 + $0x2e0] sm:$0xff]  ;;  %v190_v14 = vsub.s32 0, %v6613_v13 }
  0x51   :  { %5447 = vmatpush1.bf16.msra.mxu0 %v5446_v56  ;;  %379 = vmatprep.mubr.f32.mxu0 %v5915_v7  ;;  %v101_v39 = vld [vmem:[%s7849_s2 + $0x130] sm:$0xff]  ;;  %v158_v43 = vld [vmem:[%s7849_s2 + $0x2f8] sm:$0xff]  ;;  %v107_v46 = vld [vmem:[%s7849_s2 + $0x160] sm:$0xff] }
  0x52   :  { %4421 = vmatprep.subr.msk.mxu0 %vm216_vm2, %v184_v61  ;;  %5519 = vmatpush3.bf16.msra.mxu1 %v5518_v59  ;;  %v5474_v44 = vpack.c.bf16 %v104_v40, %v101_v39  ;;  %v5476_v45 = vpack.c.bf16 %v158_v43, %v155_v41  ;;  %v110_v48 = vld [vmem:[%s7849_s2 + $0x178] sm:$0xff]  ;;  %v638_v51 = vld [vmem:[%s7851_s4 + $0xe0] sm:$0xff]  ;;  %v624_v54 = vld [vmem:[%s7851_s4 + $0x70] sm:$0xff] }
  0x53   :  { %v5478_v50 = vpack.c.bf16 %v110_v48, %v107_v46  ;;  %v625_v55 = vld [vmem:[%s7851_s4 + $0x78] sm:$0xff]  ;;  %v643_v59 = vld [vmem:[%s7851_s4 + $0x108] sm:$0xff]  ;;  %v644_v62 = vld [vmem:[%s7851_s4 + $0x110] sm:$0xff] }
  0x54   :  { %v5526_v56 = vpack.c.bf16 %v625_v55, %v624_v54  ;;  %v645_v63 = vld [vmem:[%s7851_s4 + $0x118] sm:$0xff]  ;;  %v836_v2 = vld [vmem:[%s7853_s6] sm:$0xff]  ;;  %v837_v3 = vld [vmem:[%s7853_s6 + $0x8] sm:$0xff] }
  0x55   :  { %4422 = vmatpush1.msk.msra.mxu0 %vm216_vm2, %v183_v5  ;;  %v5532_v1 = vpack.c.bf16 %v645_v63, %v644_v62  ;;  %vm6594_vm3 = vmpackc.low %vm852_vm0, %vm852_vm0  ;;  %v6598_v5 = vpack.c.bf16 %v837_v3, %v836_v2  ;;  %v587_v25 = vld [vmem:[%s7848_s1 + $0x8] sm:$0xff]  ;;  %v593_v46 = vld [vmem:[%s7848_s1 + $0x38] sm:$0xff]  ;;  %v198_v62 = vsub.s32 2, %v6613_v13 }
  0x56   :  { %4423 = vmatmul.mubr.msk.f32.vlgmr.msra.gmra.mrb[0].mxu0 %vm203_vm1, %v6132_v57  ;;  %5449 = vmatprep.subr.bf16.mxu0 %v5448_v6  ;;  %v134_v57 = vld [vmem:[%s7849_s2 + $0x238] sm:$0xff]  ;;  %v592_v48 = vld [vmem:[%s7848_s1 + $0x30] sm:$0xff] }
  0x57   :  { %5451 = vmatpush3.bf16.msra.mxu0 %v5450_v8  ;;  %385 = vmatprep.mubr.f32.mxu0 %v5915_v7  ;;  %v5460_v23 = vpack.c.bf16 %v134_v57, %v131_v21  ;;  %v596_v54 = vld [vmem:[%s7848_s1 + $0x50] sm:$0xff] }
  0x58   :  { %5453 = vmatprep.subr.bf16.mxu0 %v5452_v9 }
  0x5a   :  { %4424 = vmatmul.mubr.msk.f32.gmra.mrb[2].mxu0 %vm203_vm1, %v6269_v60  ;;  %v140_v60 = vld [vmem:[%s7849_s2 + $0x268] sm:$0xff] }
  0x5b   :  { %5455 = vmatpush3.bf16.msra.mxu0 %v5454_v15  ;;  %391 = vmatprep.mubr.f32.mxu0 %v5915_v7  ;;  %v5464_v28 = vpack.c.bf16 %v140_v60, %v137_v26  ;;  %v6619_v15 = vld [vmem:[%s7850_s3] sm:$0x7] }
  0x5c   :  { %5457 = vmatprep.subr.bf16.mxu0 %v5456_v16  ;;  %v194_v16 = vsub.s32 1, %v6613_v13  ;;  %v191_v18 = vrot.slane %v6619_v15, %v190_v14  ;;  %v586_v26 = vld [vmem:[%s7848_s1] sm:$0xff] }
  0x5e   :  { %4425 = vmatmul.mubr.msk.f32.gmra.mrb[4].mxu0 %vm203_vm1, %v6281_v0  ;;  %v146_v0 = vld [vmem:[%s7849_s2 + $0x298] sm:$0xff]  ;;  %v195_v20 = vrot.slane %v6619_v15, %v194_v16 }
  0x5f   :  { %5459 = vmatpush3.bf16.msra.mxu0 %v5458_v22  ;;  %397 = vmatprep.mubr.f32.mxu0 %v5915_v7  ;;  %v5466_v7 = vpack.c.bf16 %v92_v30, %v89_v29  ;;  %v5468_v34 = vpack.c.bf16 %v146_v0, %v143_v31  ;;  %v839_v29 = vld [vmem:[%s7853_s6 + $0x18] sm:$0xff] }
  0x60   :  { %5461 = vmatprep.subr.bf16.mxu0 %v5460_v23 }
  0x62   :  { %4426 = vmatmul.mubr.msk.f32.gmra.mrb[6].mxu0 %vm203_vm1, %v6308_v11  ;;  %v152_v11 = vld [vmem:[%s7849_s2 + $0x2c8] sm:$0xff] }
  0x63   :  { %5463 = vmatpush3.bf16.msra.mxu0 %v5462_v27  ;;  %468 = vmatprep.mubr.f32.mxu0 %v6096_v42  ;;  %v5470_v42 = vpack.c.bf16 %v98_v36, %v95_v35  ;;  %v5472_v38 = vpack.c.bf16 %v152_v11, %v149_v37  ;;  %v590_v36 = vld [vmem:[%s7848_s1 + $0x20] sm:$0xff]  ;;  %v589_v11 = vld [vmem:[%s7848_s1 + $0x18] sm:$0xff] }
  0x64   :  { %5465 = vmatprep.subr.bf16.mxu0 %v5464_v28  ;;  %v838_v28 = vld [vmem:[%s7853_s6 + $0x10] sm:$0xff] }
  0x65   :  { %v6639_v37 = vpack.c.bf16 %v839_v29, %v838_v28 }
  0x67   :  { %5467 = vmatpush3.bf16.msra.mxu0 %v5466_v7 }
  0x68   :  { %5469 = vmatprep.subr.bf16.mxu0 %v5468_v34 }
  0x6b   :  { %5471 = vmatpush3.bf16.msra.mxu0 %v5470_v42 }
  0x6c   :  { %5473 = vmatprep.subr.bf16.mxu0 %v5472_v38 }
  0x6f   :  { %5475 = vmatpush3.bf16.msra.mxu0 %v5474_v44 }
  0x70   :  { %5477 = vmatprep.subr.bf16.mxu0 %v5476_v45 }
  0x73   :  { %5479 = vmatpush3.bf16.msra.mxu0 %v5478_v50 }
  0x76   :  { %469 = vmatmul.mubr.f32.vlgmr.msra.gmra.mrb[8].mxu0 %v6327_v17  ;;  %v639_v17 = vld [vmem:[%s7851_s4 + $0xe8] sm:$0xff] }
  0x77   :  { %473 = vmatprep.mubr.f32.mxu0 %v6332_v19  ;;  %v5520_v52 = vpack.c.bf16 %v639_v17, %v638_v51  ;;  %v622_v19 = vld [vmem:[%s7851_s4 + $0x60] sm:$0xff] }
  0x78   :  { %v840_v17 = vld [vmem:[%s7853_s6 + $0x20] sm:$0xff] }
  0x79   :  { %5521 = vmatprep.subr.bf16.mxu1 %v5520_v52  ;;  %v841_v52 = vld [vmem:[%s7853_s6 + $0x28] sm:$0xff] }
  0x7a   :  { %474 = vmatmul.mubr.f32.gmra.mrb[10].mxu0 %v6363_v32  ;;  %v623_v32 = vld [vmem:[%s7851_s4 + $0x68] sm:$0xff]  ;;  %v5548_v55 = vpack.c.bf16 %v841_v52, %v840_v17 }
  0x7b   :  { %478 = vmatprep.mubr.f32.mxu0 %v6368_v33  ;;  %v5522_v33 = vpack.c.bf16 %v623_v32, %v622_v19 }
  0x7d   :  { %5523 = vmatpush3.bf16.msra.mxu1 %v5522_v33 }
  0x7e   :  { %479 = vmatmul.mubr.f32.gmra.mrb[12].mxu0 %v6399_v47  ;;  %v640_v47 = vld [vmem:[%s7851_s4 + $0xf0] sm:$0xff] }
  0x7f   :  { %483 = vmatprep.mubr.f32.mxu0 %v6404_v49  ;;  %v641_v49 = vld [vmem:[%s7851_s4 + $0xf8] sm:$0xff] }
  0x80   :  { %v5524_v53 = vpack.c.bf16 %v641_v49, %v640_v47 }
  0x82   :  { %484 = vmatmul.mubr.f32.gmra.mrb[14].mxu0 %v6423_v58  ;;  %5525 = vmatprep.subr.bf16.mxu1 %v5524_v53  ;;  %v642_v58 = vld [vmem:[%s7851_s4 + $0x100] sm:$0xff] }
  0x83   :  { %5527 = vmatpush3.bf16.msra.mxu1 %v5526_v56  ;;  %v5528_v61 = vpack.c.bf16 %v643_v59, %v642_v58  ;;  %v595_v56 = vld [vmem:[%s7848_s1 + $0x48] sm:$0xff] }
  0x84   :  { %5538 = vmatprep.subr.msk.bf16.mxu1 %vm6594_vm3, %v6598_v5 }
  0x85   :  { %5529 = vmatprep.subr.bf16.mxu0 %v5528_v61 }
  0x86   :  { %5531 = vmatpush3.bf16.msra.mxu0 %v5528_v61 }
  0x87   :  { %5533 = vmatprep.subr.bf16.mxu0 %v5532_v1 }
  0x8a   :  { %5535 = vmatpush3.bf16.msra.mxu0 %v5532_v1  ;;  %v199_v1 = vrot.slane %v6619_v15, %v198_v62 }
  0x8b   :  { %5585 = vmatprep.subr.bf16.mxu0 %v6598_v5 }
 0x10f   :  { %v6604_v6 = vpop.f32.mrb[0].mxu1 }
 0x110   :  { %v6606_v8 = vpop.f32.mrb[1].mxu1 }
 0x113   :  { %v6608_v9 = vpop.f32.mrb[2].mxu1 }
 0x114   :  { %v6610_v10 = vpop.f32.mrb[3].mxu1 }
 0x129   :  { %v381_v21 = vpop.f32.mrb[0].mxu0 }
 0x12a   :  { %v5748_v57 = vadd.f32 %v381_v21, %v191_v18  ;;  %v383_v22 = vpop.f32.mrb[1].mxu0 }
 0x12b   :  { %v5749_v23 = vadd.f32 %v383_v22, %v195_v20 }
 0x12c   :  { %v574_v24 = vmax.f32 %v5748_v57, 0.0  ;;  %v588_v57 = vld [vmem:[%s7848_s1 + $0x10] sm:$0xff] }
 0x12d   :  { %v575_v60 = vmax.f32 %v5749_v23, 0.0  ;;  %v387_v27 = vpop.f32.mrb[2].mxu0 }
 0x12e   :  { %v5750_v30 = vadd.f32 %v387_v27, %v191_v18  ;;  %v389_v31 = vpop.f32.mrb[3].mxu0  ;;  %v598_v34 = vmul.f32 %v586_v26, %v574_v24 }
 0x12f   :  { %v599_v0 = vmul.f32 %v587_v25, %v575_v60  ;;  %v5751_v7 = vadd.f32 %v389_v31, %v195_v20  ;;  %v591_v60 = vld [vmem:[%s7848_s1 + $0x28] sm:$0xff] }
 0x130   :  { %v577_v35 = vmax.f32 %v5750_v30, 0.0 }
 0x131   :  { %v578_v42 = vmax.f32 %v5751_v7, 0.0  ;;  %v393_v38 = vpop.f32.mrb[4].mxu0  ;;  %730 = vmatprep.mubr.f32.mxu1 %v599_v0 }
 0x132   :  { %v5752_v39 = vadd.f32 %v393_v38, %v191_v18  ;;  %v395_v40 = vpop.f32.mrb[5].mxu0  ;;  %731 = vmatmul.mubr.f32.vlgmr.msra.gmra.mrb[4].mxu1 %v598_v34  ;;  %v601_v44 = vmul.f32 %v589_v11, %v577_v35  ;;  %v597_v11 = vld [vmem:[%s7848_s1 + $0x58] sm:$0xff] }
 0x133   :  { %v602_v41 = vmul.f32 %v590_v36, %v578_v42  ;;  %v5753_v43 = vadd.f32 %v395_v40, %v195_v20  ;;  %5541 = vmatpush3.bf16.xpose.msk.msra.mxu1 %vm6594_vm3, %v6598_v5 }
 0x134   :  { %v580_v45 = vmax.f32 %v5752_v39, 0.0  ;;  %5544 = vmatprep.subr.msk.bf16.mxu1 %vm6594_vm3, %v6639_v37  ;;  %v845_v39 = vld [vmem:[%s7853_s6 + $0x48] sm:$0xff] }
 0x135   :  { %v581_v50 = vmax.f32 %v5753_v43, 0.0  ;;  %v399_v51 = vpop.f32.mrb[6].mxu0  ;;  %735 = vmatprep.mubr.f32.mxu1 %v602_v41  ;;  %v846_v41 = vld [vmem:[%s7853_s6 + $0x50] sm:$0xff]  ;;  %v847_v43 = vld [vmem:[%s7853_s6 + $0x58] sm:$0xff] }
 0x136   :  { %v5754_v19 = vadd.f32 %v399_v51, %v191_v18  ;;  %v401_v32 = vpop.f32.mrb[7].mxu0  ;;  %736 = vmatmul.mubr.f32.gmra.mrb[6].mxu1 %v601_v44  ;;  %v604_v49 = vmul.f32 %v592_v48, %v580_v45  ;;  %v848_v44 = vld [vmem:[%s7853_s6 + $0x60] sm:$0xff]  ;;  %v5566_v45 = vpack.c.bf16 %v847_v43, %v846_v41  ;;  %v851_v51 = vld [vmem:[%s7853_s6 + $0x78] sm:$0xff] }
 0x137   :  { %v605_v33 = vmul.f32 %v593_v46, %v581_v50  ;;  %v5755_v47 = vadd.f32 %v401_v32, %v195_v20  ;;  %v849_v46 = vld [vmem:[%s7853_s6 + $0x68] sm:$0xff]  ;;  %v850_v50 = vld [vmem:[%s7853_s6 + $0x70] sm:$0xff] }
 0x138   :  { %v583_v53 = vmax.f32 %v5754_v19, 0.0  ;;  %v5572_v48 = vpack.c.bf16 %v849_v46, %v848_v44  ;;  %v5578_v17 = vpack.c.bf16 %v851_v51, %v850_v50 }
 0x139   :  { %v584_v58 = vmax.f32 %v5755_v47, 0.0  ;;  %740 = vmatprep.mubr.f32.mxu1 %v605_v33 }
 0x13a   :  { %741 = vmatmul.mubr.f32.gmra.mrb[8].mxu1 %v604_v49  ;;  %v607_v61 = vmul.f32 %v595_v56, %v583_v53 }
 0x13b   :  { %v608_v59 = vmul.f32 %v596_v54, %v584_v58  ;;  %5547 = vmatpush3.bf16.xpose.msk.msra.mxu1 %vm6594_vm3, %v6639_v37 }
 0x13c   :  { %5550 = vmatprep.subr.msk.bf16.mxu1 %vm6594_vm3, %v5548_v55 }
 0x13d   :  { %745 = vmatprep.mubr.f32.mxu1 %v608_v59 }
 0x13e   :  { %746 = vmatmul.mubr.f32.gmra.mrb[10].mxu1 %v607_v61  ;;  %v4432_v61 = vld [vmem:[%s7852_s5] ss:$0 sm:$0xff]  ;;  %s5928_s5 = smov 32  }
 0x143   :  { %5553 = vmatpush3.bf16.xpose.msk.msra.mxu1 %vm6594_vm3, %v5548_v55 }
 0x149   :  { %v4668_v63 = vpop.f32.mrb[8].mxu0 }
 0x14a   :  { %v4669_v2 = vpop.f32.mrb[9].mxu0 }
 0x14b   :  { %v4670_v3 = vadd.f32 %v4669_v2, %v4668_v63 }
 0x14d   :  { %v4671_v14 = vpop.f32.mrb[10].mxu0  ;;  %v471_v16 = vadd.f32 %v4670_v3, %v199_v1 }
 0x14e   :  { %v4672_v18 = vpop.f32.mrb[11].mxu0 }
 0x14f   :  { %v4673_v20 = vadd.f32 %v4672_v18, %v4671_v14  ;;  %v556_v21 = vadd.f32 %v6606_v8, %v471_v16 }
 0x151   :  { %v476_v22 = vadd.f32 %v4673_v20, %v199_v1  ;;  %v576_v23 = vmax.f32 %v556_v21, 0.0  ;;  %v4674_v24 = vpop.f32.mrb[12].mxu0 }
 0x152   :  { %v4675_v25 = vpop.f32.mrb[13].mxu0 }
 0x153   :  { %v561_v13 = vadd.f32 %v6604_v6, %v476_v22  ;;  %v600_v15 = vmul.f32 %v588_v57, %v576_v23  ;;  %v4676_v26 = vadd.f32 %v4675_v25, %v4674_v24  ;;  %v594_v6 = vld [vmem:[%s7848_s1 + $0x40] sm:$0xff] }
 0x154   :  { %v4457_v24 = vld [vmem:[%s7854_s7] ss:$0 sm:$0xff]  ;;  %s4411_s7 = sshll.u32 %s5929_s26, 4  ;;  %s4412_s7 = int_to_ptr.vmem [resolvable:$true] %s4411_s7 }
 0x155   :  { %v579_v27 = vmax.f32 %v561_v13, 0.0  ;;  %v4677_v28 = vpop.f32.mrb[14].mxu0  ;;  %4990 = vmatprep.mubr.msk.f32.mxu0 %vm653_vm4, %v600_v15  ;;  %v481_v8 = vadd.f32 %v4676_v26, %v199_v1  ;;  %s5895_s27 = scalar_lea.vmem %s4412_s7, 32  ;;  %p5896_p1 = scmp.lt.s32.totalorder %s4412_s7, %s4412_s7 }
 0x156   :  { %v4678_v29 = vpop.f32.mrb[15].mxu0 }
 0x157   :  { %v603_v30 = vmul.f32 %v591_v60, %v579_v27  ;;  %v4679_v31 = vadd.f32 %v4678_v29, %v4677_v28  ;;  %v566_v0 = vadd.f32 %v6610_v10, %v481_v8 }
 0x159   :  { %v486_v7 = vadd.f32 %v4679_v31, %v199_v1  ;;  %v582_v34 = vmax.f32 %v566_v0, 0.0  ;;  %4991 = vmatmul.mubr.msk.f32.vlgmr.msra.gmra.mrb[16].mxu0 %vm653_vm4, %v603_v30  ;;  %v6773_v31 = vand.u32 127, %v188_v12 }
 0x15a   :  { %5587 = vmatpush3.bf16.msra.mxu0 %v6598_v5  ;;  %v842_v5 = vld [vmem:[%s7853_s6 + $0x30] sm:$0xff] }
 0x15b   :  { %v571_v35 = vadd.f32 %v6608_v9, %v486_v7  ;;  %v606_v36 = vmul.f32 %v594_v6, %v582_v34  ;;  %5589 = vmatprep.subr.bf16.mxu0 %v6639_v37  ;;  %v843_v9 = vld [vmem:[%s7853_s6 + $0x38] sm:$0xff] }
 0x15c   :  { %v5554_v38 = vpack.c.bf16 %v843_v9, %v842_v5 }
 0x15d   :  { %v585_v10 = vmax.f32 %v571_v35, 0.0  ;;  %4993 = vmatprep.mubr.msk.f32.mxu0 %vm653_vm4, %v606_v36 }
 0x15e   :  { %5591 = vmatpush3.bf16.msra.mxu0 %v6639_v37  ;;  %5556 = vmatprep.subr.msk.bf16.mxu1 %vm6594_vm3, %v5554_v38  ;;  %v844_v37 = vld [vmem:[%s7853_s6 + $0x40] sm:$0xff] }
 0x15f   :  { %v609_v42 = vmul.f32 %v597_v11, %v585_v10  ;;  %5593 = vmatprep.subr.bf16.mxu0 %v5548_v55  ;;  %5559 = vmatpush3.bf16.xpose.msk.msra.mxu1 %vm6594_vm3, %v5554_v38  ;;  %v5560_v40 = vpack.c.bf16 %v845_v39, %v844_v37 }
 0x161   :  { %4994 = vmatmul.mubr.msk.f32.gmra.mrb[18].mxu0 %vm653_vm4, %v609_v42  ;;  %5562 = vmatprep.subr.msk.bf16.mxu1 %vm6594_vm3, %v5560_v40 }
 0x162   :  { %5595 = vmatpush3.bf16.msra.mxu0 %v5548_v55 }
 0x163   :  { %5597 = vmatprep.subr.bf16.mxu0 %v5554_v38 }
 0x166   :  { %5599 = vmatpush3.bf16.msra.mxu0 %v5554_v38 }
 0x167   :  { %5601 = vmatprep.subr.bf16.mxu0 %v5560_v40  ;;  %5565 = vmatpush3.bf16.xpose.msk.msra.mxu1 %vm6594_vm3, %v5560_v40 }
 0x168   :  { %5568 = vmatprep.subr.msk.bf16.mxu1 %vm6594_vm3, %v5566_v45 }
 0x16a   :  { %5603 = vmatpush3.bf16.msra.mxu0 %v5560_v40 }
 0x16b   :  { %5605 = vmatprep.subr.bf16.mxu0 %v5566_v45 }
 0x16e   :  { %5607 = vmatpush3.bf16.msra.mxu0 %v5566_v45 }
 0x16f   :  { %5609 = vmatprep.subr.bf16.mxu0 %v5572_v48  ;;  %5571 = vmatpush3.bf16.xpose.msk.msra.mxu1 %vm6594_vm3, %v5566_v45 }
 0x170   :  { %5574 = vmatprep.subr.msk.bf16.mxu1 %vm6594_vm3, %v5572_v48 }
 0x172   :  { %5611 = vmatpush3.bf16.msra.mxu0 %v5572_v48 }
 0x173   :  { %5613 = vmatprep.subr.bf16.mxu0 %v5578_v17 }
 0x176   :  { %5615 = vmatpush3.bf16.msra.mxu0 %v5578_v17 }
 0x177   :  { %5577 = vmatpush3.bf16.xpose.msk.msra.mxu1 %vm6594_vm3, %v5572_v48 }
 0x178   :  { %5580 = vmatprep.subr.msk.bf16.mxu1 %vm6594_vm3, %v5578_v17 }
 0x17f   :  { %5583 = vmatpush3.bf16.xpose.msk.msra.mxu1 %vm6594_vm3, %v5578_v17  ;;  %vm1240_vm3 = vcmask 1042432  }
 0x205   :  { %v4725_v52 = vpop.f32.mrb[4].mxu1 }
 0x206   :  { %v4726_v19 = vpop.f32.mrb[5].mxu1 }
 0x207   :  { %v4727_v32 = vadd.f32 %v4726_v19, %v4725_v52 }
 0x209   :  { %v4728_v33 = vpop.f32.mrb[6].mxu1  ;;  %v733_v4 = vadd.f32 %v4727_v32, %v4432_v61 }
 0x20a   :  { %v4729_v47 = vpop.f32.mrb[7].mxu1 }
 0x20b   :  { %v4730_v49 = vadd.f32 %v4729_v47, %v4728_v33 }
 0x20d   :  { %v4731_v53 = vpop.f32.mrb[8].mxu1  ;;  %v738_v62 = vadd.f32 %v4730_v49, %v4432_v61 }
 0x20e   :  { %v4732_v54 = vpop.f32.mrb[9].mxu1 }
 0x20f   :  { %v4733_v55 = vadd.f32 %v4732_v54, %v4731_v53  ;;  %v5916_v54 = vmov 1  }
 0x210   :  { %5874 = vset.pattern.permute.xlu1 %v5916_v54  ;;  %5873 = vset.pattern.permute.xlu0 %v5916_v54 }
 0x211   :  { %v4734_v56 = vpop.f32.mrb[10].mxu1  ;;  %v743_v18 = vadd.f32 %v4733_v55, %v4432_v61  ;;  %v48_v55 = vld [vmem:[%s7859_s12 + $0x8] sm:$0xff] }
 0x212   :  { %v4735_v58 = vpop.f32.mrb[11].mxu1 }
 0x213   :  { %v4736_v59 = vadd.f32 %v4735_v58, %v4734_v56  ;;  %v47_v56 = vld [vmem:[%s7859_s12] sm:$0xff]  ;;  %v49_v58 = vld [vmem:[%s7859_s12 + $0x10] sm:$0xff] }
 0x215   :  { %v748_v14 = vadd.f32 %v4736_v59, %v4432_v61  ;;  %v50_v59 = vld [vmem:[%s7859_s12 + $0x18] sm:$0xff]  ;;  %v5917_v61 = vmov 2  }
 0x22c   :  { %v4992_v63 = vpop.f32.mrb[16].mxu0 }
 0x22d   :  { %v6753_v1 = vadd.f32 %v4992_v63, %v738_v62  ;;  %v817_v2 = vpop.f32.mrb[17].mxu0  ;;  %v5918_v62 = vmov 3   ;;  %v5919_v63 = vmov 0  }
 0x22e   :  { %v6755_v3 = vadd.f32 %v817_v2, %v733_v4  ;;  %v5920_v4 = vmov 4   ;;  %v5921_v2 = vmov 5  }
 0x230   :  { %5028 = vmatprep.mubr.msk.f32.mxu1 %vm852_vm0, %v6755_v3 }
 0x231   :  { %5029 = vmatmul.mubr.msk.f32.vlgmr.msra.gmra.mrb[12].mxu1 %vm852_vm0, %v6753_v1 }
 0x234   :  { %v4995_v16 = vpop.f32.mrb[18].mxu0 }
 0x235   :  { %v6761_v20 = vadd.f32 %v4995_v16, %v748_v14  ;;  %v827_v21 = vpop.f32.mrb[19].mxu0  ;;  %v5922_v14 = vmov 6   ;;  %v5923_v16 = vmov 7  }
 0x236   :  { %v6763_v57 = vadd.f32 %v827_v21, %v743_v18  ;;  %v5924_v18 = vmov 8  }
 0x238   :  { %5031 = vmatprep.mubr.msk.f32.mxu1 %vm852_vm0, %v6763_v57 }
 0x239   :  { %5032 = vmatmul.mubr.msk.f32.gmra.mrb[14].mxu1 %vm852_vm0, %v6761_v20 }
 0x304   :  { %v5030_v22 = vpop.f32.mrb[12].mxu1 }
 0x305   :  { %v979_v23 = vpop.f32.mrb[13].mxu1  ;;  %v1000_v13 = vmul.f32 2.0, %v5030_v22 }
 0x306   :  { %v999_v25 = vmul.f32 2.0, %v979_v23 }
 0x307   :  { %v1010_v60 = vsub.f32 %v4457_v24, %v1000_v13 }
 0x308   :  { %v1009_v15 = vsub.f32 %v4457_v24, %v999_v25 }
 0x30a   :  { %1015 = vmin.xlane.f32.xlu0 %v1009_v15 }
 0x30c   :  { %v5033_v26 = vpop.f32.mrb[14].mxu1 }
 0x30d   :  { %v989_v27 = vpop.f32.mrb[15].mxu1  ;;  %v1002_v8 = vmul.f32 2.0, %v5033_v26 }
 0x30e   :  { %v1001_v28 = vmul.f32 2.0, %v989_v27  ;;  %1017 = vmin.xlane.f32.xlu0 %v1010_v60 }
 0x30f   :  { %v1012_v30 = vsub.f32 %v4457_v24, %v1002_v8 }
 0x310   :  { %v1011_v29 = vsub.f32 %v4457_v24, %v1001_v28  ;;  %v5925_v28 = vmov 1.0  }
 0x312   :  { %1019 = vmin.xlane.f32.xlu1 %v1011_v29 }
 0x316   :  { %1021 = vmin.xlane.f32.xlu1 %v1012_v30 }
 0x397   :  { %v1016_v0 = vpop.xlane.xlu0 %1015 }
 0x398   :  { %vm1023_vm5 = vcmp.le.f32.partialorder %v1009_v15, %v1016_v0 }
 0x399   :  { %v1027_v6 = vsel %vm1023_vm5, %v6773_v31, 128  ;;  %vm1402_vm5 = vcmask 1044480  }
 0x39a   :  { %v1032_v7 = vshra.s32 %v1027_v6, 16  ;;  %v1031_v41 = vand.u32 65535, %v1027_v6 }
 0x39b   :  { %v1018_v34 = vpop.xlane.xlu0 %1017 }
 0x39c   :  { %vm1024_vm6 = vcmp.le.f32.partialorder %v1010_v60, %v1018_v34  ;;  %v1034_v35 = vcvt.s32.f32 %v1032_v7  ;;  %v1033_v45 = vcvt.s32.f32 %v1031_v41 }
 0x39d   :  { %v1028_v36 = vsel %vm1024_vm6, %v6773_v31, 128  ;;  %vm1659_vm6 = vcmask 1046528  }
 0x39e   :  { %1035 = vmin.xlane.f32.xlu0 %v1034_v35  ;;  %v1046_v11 = vshra.s32 %v1028_v36, 16  ;;  %v1045_v43 = vand.u32 65535, %v1028_v36 }
 0x39f   :  { %v1020_v10 = vpop.xlane.xlu1 %1019 }
 0x3a0   :  { %vm1025_vm7 = vcmp.le.f32.partialorder %v1011_v29, %v1020_v10  ;;  %v1048_v42 = vcvt.s32.f32 %v1046_v11  ;;  %v1047_v50 = vcvt.s32.f32 %v1045_v43 }
 0x3a1   :  { %v1029_v5 = vsel %vm1025_vm7, %v6773_v31, 128  ;;  %vm1684_vm7 = vcmask 1040384  }
 0x3a2   :  { %1049 = vmin.xlane.f32.xlu1 %v1048_v42  ;;  %v1060_v12 = vshra.s32 %v1029_v5, 16  ;;  %v1059_v51 = vand.u32 65535, %v1029_v5 }
 0x3a3   :  { %v1022_v9 = vpop.xlane.xlu1 %1021 }
 0x3a4   :  { %vm1026_vm8 = vcmp.le.f32.partialorder %v1012_v30, %v1022_v9  ;;  %v1062_v38 = vcvt.s32.f32 %v1060_v12  ;;  %v1061_v19 = vcvt.s32.f32 %v1059_v51  ;;  %v6819_v12 = vld [vmem:[%s7855_s8] sm:$0xff] }
 0x3a5   :  { %v1030_v37 = vsel %vm1026_vm8, %v6773_v31, 128 }
 0x3a6   :  { %1063 = vmin.xlane.f32.xlu0 %v1062_v38  ;;  %v1074_v39 = vshra.s32 %v1030_v37, 16  ;;  %v1073_v32 = vand.u32 65535, %v1030_v37 }
 0x3a8   :  { %v1076_v40 = vcvt.s32.f32 %v1074_v39  ;;  %v1075_v49 = vcvt.s32.f32 %v1073_v32 }
 0x3aa   :  { %1077 = vmin.xlane.f32.xlu1 %v1076_v40 }
 0x42b   :  { %v6779_v44 = vpop.xlane.xlu0 %1035 }
 0x42c   :  { %vm1037_vm9 = vcmp.eq.f32.partialorder %v1034_v35, %v6779_v44  ;;  %v1042_v21 = vcvt.f32.s32 %v6779_v44 }
 0x42d   :  { %v1038_v46 = vsel %vm1037_vm9, %v1033_v45, inf }
 0x42e   :  { %1039 = vmin.xlane.f32.xlu0 %v1038_v46  ;;  %v1043_v23 = vshll.u32 %v1042_v21, 16 }
 0x42f   :  { %v6782_v48 = vpop.xlane.xlu1 %1049 }
 0x430   :  { %vm1051_vm10 = vcmp.eq.f32.partialorder %v1048_v42, %v6782_v48  ;;  %v1056_v24 = vcvt.f32.s32 %v6782_v48  ;;  %v4466_v42 = vld [vmem:[%s7855_s8 + $0x8] sm:$0xff] }
 0x431   :  { %v1052_v17 = vsel %vm1051_vm10, %v1047_v50, inf  ;;  %5072 = vmatprep.subr.mxu0 %v4466_v42 }
 0x432   :  { %1053 = vmin.xlane.f32.xlu1 %v1052_v17  ;;  %v1057_v26 = vshll.u32 %v1056_v24, 16 }
 0x433   :  { %v6785_v52 = vpop.xlane.xlu0 %1063 }
 0x434   :  { %vm1065_vm11 = vcmp.eq.f32.partialorder %v1062_v38, %v6785_v52  ;;  %v1070_v60 = vcvt.f32.s32 %v6785_v52 }
 0x435   :  { %v1066_v33 = vsel %vm1065_vm11, %v1061_v19, inf }
 0x436   :  { %1067 = vmin.xlane.f32.xlu0 %v1066_v33  ;;  %v1071_v30 = vshll.u32 %v1070_v60, 16 }
 0x437   :  { %v6788_v47 = vpop.xlane.xlu1 %1077 }
 0x438   :  { %vm1079_vm12 = vcmp.eq.f32.partialorder %v1076_v40, %v6788_v47  ;;  %v1084_v0 = vcvt.f32.s32 %v6788_v47 }
 0x439   :  { %v1080_v53 = vsel %vm1079_vm12, %v1075_v49, inf }
 0x43a   :  { %1081 = vmin.xlane.f32.xlu1 %v1080_v53  ;;  %v1085_v35 = vshll.u32 %v1084_v0, 16 }
 0x44b   :  { %1263 = vperm.xlu1 %5874, %v48_v55  }
 0x44c   :  { %1260 = vperm.xlu0 %5873, %v47_v56  }
 0x44f   :  { %1266 = vperm.xlu1 %5874, %v49_v58  }
 0x450   :  { %5877 = vset.pattern.permute.xlu0 %v5917_v61 }
 0x451   :  { %1509 = vperm.xlu0 %5877, %v48_v55  }
 0x453   :  { %1269 = vperm.xlu1 %5874, %v50_v59  }
 0x455   :  { %5878 = vset.pattern.permute.xlu0 %v5918_v62 }
 0x456   :  { %1648 = vperm.xlu0 %5878, %v47_v56  }
 0x457   :  { %5875 = vset.pattern.permute.xlu1 %v5919_v63 }
 0x458   :  { %1226 = vperm.xlu1 %5875, %v47_v56  }
 0x45a   :  { %1657 = vperm.xlu0 %5878, %v50_v59  }
 0x45c   :  { %1230 = vperm.xlu1 %5875, %v48_v55  }
 0x45e   :  { %5881 = vset.pattern.permute.xlu0 %v5920_v4 }
 0x45f   :  { %1796 = vperm.xlu0 %5881, %v48_v55  }
 0x460   :  { %1234 = vperm.xlu1 %5875, %v49_v58  }
 0x463   :  { %5883 = vset.pattern.permute.xlu0 %v5921_v2 }
 0x464   :  { %1238 = vperm.xlu1 %5875, %v50_v59   ;;  %1921 = vperm.xlu0 %5883, %v49_v58  }
 0x468   :  { %5876 = vset.pattern.permute.xlu1 %v5917_v61  ;;  %1924 = vperm.xlu0 %5883, %v50_v59  }
 0x469   :  { %1506 = vperm.xlu1 %5876, %v47_v56  }
 0x46c   :  { %5886 = vset.pattern.permute.xlu0 %v5922_v14 }
 0x46d   :  { %1512 = vperm.xlu1 %5876, %v49_v58   ;;  %2060 = vperm.xlu0 %5886, %v48_v55  }
 0x471   :  { %1515 = vperm.xlu1 %5876, %v50_v59   ;;  %5887 = vset.pattern.permute.xlu0 %v5923_v16 }
 0x472   :  { %2199 = vperm.xlu0 %5887, %v47_v56  }
 0x475   :  { %5879 = vset.pattern.permute.xlu1 %v5918_v62 }
 0x476   :  { %1651 = vperm.xlu1 %5879, %v48_v55   ;;  %2208 = vperm.xlu0 %5887, %v50_v59  }
 0x47a   :  { %1654 = vperm.xlu1 %5879, %v49_v58   ;;  %5890 = vset.pattern.permute.xlu0 %v5924_v18 }
 0x47b   :  { %2344 = vperm.xlu0 %5890, %v48_v55  }
 0x47e   :  { %5880 = vset.pattern.permute.xlu1 %v5920_v4 }
 0x47f   :  { %1792 = vperm.xlu1 %5880, %v47_v56  }
 0x483   :  { %5882 = vset.pattern.permute.xlu1 %v5921_v2 }
 0x484   :  { %1915 = vperm.xlu1 %5882, %v47_v56  }
 0x488   :  { %1918 = vperm.xlu1 %5882, %v48_v55  }
 0x48c   :  { %5884 = vset.pattern.permute.xlu1 %v5920_v4 }
 0x48d   :  { %1800 = vperm.xlu1 %5884, %v49_v58  }
 0x491   :  { %1804 = vperm.xlu1 %5884, %v50_v59  }
 0x495   :  { %5885 = vset.pattern.permute.xlu1 %v5922_v14 }
 0x496   :  { %2057 = vperm.xlu1 %5885, %v47_v56  }
 0x49a   :  { %2063 = vperm.xlu1 %5885, %v49_v58  }
 0x49e   :  { %2066 = vperm.xlu1 %5885, %v50_v59  }
 0x4a2   :  { %5888 = vset.pattern.permute.xlu1 %v5923_v16 }
 0x4a3   :  { %2202 = vperm.xlu1 %5888, %v48_v55  }
 0x4a7   :  { %2205 = vperm.xlu1 %5888, %v49_v58  }
 0x4ab   :  { %5889 = vset.pattern.permute.xlu1 %v5924_v18 }
 0x4ac   :  { %2341 = vperm.xlu1 %5889, %v47_v56  }
 0x4b0   :  { %2347 = vperm.xlu1 %5889, %v49_v58  }
 0x4b4   :  { %2350 = vperm.xlu1 %5889, %v50_v59  }
 0x4bb   :  { %v1040_v22 = vpop.xlane.xlu0 %1039 }
 0x4bc   :  { %v1041_v25 = vcvt.f32.s32 %v1040_v22 }
 0x4be   :  { %v1044_v13 = vadd.s32 %v1043_v23, %v1041_v25  ;;  %v6879_v23 = vld [vmem:[#allocation2] sm:$0xff] }
 0x4bf   :  { %v1054_v15 = vpop.xlane.xlu1 %1053 }
 0x4c0   :  { %v1055_v27 = vcvt.f32.s32 %v1054_v15  ;;  %vm1087_vm13 = vcmp.eq.s32.totalorder %v6773_v31, %v1044_v13 }
 0x4c1   :  { %5066 = vmatprep.mubr.msk.f32.mxu0 %vm1087_vm13, %v5925_v28 }
 0x4c2   :  { %v1058_v8 = vadd.s32 %v1057_v26, %v1055_v27 }
 0x4c3   :  { %v1068_v29 = vpop.xlane.xlu0 %1067 }
 0x4c4   :  { %vm1088_vm14 = vcmp.eq.s32.totalorder %v6773_v31, %v1058_v8  ;;  %v1069_v6 = vcvt.f32.s32 %v1068_v29 }
 0x4c5   :  { %5067 = vmatmul.mubr.msk.f32.vlgmr.msra.gmra.mrb[20].mxu0 %vm1088_vm14, %v5925_v28 }
 0x4c6   :  { %v1072_v7 = vadd.s32 %v1071_v30, %v1069_v6  ;;  %5073 = vmatpush3.msra.mxu0 %v4466_v42 }
 0x4c7   :  { %v1082_v34 = vpop.xlane.xlu1 %1081  ;;  %5080 = vmatprep.subr.mxu0 %v6819_v12 }
 0x4c8   :  { %v1083_v36 = vcvt.f32.s32 %v1082_v34  ;;  %vm1089_vm15 = vcmp.eq.s32.totalorder %v6773_v31, %v1072_v7 }
 0x4c9   :  { %5069 = vmatprep.mubr.msk.f32.mxu0 %vm1089_vm15, %v5925_v28 }
 0x4ca   :  { %v1086_v11 = vadd.s32 %v1085_v35, %v1083_v36 }
 0x4cb   :  { %v1264_v10 = vpop.permute.xlu1 %1263  ;;  %v1261_v46 = vpop.permute.xlu0 %1260 }
 0x4cc   :  { %vm1090_vm1 = vcmp.eq.s32.totalorder %v6773_v31, %v1086_v11  ;;  %v1272_v16 = vrot.slane %v1264_v10, 4  ;;  %v6877_v21 = vrot.slane %v1261_v46, 4 }
 0x4cd   :  { %5070 = vmatmul.mubr.msk.f32.gmra.mrb[22].mxu0 %vm1090_vm1, %v5925_v28 }
 0x4ce   :  { %v6900_v28 = vsel %vm216_vm2, %v6877_v21, %v1272_v16 }
 0x4cf   :  { %v6814_v5 = vpop.permute.xlu1 %1266 }
 0x4d0   :  { %v6840_v50 = vpop.permute.xlu0 %1509  ;;  %v1274_v18 = vrot.slane %v6814_v5, 4 }
 0x4d2   :  { %v6892_v26 = vsel %vm216_vm2, %v1272_v16, %v1274_v18 }
 0x4d3   :  { %v1270_v9 = vpop.permute.xlu1 %1269 }
 0x4d4   :  { %v6914_v11 = vrot.slane %v1270_v9, 4  ;;  %v6932_v9 = vld [vmem:[%s7855_s8 + $0x10] sm:$0xff] }
 0x4d5   :  { %v6844_v17 = vpop.permute.xlu0 %1648 }
 0x4d7   :  { %v1227_v38 = vpop.permute.xlu1 %1226 }
 0x4d8   :  { %v6911_v7 = vrot.slane %v1227_v38, 5 }
 0x4d9   :  { %v6848_v19 = vpop.permute.xlu0 %1657 }
 0x4db   :  { %v6822_v31 = vpop.permute.xlu1 %1230 }
 0x4dc   :  { %v1242_v34 = vrot.slane %v6822_v31, 5 }
 0x4de   :  { %v6852_v33 = vpop.permute.xlu0 %1796  ;;  %v6923_v38 = vsel %vm1240_vm3, %v6911_v7, %v1242_v34 }
 0x4df   :  { %v6824_v37 = vpop.permute.xlu1 %1234 }
 0x4e0   :  { %v1244_v5 = vrot.slane %v6824_v37, 5 }
 0x4e3   :  { %v6826_v39 = vpop.permute.xlu1 %1238  ;;  %v6856_v49 = vpop.permute.xlu0 %1921 }
 0x4e4   :  { %v6926_v31 = vrot.slane %v6826_v39, 5  ;;  %v6944_v39 = vsel %vm216_vm2, %v1274_v18, %v6914_v11 }
 0x4e6   :  { %7867 = vst [vmem:[#allocation7_spill] sm:$0xff] %v6926_v31 }
 0x4e7   :  { %v6860_v54 = vpop.permute.xlu0 %1924 }
 0x4e8   :  { %v6828_v40 = vpop.permute.xlu1 %1506 }
 0x4ec   :  { %v6830_v41 = vpop.permute.xlu1 %1512  ;;  %v6864_v56 = vpop.permute.xlu0 %2060 }
 0x4f0   :  { %v6832_v43 = vpop.permute.xlu1 %1515 }
 0x4f1   :  { %v6868_v59 = vpop.permute.xlu0 %2199 }
 0x4f5   :  { %v6834_v44 = vpop.permute.xlu1 %1651  ;;  %v6889_v15 = vpop.permute.xlu0 %2208 }
 0x4f9   :  { %v6836_v45 = vpop.permute.xlu1 %1654 }
 0x4fa   :  { %v6916_v42 = vpop.permute.xlu0 %2344 }
 0x4fb   :  { %v7862_v37 = vrot.slane %v6916_v42, 3 }
 0x4fe   :  { %v6838_v48 = vpop.permute.xlu1 %1792 }
 0x503   :  { %v6842_v51 = vpop.permute.xlu1 %1915 }
 0x507   :  { %v6846_v52 = vpop.permute.xlu1 %1918 }
 0x50c   :  { %v6850_v32 = vpop.permute.xlu1 %1800 }
 0x510   :  { %v6854_v47 = vpop.permute.xlu1 %1804 }
 0x515   :  { %v6858_v53 = vpop.permute.xlu1 %2057 }
 0x519   :  { %v6862_v55 = vpop.permute.xlu1 %2063 }
 0x51d   :  { %v6866_v58 = vpop.permute.xlu1 %2066 }
 0x522   :  { %v6870_v62 = vpop.permute.xlu1 %2202 }
 0x598   :  { %v5068_v61 = vpop.f32.mrb[20].mxu0 }
 0x599   :  { %v1185_v63 = vsub.f32 %v5068_v61, %v6753_v1  ;;  %1215 = vst.msk [vmem:[#allocation2 + $0x10] sm:$0xff] %vm852_vm0, %v5068_v61  ;;  %v1165_v4 = vpop.f32.mrb[21].mxu0  ;;  %v1283_v1 = vmul.f32 %v6877_v21, %v6879_v23 }
 0x59a   :  { %v1184_v2 = vsub.f32 %v1165_v4, %v6755_v3  ;;  %1214 = vst.msk [vmem:[#allocation2 + $0x8] sm:$0xff] %vm852_vm0, %v1165_v4  ;;  %v6887_v3 = vpop.permute.xlu1 %2205 }
 0x59b   :  { %v1189_v14 = vmul.f32 %v1185_v63, %v1185_v63  ;;  %v1295_v0 = vrot.slane %v1283_v1, 4  ;;  %v1518_v1 = vrot.slane %v6840_v50, 3 }
 0x59c   :  { %v1188_v22 = vmul.f32 %v1184_v2, %v1184_v2 }
 0x59d   :  { %v1193_v24 = vsel %vm852_vm0, %v1189_v14, 0.0  ;;  %v1253_v14 = vmul.f32 %v6911_v7, %v6879_v23 }
 0x59e   :  { %v1192_v25 = vsel %vm852_vm0, %v1188_v22, 0.0  ;;  %v2342_v10 = vpop.permute.xlu1 %2341 }
 0x59f   :  { %v6885_v13 = vadd.f32 %v1193_v24, %v1192_v25  ;;  %v6934_v63 = vrot.slane %v2342_v10, 3  ;;  %v6954_v24 = vsel %vm1240_vm3, %v1242_v34, %v1244_v5  ;;  %v6962_v25 = vsel %vm1240_vm3, %v1244_v5, %v6926_v31 }
 0x5a0   :  { %v6894_v60 = vld [vmem:[#allocation2 + $0x10] sm:$0xff]  ;;  %v6896_v27 = vpop.f32.mrb[22].mxu0  ;;  %v1403_v10 = vrot.slane %v1253_v14, 3  ;;  %v1520_v5 = vrot.slane %v6830_v41, 3 }
 0x5a1   :  { %v6902_v8 = vld [vmem:[#allocation2 + $0x8] sm:$0xff]  ;;  %1217 = vst.msk [vmem:[#allocation2 + $0x20] sm:$0xff] %vm852_vm0, %v6896_v27  ;;  %v1175_v29 = vpop.f32.mrb[23].mxu0  ;;  %v1285_v30 = vmul.f32 %v6892_v26, %v6894_v60  ;;  %v6973_v50 = vsel %vm1402_vm5, %v6934_v63, %v7862_v37 }
 0x5a2   :  { %1216 = vst.msk [vmem:[#allocation2 + $0x18] sm:$0xff] %vm852_vm0, %v1175_v29  ;;  %v1284_v6 = vmul.f32 %v6900_v28, %v6902_v8  ;;  %v1254_v2 = vmul.f32 %v6923_v38, %v6902_v8 }
 0x5a3   :  { %v1298_v35 = vrot.slane %v1285_v30, 4 }
 0x5a4   :  { %v1296_v36 = vrot.slane %v1284_v6, 4  ;;  %v1404_v34 = vrot.slane %v1254_v2, 3  ;;  %v6990_v2 = vmul.f32 %v6973_v50, %v6894_v60 }
 0x5a6   :  { %v1297_v46 = vsel %vm216_vm2, %v1295_v0, %v1296_v36  ;;  %v1299_v61 = vsel %vm216_vm2, %v1296_v36, %v1298_v35  ;;  %v1255_v0 = vmul.f32 %v6954_v24, %v6894_v60 }
 0x5a7   :  { %5074 = vmatprep.mubr.msk.f32.mxu0 %vm852_vm0, %v1297_v46  ;;  %v1186_v46 = vsub.f32 %v1175_v29, %v6763_v57  ;;  %v2364_v57 = vmul.f32 %v6934_v63, %v6902_v8  ;;  %v1405_v29 = vsel %vm1402_vm5, %v1403_v10, %v1404_v34 }
 0x5a8   :  { %v6937_v4 = vld [vmem:[#allocation2 + $0x20] sm:$0xff]  ;;  %5075 = vmatmul.mubr.msk.f32.vlgmr.msra.gmra.mrb[24].mxu0 %vm852_vm0, %v1299_v61  ;;  %v1406_v41 = vrot.slane %v1255_v0, 3  ;;  %v7005_v0 = vsel %vm1402_vm5, %v1518_v1, %v1520_v5 }
 0x5a9   :  { %v6948_v16 = vld [vmem:[#allocation2 + $0x18] sm:$0xff]  ;;  %5081 = vmatpush3.msra.mxu0 %v6819_v12  ;;  %v1287_v22 = vmul.f32 %v6914_v11, %v6937_v4  ;;  %v6965_v12 = vrot.slane %v6828_v40, 3  ;;  %v6979_v40 = vrot.slane %v6832_v43, 3  ;;  %v1257_v43 = vmul.f32 %v6926_v31, %v6937_v4 }
 0x5aa   :  { %v1286_v18 = vmul.f32 %v6944_v39, %v6948_v16  ;;  %5088 = vmatprep.subr.mxu0 %v6932_v9  ;;  %v1256_v36 = vmul.f32 %v6962_v25, %v6948_v16  ;;  %v1190_v37 = vmul.f32 %v1186_v46, %v1186_v46 }
 0x5ab   :  { %v1302_v30 = vrot.slane %v1287_v22, 4  ;;  %v7013_v10 = vsel %vm1402_vm5, %v1520_v5, %v6979_v40  ;;  %v2376_v5 = vrot.slane %v2364_v57, 5 }
 0x5ac   :  { %v1300_v6 = vrot.slane %v1286_v18, 4  ;;  %v6986_v18 = vsel %vm1402_vm5, %v6965_v12, %v1518_v1  ;;  %v1407_v1 = vsel %vm1402_vm5, %v1404_v34, %v1406_v41  ;;  %v7034_v34 = vrot.slane %v6848_v19, 1 }
 0x5ad   :  { %7868 = vst [vmem:[#allocation8_spill] sm:$0xff] %v6986_v18  ;;  %v1530_v14 = vmul.f32 %v6986_v18, %v6902_v8  ;;  %v1410_v18 = vrot.slane %v1257_v43, 3  ;;  %v1195_v57 = vsel %vm852_vm0, %v1190_v37, 0.0  ;;  %v1533_v19 = vmul.f32 %v6979_v40, %v6937_v4 }
 0x5ae   :  { %v1301_v61 = vsel %vm216_vm2, %v1298_v35, %v1300_v6  ;;  %v1303_v22 = vsel %vm216_vm2, %v1300_v6, %v1302_v30  ;;  %v1408_v35 = vrot.slane %v1256_v36, 3  ;;  %v1529_v30 = vmul.f32 %v6965_v12, %v6879_v23 }
 0x5af   :  { %5077 = vmatprep.mubr.msk.f32.mxu0 %vm852_vm0, %v1301_v61  ;;  %v1661_v6 = vrot.slane %v6834_v44, 1  ;;  %v7008_v61 = vrot.slane %v6844_v17, 1  ;;  %v1663_v36 = vrot.slane %v6836_v45, 1  ;;  %v1531_v17 = vmul.f32 %v7005_v0, %v6894_v60 }
 0x5b0   :  { %5078 = vmatmul.mubr.msk.f32.gmra.mrb[26].mxu0 %vm852_vm0, %v1303_v22  ;;  %v1187_v22 = vsub.f32 %v6896_v27, %v6761_v20  ;;  %v1409_v45 = vsel %vm1402_vm5, %v1406_v41, %v1408_v35  ;;  %v1542_v31 = vrot.slane %v1530_v14, 5  ;;  %v1532_v20 = vmul.f32 %v7013_v10, %v6948_v16 }
 0x5b1   :  { %5082 = vmatprep.mubr.msk.f32.mxu0 %vm852_vm0, %v1405_v29  ;;  %v4480_v29 = vld [vmem:[%s7855_s8 + $0x18] sm:$0xff]  ;;  %v7031_v27 = vsel %vm1659_vm6, %v7008_v61, %v1661_v6  ;;  %v1541_v46 = vrot.slane %v1529_v30, 5  ;;  %v1672_v43 = vmul.f32 %v7008_v61, %v6879_v23  ;;  %v7042_v14 = vsel %vm1659_vm6, %v1661_v6, %v1663_v36 }
 0x5b2   :  { %v1191_v41 = vmul.f32 %v1187_v22, %v1187_v22  ;;  %v1544_v44 = vrot.slane %v1531_v17, 5  ;;  %v1546_v30 = vrot.slane %v1532_v20, 5  ;;  %v1673_v23 = vmul.f32 %v7031_v27, %v6902_v8 }
 0x5b3   :  { %v7869_v37 = vrot.slane %v6990_v2, 5  ;;  %v1674_v20 = vmul.f32 %v7042_v14, %v6894_v60 }
 0x5b4   :  { %5083 = vmatmul.mubr.msk.f32.vlgmr.msra.gmra.mrb[24].mxu0 %vm852_vm0, %v1407_v1  ;;  %v1411_v1 = vsel %vm1402_vm5, %v1408_v35, %v1410_v18  ;;  %v7058_v18 = vsel %vm1659_vm6, %v1663_v36, %v7034_v34  ;;  %v1196_v35 = vadd.f32 %v1195_v57, %v6885_v13  ;;  %v1197_v6 = vsel %vm852_vm0, %v1191_v41, 0.0 }
 0x5b5   :  { %5085 = vmatprep.mubr.msk.f32.mxu0 %vm852_vm0, %v1409_v45  ;;  %5089 = vmatpush3.msra.mxu0 %v6932_v9  ;;  %v1543_v9 = vsel %vm1240_vm3, %v1541_v46, %v1542_v31  ;;  %v7054_v22 = vsel %vm1240_vm3, %v2376_v5, %v7869_v37  ;;  %v1545_v17 = vsel %vm1240_vm3, %v1542_v31, %v1544_v44  ;;  %v1548_v45 = vrot.slane %v1533_v19, 5  ;;  %v4485_v5 = vld [vmem:[%s7855_s8 + $0x20] sm:$0xff] }
 0x5b6   :  { %5096 = vmatprep.subr.mxu0 %v4480_v29  ;;  %v7069_v46 = vadd.f32 %v1197_v6, %v1196_v35  ;;  %v1685_v36 = vrot.slane %v1672_v43, 7  ;;  %v1686_v13 = vrot.slane %v1673_v23, 7  ;;  %v1675_v41 = vmul.f32 %v7058_v18, %v6948_v16 }
 0x5b7   :  { %v1549_v31 = vsel %vm1240_vm3, %v1546_v30, %v1548_v45  ;;  %v1688_v57 = vrot.slane %v1674_v20, 7  ;;  %v1676_v19 = vmul.f32 %v7034_v34, %v6937_v4  ;;  %v1927_v23 = vrot.slane %v6846_v52, 7 }
 0x5b8   :  { %5086 = vmatmul.mubr.msk.f32.gmra.mrb[26].mxu0 %vm852_vm0, %v1411_v1  ;;  %7870 = vst [vmem:[#allocation9_spill] sm:$0xff] %v7069_v46  ;;  %v1547_v1 = vsel %vm1240_vm3, %v1544_v44, %v1546_v30  ;;  %v1687_v43 = vsel %vm1684_vm7, %v1685_v36, %v1686_v13  ;;  %v1690_v44 = vrot.slane %v1675_v41, 7  ;;  %v4490_v30 = vld [vmem:[%s7855_s8 + $0x28] sm:$0xff]  ;;  %v1929_v35 = vrot.slane %v6856_v49, 7 }
 0x5b9   :  { %5090 = vmatprep.mubr.msk.f32.mxu0 %vm852_vm0, %v1543_v9  ;;  %v7082_v9 = vrot.slane %v6842_v51, 7  ;;  %v1692_v37 = vrot.slane %v1676_v19, 7  ;;  %v7098_v52 = vrot.slane %v6860_v54, 7  ;;  %v1807_v49 = vmul.f32 %v6838_v48, %v6902_v8  ;;  %v7131_v19 = vld [vmem:[#allocation2 + $0x28] sm:$0xff] }
 0x5ba   :  { %v1691_v6 = vsel %vm1684_vm7, %v1688_v57, %v1690_v44  ;;  %v7105_v45 = vsel %vm1684_vm7, %v1927_v23, %v1929_v35  ;;  %v7113_v36 = vrot.slane %v6858_v53, 5  ;;  %v2071_v41 = vrot.slane %v6862_v55, 5 }
 0x5bb   :  { %v7095_v51 = vsel %vm1684_vm7, %v7082_v9, %v1927_v23  ;;  %v1938_v20 = vmul.f32 %v7082_v9, %v6902_v8  ;;  %v1940_v53 = vmul.f32 %v7105_v45, %v6948_v16  ;;  %v7137_v55 = vrot.slane %v6866_v58, 5 }
 0x5bc   :  { %5091 = vmatmul.mubr.msk.f32.vlgmr.msra.gmra.mrb[24].mxu0 %vm852_vm0, %v1545_v17  ;;  %v1693_v17 = vsel %vm1684_vm7, %v1690_v44, %v1692_v37  ;;  %v1939_v54 = vmul.f32 %v7095_v51, %v6894_v60  ;;  %v1942_v37 = vmul.f32 %v7098_v52, %v7131_v19 }
 0x5bd   :  { %5093 = vmatprep.mubr.msk.f32.mxu0 %vm852_vm0, %v1547_v1  ;;  %5097 = vmatpush3.msra.mxu0 %v4480_v29  ;;  %v1689_v29 = vsel %vm1684_vm7, %v1686_v13, %v1688_v57  ;;  %v2069_v1 = vrot.slane %v6864_v56, 5  ;;  %v1808_v13 = vmul.f32 %v6852_v33, %v6894_v60  ;;  %v4495_v57 = vld [vmem:[%s7855_s8 + $0x30] sm:$0xff]  ;;  %v1950_v56 = vrot.slane %v1938_v20, 1 }
 0x5be   :  { %5104 = vmatprep.subr.mxu0 %v4485_v5  ;;  %v7159_v20 = vsel %vm1240_vm3, %v2071_v41, %v7137_v55 }
 0x5bf   :  { %v7141_v23 = vsel %vm1240_vm3, %v7113_v36, %v2069_v1 }
 0x5c0   :  { %5094 = vmatmul.mubr.msk.f32.gmra.mrb[26].mxu0 %vm852_vm0, %v1549_v31  ;;  %v1809_v31 = vmul.f32 %v6850_v32, %v6948_v16 }
 0x5c1   :  { %5098 = vmatprep.mubr.msk.f32.mxu0 %vm852_vm0, %v1687_v43  ;;  %v1951_v43 = vrot.slane %v1939_v54, 1  ;;  %v2211_v54 = vrot.slane %v6870_v62, 4 }
 0x5c3   :  { %v1952_v58 = vsel %vm1659_vm6, %v1950_v56, %v1951_v43 }
 0x5c4   :  { %5099 = vmatmul.mubr.msk.f32.vlgmr.msra.gmra.mrb[24].mxu0 %vm852_vm0, %v1689_v29  ;;  %v1810_v29 = vmul.f32 %v6854_v47, %v6937_v4 }
 0x5c5   :  { %5101 = vmatprep.mubr.msk.f32.mxu0 %vm852_vm0, %v1691_v6  ;;  %5105 = vmatpush3.msra.mxu0 %v4485_v5  ;;  %v7117_v5 = vsel %vm1684_vm7, %v1929_v35, %v7098_v52  ;;  %v7149_v35 = vsel %vm1240_vm3, %v2069_v1, %v2071_v41  ;;  %v1953_v6 = vrot.slane %v1940_v53, 1  ;;  %v7163_v1 = vrot.slane %v6868_v59, 4  ;;  %v4500_v41 = vld [vmem:[%s7855_s8 + $0x38] sm:$0xff] }
 0x5c6   :  { %5112 = vmatprep.subr.mxu0 %v4490_v30  ;;  %v1941_v44 = vmul.f32 %v7117_v5, %v6937_v4  ;;  %v2082_v56 = vmul.f32 %v7149_v35, %v6948_v16 }
 0x5c7   :  { %v1954_v53 = vsel %vm1659_vm6, %v1951_v43, %v1953_v6  ;;  %v7182_v43 = vrot.slane %v6889_v15, 4  ;;  %v2222_v15 = vmul.f32 %v7163_v1, %v6902_v8 }
 0x5c8   :  { %5102 = vmatmul.mubr.msk.f32.gmra.mrb[26].mxu0 %vm852_vm0, %v1693_v17  ;;  %v1955_v17 = vrot.slane %v1941_v44, 1  ;;  %v2348_v44 = vpop.permute.xlu1 %2347 }
 0x5c9   :  { %5106 = vmatprep.mubr.msk.f32.mxu0 %vm852_vm0, %v1807_v49  ;;  %v2080_v49 = vmul.f32 %v7113_v36, %v6902_v8  ;;  %v4505_v8 = vld [vmem:[%s7855_s8 + $0x40] sm:$0xff]  ;;  %s5891_s8 = scalar_lea.vmem %s4412_s7, 16 }
 0x5ca   :  { %v1956_v59 = vsel %vm1659_vm6, %v1953_v6, %v1955_v17  ;;  %p5892_p0 = scmp.ne.s32.totalorder %s4412_s7, %s5891_s8  ;;  %p5897_p2 = scmp.lt.s32.totalorder %s5895_s27, %s5891_s8 }
 0x5cb   :  { %v2092_v62 = vrot.slane %v2080_v49, 3 }
 0x5cc   :  { %5107 = vmatmul.mubr.msk.f32.vlgmr.msra.gmra.mrb[24].mxu0 %vm852_vm0, %v1808_v13  ;;  %v1957_v13 = vrot.slane %v1942_v37, 1  ;;  %v2083_v37 = vmul.f32 %v7159_v20, %v6937_v4  ;;  %p5898_p3 = por %p5897_p2, %p5896_p1 }
 0x5cd   :  { %5109 = vmatprep.mubr.msk.f32.mxu0 %vm852_vm0, %v1809_v31  ;;  %5113 = vmatpush3.msra.mxu0 %v4490_v30  ;;  %v2081_v30 = vmul.f32 %v7141_v23, %v6894_v60  ;;  %v2213_v31 = vrot.slane %v6887_v3, 4  ;;  %v7179_v3 = vsel %vm216_vm2, %v7163_v1, %v2211_v54 }
 0x5ce   :  { %5120 = vmatprep.subr.mxu0 %v4495_v57  ;;  %v1958_v49 = vsel %vm1659_vm6, %v1955_v17, %v1957_v13  ;;  %v2097_v46 = vrot.slane %v2083_v37, 3  ;;  %v2355_v13 = vrot.slane %v2348_v44, 3  ;;  %v2226_v44 = vmul.f32 %v7182_v43, %v7131_v19  ;;  %p5899_p4 = pnand %p5898_p3, %p5892_p0 }
 0x5cf   :  { %v7188_v6 = vsel %vm216_vm2, %v2211_v54, %v2213_v31  ;;  %v2351_v54 = vpop.permute.xlu1 %2350 }
 0x5d0   :  { %5110 = vmatmul.mubr.msk.f32.gmra.mrb[26].mxu0 %vm852_vm0, %v1810_v29  ;;  %v2093_v29 = vrot.slane %v2081_v30, 3  ;;  %v2095_v30 = vrot.slane %v2082_v56, 3 }
 0x5d1   :  { %5114 = vmatprep.mubr.msk.f32.mxu0 %vm852_vm0, %v1952_v58  ;;  %v2084_v58 = vmul.f32 %v7137_v55, %v7131_v19 }
 0x5d2   :  { %v2096_v56 = vsel %vm1402_vm5, %v2093_v29, %v2095_v30 }
 0x5d3   :  { %v2099_v17 = vrot.slane %v2084_v58, 3  ;;  %v7212_v58 = vrot.slane %v2351_v54, 3  ;;  %v2241_v54 = vrot.slane %v2226_v44, 4  ;;  %v4627_v44 = vld [vmem:[%s7857_s10 + $0x1e0] sm:$0xff] }
 0x5d4   :  { %5115 = vmatmul.mubr.msk.f32.vlgmr.msra.gmra.mrb[24].mxu0 %vm852_vm0, %v1954_v53  ;;  %v2094_v53 = vsel %vm1402_vm5, %v2092_v62, %v2093_v29  ;;  %v2224_v62 = vmul.f32 %v7188_v6, %v6948_v16 }
 0x5d5   :  { %5117 = vmatprep.mubr.msk.f32.mxu0 %vm852_vm0, %v1956_v59  ;;  %5121 = vmatpush3.msra.mxu0 %v4495_v57  ;;  %v2223_v57 = vmul.f32 %v7179_v3, %v6894_v60  ;;  %v7199_v59 = vsel %vm216_vm2, %v2213_v31, %v7182_v43  ;;  %v2098_v60 = vsel %vm1402_vm5, %v2095_v30, %v2097_v46  ;;  %v2234_v31 = vrot.slane %v2222_v15, 4 }
 0x5d6   :  { %5128 = vmatprep.subr.mxu0 %v4500_v41  ;;  %v2100_v29 = vsel %vm1402_vm5, %v2097_v46, %v2099_v17 }
 0x5d7   :  { %v2235_v37 = vrot.slane %v2223_v57, 4 }
 0x5d8   :  { %5118 = vmatmul.mubr.msk.f32.gmra.mrb[26].mxu0 %vm852_vm0, %v1958_v49  ;;  %v2225_v49 = vmul.f32 %v7199_v59, %v6937_v4 }
 0x5d9   :  { %5122 = vmatprep.mubr.msk.f32.mxu0 %vm852_vm0, %v2094_v53  ;;  %v2237_v53 = vrot.slane %v2224_v62, 4  ;;  %v2236_v15 = vsel %vm216_vm2, %v2234_v31, %v2235_v37 }
 0x5da   :  { %v2239_v57 = vrot.slane %v2225_v49, 4 }
 0x5dc   :  { %5123 = vmatmul.mubr.msk.f32.vlgmr.msra.gmra.mrb[24].mxu0 %vm852_vm0, %v2096_v56  ;;  %v7871_v56 = vrot.slane %v6916_v42, 3  ;;  %v2238_v42 = vsel %vm216_vm2, %v2235_v37, %v2237_v53  ;;  %v2240_v62 = vsel %vm216_vm2, %v2237_v53, %v2239_v57  ;;  %v2242_v31 = vsel %vm216_vm2, %v2239_v57, %v2241_v54  ;;  %v4630_v53 = vld [vmem:[%s7857_s10 + $0x1f8] sm:$0xff]  ;;  %v4512_v57 = vld [vmem:[%s7857_s10 + $0x28] sm:$0xff]  ;;  %v4513_v54 = vld [vmem:[%s7857_s10 + $0x30] sm:$0xff] }
 0x5dd   :  { %5125 = vmatprep.mubr.msk.f32.mxu0 %vm852_vm0, %v2098_v60  ;;  %5129 = vmatpush3.msra.mxu0 %v4500_v41  ;;  %v7227_v41 = vsel %vm1402_vm5, %v2355_v13, %v7212_v58  ;;  %v2368_v60 = vmul.f32 %v7212_v58, %v7131_v19 }
 0x5de   :  { %5136 = vmatprep.subr.mxu0 %v4505_v8  ;;  %v7221_v30 = vsel %vm1402_vm5, %v7871_v56, %v2355_v13  ;;  %v2367_v17 = vmul.f32 %v7227_v41, %v6937_v4 }
 0x5df   :  { %v2366_v46 = vmul.f32 %v7221_v30, %v6948_v16  ;;  %v2383_v4 = vrot.slane %v2368_v60, 5  ;;  %v7872_v16 = vrot.slane %v6990_v2, 5  ;;  %v4628_v2 = vld [vmem:[%s7857_s10 + $0x1e8] sm:$0xff]  ;;  %v7289_v60 = vmul.f32 0.0, %v6911_v7 }
 0x5e0   :  { %5126 = vmatmul.mubr.msk.f32.gmra.mrb[26].mxu0 %vm852_vm0, %v2100_v29  ;;  %v2381_v49 = vrot.slane %v2367_v17, 5  ;;  %v7261_v29 = vpack.c.bf16 %v4628_v2, %v4627_v44 }
 0x5e1   :  { %5130 = vmatprep.mubr.msk.f32.mxu0 %vm852_vm0, %v2236_v15  ;;  %v2379_v13 = vrot.slane %v2366_v46, 5  ;;  %v4511_v15 = vld [vmem:[%s7857_s10 + $0x20] sm:$0xff] }
 0x5e2   :  { %v2384_v19 = vsel %vm1240_vm3, %v2381_v49, %v2383_v4  ;;  %v5616_v46 = vpack.c.bf16 %v4512_v57, %v4511_v15  ;;  %v7296_v4 = vmul.f32 0.0, %v6965_v12  ;;  %v7313_v15 = vmul.f32 0.0, %v7137_v55 }
 0x5e3   :  { %v2380_v37 = vsel %vm1240_vm3, %v7872_v16, %v2379_v13  ;;  %v7316_v57 = vmul.f32 0.0, %v7182_v43 }
 0x5e4   :  { %5131 = vmatmul.mubr.msk.f32.vlgmr.msra.gmra.mrb[24].mxu0 %vm852_vm0, %v2238_v42  ;;  %v4514_v42 = vld [vmem:[%s7857_s10 + $0x38] sm:$0xff]  ;;  %5617 = vmatprep.subr.bf16.mxu1 %v5616_v46 }
 0x5e5   :  { %5133 = vmatprep.mubr.msk.f32.mxu0 %vm852_vm0, %v2240_v62  ;;  %5137 = vmatpush3.msra.mxu0 %v4505_v8  ;;  %v2382_v8 = vsel %vm1240_vm3, %v2379_v13, %v2381_v49  ;;  %v5620_v17 = vpack.c.bf16 %v4514_v42, %v4513_v54  ;;  %v2970_v62 = vmul.f32 0.0, %v6877_v21  ;;  %v4510_v13 = vld [vmem:[%s7856_s9] ss:$0 sm:$0xff]  ;;  %v7293_v49 = vmul.f32 0.0, %v7098_v52  ;;  %s5926_s9 = smov 96  }
 0x5e6   :  { %5737 = vmatprep.subr.bf16.mxu0 %v7261_v29  ;;  %5619 = vmatpush3.bf16.msra.mxu1 %v5616_v46  ;;  %v2513_v21 = vld [vmem:[%s7857_s10] sm:$0xff]  ;;  %v3114_v52 = vrot.slane %v7289_v60, 3 }
 0x5e7   :  { %5621 = vmatprep.subr.bf16.mxu1 %v5620_v17  ;;  %v2871_v12 = vrot.slane %v7293_v49, 1 }
 0x5e8   :  { %5134 = vmatmul.mubr.msk.f32.gmra.mrb[26].mxu0 %vm852_vm0, %v2242_v31  ;;  %v2517_v31 = vmul.f32 0.0, %v7008_v61  ;;  %v2985_v61 = vrot.slane %v2970_v62, 4 }
 0x5e9   :  { %5138 = vmatprep.mubr.msk.f32.mxu0 %vm852_vm0, %v7054_v22  ;;  %v4629_v22 = vld [vmem:[%s7857_s10 + $0x1f0] sm:$0xff] }
 0x5ea   :  { %v7266_v56 = vpack.c.bf16 %v4630_v53, %v4629_v22  ;;  %5623 = vmatpush3.bf16.msra.mxu1 %v5620_v17  ;;  %v2532_v2 = vrot.slane %v2517_v31, 7  ;;  %v3353_v53 = vrot.slane %v7296_v4, 5 }
 0x5ec   :  { %5139 = vmatmul.mubr.msk.f32.vlgmr.msra.gmra.mrb[24].mxu0 %vm852_vm0, %v2380_v37  ;;  %v2514_v37 = vld [vmem:[%s7857_s10 + $0x8] sm:$0xff] }
 0x5ed   :  { %5141 = vmatprep.mubr.msk.f32.mxu0 %vm852_vm0, %v2382_v8  ;;  %5739 = vmatpush3.bf16.msra.mxu0 %v7261_v29 }
 0x5ee   :  { %5741 = vmatprep.subr.bf16.mxu0 %v7266_v56 }
 0x5f0   :  { %5142 = vmatmul.mubr.msk.f32.gmra.mrb[26].mxu0 %vm852_vm0, %v2384_v19  ;;  %v7304_v19 = vpack.c.bf16 %v2514_v37, %v2513_v21  ;;  %vm1210_vm0 = vcmask 0  }
 0x5f1   :  { %5743 = vmatpush3.bf16.msra.mxu0 %v7266_v56 }
 0x5f2   :  { %5625 = vmatprep.subr.bf16.mxu1 %v7304_v19 }
 0x6bf   :  { %v5140_v16 = vpop.f32.mrb[24].mxu0 }
 0x6c0   :  { %v2490_v8 = vadd.f32 %v5140_v16, %v4510_v13  ;;  %v2459_v7 = vpop.f32.mrb[25].mxu0 }
 0x6c1   :  { %v2489_v44 = vadd.f32 %v4510_v13, %v2459_v7 }
 0x6c2   :  { %v7308_v22 = vmax.f32 %v2490_v8, 0.0 }
 0x6c3   :  { %v7318_v54 = vmax.f32 %v2489_v44, 0.0  ;;  %v5143_v46 = vpop.f32.mrb[26].mxu0 }
 0x6c4   :  { %v2492_v42 = vadd.f32 %v5143_v46, %v4510_v13  ;;  %v2469_v17 = vpop.f32.mrb[27].mxu0  ;;  %v4268_v62 = vmul.f32 %v7308_v22, %v6973_v50  ;;  %v2519_v31 = vmul.f32 %v7308_v22, %v7042_v14  ;;  %v7326_v16 = vmul.f32 %v7308_v22, %v6852_v33 }
 0x6c5   :  { %v2491_v55 = vadd.f32 %v4510_v13, %v2469_v17  ;;  %v4267_v43 = vmul.f32 %v7318_v54, %v6934_v63  ;;  %v2518_v21 = vmul.f32 %v7318_v54, %v7031_v27  ;;  %v7334_v37 = vmul.f32 %v7318_v54, %v6838_v48 }
 0x6c6   :  { %v7336_v8 = vmax.f32 %v2492_v42, 0.0  ;;  %v4283_v50 = vrot.slane %v4268_v62, 5  ;;  %v2535_v7 = vrot.slane %v2519_v31, 7  ;;  %v2971_v14 = vmul.f32 %v7318_v54, %v6900_v28 }
 0x6c7   :  { %v7340_v33 = vmax.f32 %v2491_v55, 0.0  ;;  %v4282_v13 = vrot.slane %v4267_v43, 5  ;;  %v2533_v44 = vrot.slane %v2518_v21, 7  ;;  %v2972_v63 = vmul.f32 %v7308_v22, %v6892_v26 }
 0x6c8   :  { %v2521_v27 = vmul.f32 %v7336_v8, %v7034_v34  ;;  %v7348_v48 = vmul.f32 %v7336_v8, %v6854_v47  ;;  %v2986_v46 = vrot.slane %v2971_v14, 4  ;;  %v2974_v42 = vmul.f32 %v7336_v8, %v6914_v11 }
 0x6c9   :  { %v4284_v28 = vsel %vm1240_vm3, %v4282_v13, %v4283_v50  ;;  %v7354_v17 = vsel %vm1684_vm7, %v2533_v44, %v2535_v7  ;;  %v7357_v62 = vsel %vm1684_vm7, %v2532_v2, %v2533_v44  ;;  %v7361_v26 = vmul.f32 %v7340_v33, %v7221_v30 }
 0x6ca   :  { %5362 = vmatprep.mubr.msk.f32.mxu0 %vm653_vm4, %v4284_v28  ;;  %2543 = vrot.lane.b32.xlu1 %v7354_v17, %s5926_s9  ;;  %v2520_v47 = vmul.f32 %v7340_v33, %v7058_v18  ;;  %v2539_v11 = vrot.slane %v2521_v27, 7  ;;  %v7370_v34 = vmul.f32 %v7340_v33, %v6850_v32  ;;  %v2988_v2 = vrot.slane %v2972_v63, 4 }
 0x6cb   :  { %2541 = vrot.lane.b32.xlu0 %v7357_v62, %s5926_s9  ;;  %v4285_v30 = vrot.slane %v7361_v26, 5  ;;  %v7376_v31 = vsel %vm216_vm2, %v2985_v61, %v2986_v46  ;;  %v2973_v55 = vmul.f32 %v7340_v33, %v6944_v39  ;;  %v2992_v43 = vrot.slane %v2974_v42, 4  ;;  %v7873_v39 = vld [vmem:[#allocation7_spill] sm:$0xff] }
 0x6cc   :  { %v2537_v21 = vrot.slane %v2520_v47, 7  ;;  %v7381_v18 = vsel %vm216_vm2, %v2986_v46, %v2988_v2  ;;  %v3100_v32 = vmul.f32 %v7318_v54, %v6923_v38  ;;  %v3101_v14 = vmul.f32 %v7308_v22, %v6954_v24 }
 0x6cd   :  { %v4286_v13 = vsel %vm1240_vm3, %v4283_v50, %v4285_v30  ;;  %v2990_v61 = vrot.slane %v2973_v55, 4  ;;  %v3102_v44 = vmul.f32 %v7340_v33, %v6962_v25  ;;  %v3103_v63 = vmul.f32 %v7336_v8, %v7873_v39 }
 0x6ce   :  { %5363 = vmatmul.mubr.msk.f32.vlgmr.msra.gmra.mrb[28].mxu0 %vm653_vm4, %v4286_v13  ;;  %v7396_v27 = vsel %vm1684_vm7, %v2537_v21, %v2539_v11  ;;  %v7399_v38 = vsel %vm1684_vm7, %v2535_v7, %v2537_v21  ;;  %v3115_v24 = vrot.slane %v3100_v32, 3  ;;  %v3117_v46 = vrot.slane %v3101_v14, 3  ;;  %v7874_v11 = vld [vmem:[#allocation8_spill] sm:$0xff] }
 0x6cf   :  { %2547 = vrot.lane.b32.xlu1 %v7396_v27, %s5926_s9  ;;  %2545 = vrot.lane.b32.xlu0 %v7399_v38, %s5926_s9  ;;  %v7406_v25 = vsel %vm216_vm2, %v2990_v61, %v2992_v43  ;;  %v7409_v50 = vsel %vm216_vm2, %v2988_v2, %v2990_v61  ;;  %v3119_v42 = vrot.slane %v3102_v44, 3  ;;  %v3121_v28 = vrot.slane %v3103_v63, 3 }
 0x6d0   :  { %v7412_v47 = vsel %vm1402_vm5, %v3115_v24, %v3117_v46  ;;  %v7417_v7 = vsel %vm1402_vm5, %v3114_v52, %v3115_v24  ;;  %v3339_v55 = vmul.f32 %v7318_v54, %v7874_v11  ;;  %v3340_v43 = vmul.f32 %v7308_v22, %v7005_v0 }
 0x6d1   :  { %v7424_v21 = vsel %vm1402_vm5, %v3119_v42, %v3121_v28  ;;  %v7427_v2 = vsel %vm1402_vm5, %v3117_v46, %v3119_v42  ;;  %v3341_v32 = vmul.f32 %v7340_v33, %v7013_v10  ;;  %v3342_v60 = vmul.f32 %v7336_v8, %v6979_v40 }
 0x6d2   :  { %v3354_v52 = vrot.slane %v3339_v55, 5  ;;  %v3356_v14 = vrot.slane %v3340_v43, 5  ;;  %v2850_v13 = vmul.f32 %v7308_v22, %v7095_v51  ;;  %v2851_v0 = vmul.f32 %v7340_v33, %v7105_v45 }
 0x6d3   :  { %2746 = vrot.lane.b32.xlu1 %v7326_v16, %s5926_s9  ;;  %2744 = vrot.lane.b32.xlu0 %v7334_v37, %s5926_s9  ;;  %v3358_v61 = vrot.slane %v3341_v32, 5  ;;  %v3360_v44 = vrot.slane %v3342_v60, 5  ;;  %v2849_v10 = vmul.f32 %v7318_v54, %v7082_v9  ;;  %v2852_v40 = vmul.f32 %v7336_v8, %v7117_v5 }
 0x6d4   :  { %v3357_v39 = vsel %vm1240_vm3, %v3354_v52, %v3356_v14  ;;  %v3355_v51 = vsel %vm1240_vm3, %v3353_v53, %v3354_v52  ;;  %v2865_v45 = vrot.slane %v2850_v13, 1  ;;  %v2867_v63 = vrot.slane %v2851_v0, 1 }
 0x6d5   :  { %v3361_v24 = vsel %vm1240_vm3, %v3358_v61, %v3360_v44  ;;  %v3359_v46 = vsel %vm1240_vm3, %v3356_v14, %v3358_v61  ;;  %v2864_v42 = vrot.slane %v2849_v10, 1  ;;  %v2869_v28 = vrot.slane %v2852_v40, 1 }
 0x6d6   :  { %v7452_v11 = vsel %vm1659_vm6, %v2865_v45, %v2867_v63  ;;  %v4029_v9 = vmul.f32 %v7308_v22, %v7141_v23  ;;  %v4030_v5 = vmul.f32 %v7340_v33, %v7149_v35  ;;  %v4028_v4 = vmul.f32 %v7318_v54, %v7113_v36 }
 0x6d7   :  { %v4050_v53 = vrot.slane %v7313_v15, 3  ;;  %2750 = vrot.lane.b32.xlu1 %v7348_v48, %s5926_s9  ;;  %2748 = vrot.lane.b32.xlu0 %v7370_v34, %s5926_s9  ;;  %v7466_v55 = vsel %vm1659_vm6, %v2864_v42, %v2865_v45  ;;  %v7471_v23 = vsel %vm1659_vm6, %v2869_v28, %v2871_v12  ;;  %v7474_v35 = vsel %vm1659_vm6, %v2867_v63, %v2869_v28  ;;  %v4534_v28 = vld [vmem:[%s7857_s10 + $0x78] sm:$0xff] }
 0x6d8   :  { %v4044_v36 = vrot.slane %v4029_v9, 3  ;;  %v4046_v43 = vrot.slane %v4030_v5, 3  ;;  %v4043_v15 = vrot.slane %v4028_v4, 3  ;;  %v4031_v32 = vmul.f32 %v7336_v8, %v7159_v20  ;;  %v4539_v5 = vld [vmem:[%s7857_s10 + $0x80] sm:$0xff]  ;;  %v4540_v4 = vld [vmem:[%s7857_s10 + $0x88] sm:$0xff] }
 0x6d9   :  { %v3908_v60 = vmul.f32 %v7308_v22, %v7179_v3  ;;  %v3909_v52 = vmul.f32 %v7340_v33, %v7188_v6  ;;  %v3907_v49 = vmul.f32 %v7318_v54, %v7163_v1  ;;  %v3910_v12 = vmul.f32 %v7336_v8, %v7199_v59 }
 0x6da   :  { %v3929_v14 = vrot.slane %v7316_v57, 4  ;;  %v4047_v13 = vsel %vm1402_vm5, %v4044_v36, %v4046_v43  ;;  %v4045_v0 = vsel %vm1402_vm5, %v4043_v15, %v4044_v36  ;;  %v4048_v61 = vrot.slane %v4031_v32, 3  ;;  %v4542_v15 = vld [vmem:[%s7857_s10 + $0x98] sm:$0xff] }
 0x6db   :  { %2996 = vrot.lane.b32.xlu1 %v7381_v18, %s5927_s25  ;;  %2994 = vrot.lane.b32.xlu0 %v7376_v31, %s5927_s25  ;;  %v3923_v20 = vrot.slane %v3908_v60, 4  ;;  %v3925_v3 = vrot.slane %v3909_v52, 4  ;;  %v3922_v1 = vrot.slane %v3907_v49, 4  ;;  %v3927_v6 = vrot.slane %v3910_v12, 4  ;;  %v4547_v49 = vld [vmem:[%s7857_s10 + $0xa0] sm:$0xff]  ;;  %v4548_v12 = vld [vmem:[%s7857_s10 + $0xa8] sm:$0xff] }
 0x6dc   :  { %v4271_v59 = vmul.f32 0.0, %v7212_v58  ;;  %v4051_v22 = vsel %vm1402_vm5, %v4048_v61, %v4050_v53  ;;  %v4049_v57 = vsel %vm1402_vm5, %v4046_v43, %v4048_v61  ;;  %v4270_v58 = vmul.f32 %v7336_v8, %v7227_v41  ;;  %v2515_v41 = vld [vmem:[%s7857_s10 + $0x10] sm:$0xff]  ;;  %v2516_v8 = vld [vmem:[%s7857_s10 + $0x18] sm:$0xff] }
 0x6dd   :  { %v7497_v54 = vsel %vm216_vm2, %v3923_v20, %v3925_v3  ;;  %v7500_v33 = vsel %vm216_vm2, %v3922_v1, %v3923_v20  ;;  %v7503_v44 = vsel %vm216_vm2, %v3927_v6, %v3929_v14  ;;  %v7506_v10 = vsel %vm216_vm2, %v3925_v3, %v3927_v6  ;;  %v4541_v43 = vld [vmem:[%s7857_s10 + $0x90] sm:$0xff]  ;;  %v4550_v61 = vld [vmem:[%s7857_s10 + $0xb8] sm:$0xff]  ;;  %v4555_v3 = vld [vmem:[%s7857_s10 + $0xc0] sm:$0xff] }
 0x6de   :  { %v4289_v40 = vrot.slane %v4271_v59, 5  ;;  %v4287_v45 = vrot.slane %v4270_v58, 5  ;;  %v5628_v26 = vpack.c.bf16 %v2516_v8, %v2515_v41  ;;  %v5648_v36 = vpack.c.bf16 %v4540_v4, %v4539_v5  ;;  %v4556_v1 = vld [vmem:[%s7857_s10 + $0xc8] sm:$0xff]  ;;  %v4563_v41 = vld [vmem:[%s7857_s10 + $0xe0] sm:$0xff] }
 0x6df   :  { %3000 = vrot.lane.b32.xlu1 %v7406_v25, %s5927_s25  ;;  %2998 = vrot.lane.b32.xlu0 %v7409_v50, %s5927_s25  ;;  %v5652_v52 = vpack.c.bf16 %v4542_v15, %v4541_v43  ;;  %v5664_v59 = vpack.c.bf16 %v4556_v1, %v4555_v3  ;;  %v4564_v8 = vld [vmem:[%s7857_s10 + $0xe8] sm:$0xff]  ;;  %v4587_v5 = vld [vmem:[%s7857_s10 + $0x140] sm:$0xff] }
 0x6e0   :  { %v7519_v63 = vsel %vm1240_vm3, %v4285_v30, %v4287_v45  ;;  %v7522_v42 = vsel %vm1240_vm3, %v4287_v45, %v4289_v40  ;;  %v4523_v30 = vld [vmem:[%s7857_s10 + $0x40] sm:$0xff]  ;;  %v4588_v4 = vld [vmem:[%s7857_s10 + $0x148] sm:$0xff]  ;;  %v4589_v43 = vld [vmem:[%s7857_s10 + $0x150] sm:$0xff] }
 0x6e1   :  { %v4590_v15 = vld [vmem:[%s7857_s10 + $0x158] sm:$0xff] }
 0x6e3   :  { %3125 = vrot.lane.b32.xlu1 %v7412_v47, %s5928_s5  ;;  %3123 = vrot.lane.b32.xlu0 %v7417_v7, %s5928_s5 }
 0x6e7   :  { %3129 = vrot.lane.b32.xlu1 %v7424_v21, %s5928_s5  ;;  %3127 = vrot.lane.b32.xlu0 %v7427_v2, %s5928_s5  ;;  %v7875_v21 = vld [vmem:[#allocation9_spill] sm:$0xff] }
 0x6e8   :  { %v4531_v2 = vld [vmem:[%s7857_s10 + $0x60] sm:$0xff] }
 0x6eb   :  { %3235 = vrot.lane.b32.xlu1 %v7381_v18, %s5928_s5  ;;  %3233 = vrot.lane.b32.xlu0 %v7376_v31, %s5928_s5  ;;  %v4524_v31 = vld [vmem:[%s7857_s10 + $0x48] sm:$0xff] }
 0x6ef   :  { %3239 = vrot.lane.b32.xlu1 %v7406_v25, %s5928_s5  ;;  %3237 = vrot.lane.b32.xlu0 %v7409_v50, %s5928_s5  ;;  %v4525_v25 = vld [vmem:[%s7857_s10 + $0x50] sm:$0xff]  ;;  %v4526_v50 = vld [vmem:[%s7857_s10 + $0x58] sm:$0xff] }
 0x6f0   :  { %v5636_v7 = vpack.c.bf16 %v4526_v50, %v4525_v25  ;;  %v4572_v25 = vld [vmem:[%s7857_s10 + $0x108] sm:$0xff] }
 0x6f3   :  { %3364 = vrot.lane.b32.xlu1 %v3357_v39, %s5927_s25  ;;  %3362 = vrot.lane.b32.xlu0 %v3355_v51, %s5927_s25  ;;  %v4532_v39 = vld [vmem:[%s7857_s10 + $0x68] sm:$0xff] }
 0x6f7   :  { %3368 = vrot.lane.b32.xlu1 %v3361_v24, %s5927_s25  ;;  %3366 = vrot.lane.b32.xlu0 %v3359_v46, %s5927_s25  ;;  %v5640_v24 = vpack.c.bf16 %v4532_v39, %v4531_v2  ;;  %v4533_v46 = vld [vmem:[%s7857_s10 + $0x70] sm:$0xff] }
 0x6f8   :  { %v5644_v9 = vpack.c.bf16 %v4534_v28, %v4533_v46  ;;  %v4581_v28 = vld [vmem:[%s7857_s10 + $0x130] sm:$0xff] }
 0x6fb   :  { %3474 = vrot.lane.b32.xlu1 %v7326_v16, %s5927_s25  ;;  %3472 = vrot.lane.b32.xlu0 %v7334_v37, %s5927_s25 }
 0x6ff   :  { %3478 = vrot.lane.b32.xlu1 %v7348_v48, %s5927_s25  ;;  %3476 = vrot.lane.b32.xlu0 %v7370_v34, %s5927_s25 }
 0x703   :  { %3584 = vrot.lane.b32.xlu1 %v7354_v17, %s5928_s5  ;;  %3582 = vrot.lane.b32.xlu0 %v7357_v62, %s5928_s5 }
 0x707   :  { %3588 = vrot.lane.b32.xlu1 %v7396_v27, %s5928_s5  ;;  %3586 = vrot.lane.b32.xlu0 %v7399_v38, %s5928_s5  ;;  %v5632_v38 = vpack.c.bf16 %v4524_v31, %v4523_v30  ;;  %v4565_v30 = vld [vmem:[%s7857_s10 + $0xf0] sm:$0xff]  ;;  %v4566_v31 = vld [vmem:[%s7857_s10 + $0xf8] sm:$0xff] }
 0x70b   :  { %3694 = vrot.lane.b32.xlu1 %v7326_v16, %s5928_s5  ;;  %3692 = vrot.lane.b32.xlu0 %v7334_v37, %s5928_s5 }
 0x70f   :  { %3698 = vrot.lane.b32.xlu1 %v7348_v48, %s5928_s5  ;;  %3696 = vrot.lane.b32.xlu0 %v7370_v34, %s5928_s5 }
 0x713   :  { %3804 = vrot.lane.b32.xlu1 %v7452_v11, %s5927_s25  ;;  %3802 = vrot.lane.b32.xlu0 %v7466_v55, %s5927_s25 }
 0x717   :  { %3808 = vrot.lane.b32.xlu1 %v7471_v23, %s5927_s25  ;;  %3806 = vrot.lane.b32.xlu0 %v7474_v35, %s5927_s25 }
 0x71b   :  { %4054 = vrot.lane.b32.xlu1 %v4047_v13, %s5926_s9  ;;  %4052 = vrot.lane.b32.xlu0 %v4045_v0, %s5926_s9  ;;  %v5656_v13 = vpack.c.bf16 %v4548_v12, %v4547_v49  ;;  %v4549_v0 = vld [vmem:[%s7857_s10 + $0xb0] sm:$0xff]  ;;  %v4596_v49 = vld [vmem:[%s7857_s10 + $0x168] sm:$0xff] }
 0x71c   :  { %v5660_v20 = vpack.c.bf16 %v4550_v61, %v4549_v0 }
 0x71f   :  { %4058 = vrot.lane.b32.xlu1 %v4051_v22, %s5926_s9  ;;  %4056 = vrot.lane.b32.xlu0 %v4049_v57, %s5926_s9  ;;  %v4557_v22 = vld [vmem:[%s7857_s10 + $0xd0] sm:$0xff]  ;;  %v4558_v57 = vld [vmem:[%s7857_s10 + $0xd8] sm:$0xff] }
 0x720   :  { %v5668_v45 = vpack.c.bf16 %v4558_v57, %v4557_v22  ;;  %v4611_v57 = vld [vmem:[%s7857_s10 + $0x1a0] sm:$0xff] }
 0x723   :  { %4164 = vrot.lane.b32.xlu1 %v7497_v54, %s5926_s9  ;;  %4162 = vrot.lane.b32.xlu0 %v7500_v33, %s5926_s9 }
 0x727   :  { %4168 = vrot.lane.b32.xlu1 %v7503_v44, %s5926_s9  ;;  %4166 = vrot.lane.b32.xlu0 %v7506_v10, %s5926_s9 }
 0x73c   :  { %v2544_v17 = vpop.permute.xlu1 %2543 }
 0x73d   :  { %v2542_v62 = vpop.permute.xlu0 %2541 }
 0x73e   :  { %5152 = vmatprep.mubr.msk.f32.mxu1 %vm653_vm4, %v2542_v62  ;;  %v5672_v62 = vpack.c.bf16 %v4564_v8, %v4563_v41  ;;  %v4613_v8 = vld [vmem:[%s7857_s10 + $0x1b0] sm:$0xff] }
 0x73f   :  { %5153 = vmatmul.mubr.msk.f32.vlgmr.msra.gmra.mrb[16].mxu1 %vm653_vm4, %v2544_v17 }
 0x740   :  { %5627 = vmatpush3.bf16.msra.mxu1 %v7304_v19 }
 0x741   :  { %v2548_v18 = vpop.permute.xlu1 %2547  ;;  %v2546_v27 = vpop.permute.xlu0 %2545  ;;  %5629 = vmatprep.subr.bf16.mxu1 %v5628_v26 }
 0x742   :  { %5155 = vmatprep.mubr.msk.f32.mxu1 %vm653_vm4, %v2546_v27  ;;  %v5676_v27 = vpack.c.bf16 %v4566_v31, %v4565_v30  ;;  %v4619_v30 = vld [vmem:[%s7857_s10 + $0x1c0] sm:$0xff]  ;;  %v4620_v31 = vld [vmem:[%s7857_s10 + $0x1c8] sm:$0xff] }
 0x743   :  { %5156 = vmatmul.mubr.msk.f32.gmra.mrb[18].mxu1 %vm653_vm4, %v2548_v18 }
 0x744   :  { %5631 = vmatpush3.bf16.msra.mxu1 %v5628_v26  ;;  %5166 = vmatprep.mubr.msk.f32.mxu1 %vm653_vm4, %v7334_v37 }
 0x745   :  { %v2747_v19 = vpop.permute.xlu1 %2746  ;;  %v2745_v47 = vpop.permute.xlu0 %2744  ;;  %5633 = vmatprep.subr.bf16.mxu1 %v5632_v38 }
 0x746   :  { %1199 = vadd.xlane.f32.xlu0 %v7875_v21 }
 0x747   :  { %5167 = vmatmul.mubr.msk.f32.vlgmr.msra.gmra.mrb[16].mxu1 %vm653_vm4, %v7326_v16 }
 0x748   :  { %5169 = vmatprep.mubr.msk.f32.mxu1 %vm653_vm4, %v7370_v34  ;;  %5635 = vmatpush3.bf16.msra.mxu1 %v5632_v38  ;;  %v4571_v38 = vld [vmem:[%s7857_s10 + $0x100] sm:$0xff] }
 0x749   :  { %v2751_v37 = vpop.permute.xlu1 %2750  ;;  %v2749_v51 = vpop.permute.xlu0 %2748  ;;  %5637 = vmatprep.subr.bf16.mxu1 %v5636_v7 }
 0x74b   :  { %5170 = vmatmul.mubr.msk.f32.gmra.mrb[18].mxu1 %vm653_vm4, %v7348_v48 }
 0x74c   :  { %5639 = vmatpush3.bf16.msra.mxu1 %v5636_v7  ;;  %5180 = vmatprep.mubr.msk.f32.mxu1 %vm653_vm4, %v2745_v47  ;;  %v4573_v47 = vld [vmem:[%s7857_s10 + $0x110] sm:$0xff]  ;;  %v4574_v7 = vld [vmem:[%s7857_s10 + $0x118] sm:$0xff] }
 0x74d   :  { %v2997_v16 = vpop.permute.xlu1 %2996  ;;  %v2995_v34 = vpop.permute.xlu0 %2994  ;;  %5641 = vmatprep.subr.bf16.mxu1 %v5640_v24  ;;  %v5684_v2 = vpack.c.bf16 %v4574_v7, %v4573_v47 }
 0x74f   :  { %5181 = vmatmul.mubr.msk.f32.vlgmr.msra.gmra.mrb[16].mxu1 %vm653_vm4, %v2747_v19  ;;  %v5680_v19 = vpack.c.bf16 %v4572_v25, %v4571_v38  ;;  %v4621_v25 = vld [vmem:[%s7857_s10 + $0x1d0] sm:$0xff] }
 0x750   :  { %5183 = vmatprep.mubr.msk.f32.mxu1 %vm653_vm4, %v2749_v51  ;;  %5643 = vmatpush3.bf16.msra.mxu1 %v5640_v24  ;;  %v4580_v51 = vld [vmem:[%s7857_s10 + $0x128] sm:$0xff] }
 0x751   :  { %v3001_v48 = vpop.permute.xlu1 %3000  ;;  %v2999_v53 = vpop.permute.xlu0 %2998  ;;  %5645 = vmatprep.subr.bf16.mxu1 %v5644_v9 }
 0x753   :  { %5184 = vmatmul.mubr.msk.f32.gmra.mrb[18].mxu1 %vm653_vm4, %v2751_v37  ;;  %v4579_v37 = vld [vmem:[%s7857_s10 + $0x120] sm:$0xff] }
 0x754   :  { %5647 = vmatpush3.bf16.msra.mxu1 %v5644_v9  ;;  %5194 = vmatprep.mubr.msk.f32.mxu1 %vm653_vm4, %v7466_v55  ;;  %v5688_v46 = vpack.c.bf16 %v4580_v51, %v4579_v37 }
 0x755   :  { %v3126_v32 = vpop.permute.xlu1 %3125  ;;  %v3124_v60 = vpop.permute.xlu0 %3123  ;;  %5649 = vmatprep.subr.bf16.mxu1 %v5648_v36 }
 0x757   :  { %5195 = vmatmul.mubr.msk.f32.vlgmr.msra.gmra.mrb[16].mxu1 %vm653_vm4, %v7452_v11 }
 0x758   :  { %5197 = vmatprep.mubr.msk.f32.mxu1 %vm653_vm4, %v7474_v35  ;;  %5651 = vmatpush3.bf16.msra.mxu1 %v5648_v36 }
 0x759   :  { %v3130_v55 = vpop.permute.xlu1 %3129  ;;  %v3128_v14 = vpop.permute.xlu0 %3127  ;;  %5653 = vmatprep.subr.bf16.mxu1 %v5652_v52 }
 0x75b   :  { %5198 = vmatmul.mubr.msk.f32.gmra.mrb[18].mxu1 %vm653_vm4, %v7471_v23 }
 0x75c   :  { %5655 = vmatpush3.bf16.msra.mxu1 %v5652_v52  ;;  %5208 = vmatprep.mubr.msk.f32.mxu1 %vm653_vm4, %v2995_v34  ;;  %v4595_v52 = vld [vmem:[%s7857_s10 + $0x160] sm:$0xff] }
 0x75d   :  { %v3236_v11 = vpop.permute.xlu1 %3235  ;;  %v3234_v35 = vpop.permute.xlu0 %3233  ;;  %5657 = vmatprep.subr.bf16.mxu1 %v5656_v13 }
 0x75f   :  { %5209 = vmatmul.mubr.msk.f32.vlgmr.msra.gmra.mrb[16].mxu1 %vm653_vm4, %v2997_v16  ;;  %v4582_v16 = vld [vmem:[%s7857_s10 + $0x138] sm:$0xff] }
 0x760   :  { %5211 = vmatprep.mubr.msk.f32.mxu1 %vm653_vm4, %v2999_v53  ;;  %5659 = vmatpush3.bf16.msra.mxu1 %v5656_v13  ;;  %v5692_v9 = vpack.c.bf16 %v4582_v16, %v4581_v28  ;;  %v5696_v53 = vpack.c.bf16 %v4588_v4, %v4587_v5  ;;  %v4598_v13 = vld [vmem:[%s7857_s10 + $0x178] sm:$0xff] }
 0x761   :  { %v3240_v23 = vpop.permute.xlu1 %3239  ;;  %v3238_v6 = vpop.permute.xlu0 %3237  ;;  %5661 = vmatprep.subr.bf16.mxu1 %v5660_v20 }
 0x763   :  { %5212 = vmatmul.mubr.msk.f32.gmra.mrb[18].mxu1 %vm653_vm4, %v3001_v48 }
 0x764   :  { %5663 = vmatpush3.bf16.msra.mxu1 %v5660_v20  ;;  %5222 = vmatprep.mubr.msk.f32.mxu1 %vm653_vm4, %v3124_v60  ;;  %v5700_v60 = vpack.c.bf16 %v4590_v15, %v4589_v43  ;;  %v4604_v20 = vld [vmem:[%s7857_s10 + $0x188] sm:$0xff] }
 0x765   :  { %v3365_v58 = vpop.permute.xlu1 %3364  ;;  %v3363_v40 = vpop.permute.xlu0 %3362  ;;  %5665 = vmatprep.subr.bf16.mxu1 %v5664_v59 }
 0x767   :  { %5223 = vmatmul.mubr.msk.f32.vlgmr.msra.gmra.mrb[16].mxu1 %vm653_vm4, %v3126_v32 }
 0x768   :  { %5225 = vmatprep.mubr.msk.f32.mxu1 %vm653_vm4, %v3128_v14  ;;  %5667 = vmatpush3.bf16.msra.mxu1 %v5664_v59  ;;  %v4597_v14 = vld [vmem:[%s7857_s10 + $0x170] sm:$0xff] }
 0x769   :  { %v3367_v17 = vpop.permute.xlu0 %3366  ;;  %5669 = vmatprep.subr.bf16.mxu1 %v5668_v45  ;;  %v3369_v26 = vpop.permute.xlu1 %3368  ;;  %v5708_v61 = vpack.c.bf16 %v4598_v13, %v4597_v14 }
 0x76b   :  { %5226 = vmatmul.mubr.msk.f32.gmra.mrb[18].mxu1 %vm653_vm4, %v3130_v55  ;;  %v5704_v55 = vpack.c.bf16 %v4596_v49, %v4595_v52 }
 0x76c   :  { %5671 = vmatpush3.bf16.msra.mxu1 %v5668_v45  ;;  %5236 = vmatprep.mubr.msk.f32.mxu1 %vm653_vm4, %v3234_v35  ;;  %v4603_v35 = vld [vmem:[%s7857_s10 + $0x180] sm:$0xff] }
 0x76d   :  { %v3473_v18 = vpop.permute.xlu0 %3472  ;;  %5673 = vmatprep.subr.bf16.mxu1 %v5672_v62  ;;  %v3475_v50 = vpop.permute.xlu1 %3474  ;;  %v5712_v1 = vpack.c.bf16 %v4604_v20, %v4603_v35 }
 0x76f   :  { %5237 = vmatmul.mubr.msk.f32.vlgmr.msra.gmra.mrb[16].mxu1 %vm653_vm4, %v3236_v11 }
 0x770   :  { %5239 = vmatprep.mubr.msk.f32.mxu1 %vm653_vm4, %v3238_v6  ;;  %5675 = vmatpush3.bf16.msra.mxu1 %v5672_v62  ;;  %v4606_v6 = vld [vmem:[%s7857_s10 + $0x198] sm:$0xff] }
 0x771   :  { %5677 = vmatprep.subr.bf16.mxu1 %v5676_v27  ;;  %v3477_v21 = vpop.permute.xlu0 %3476  ;;  %v3479_v39 = vpop.permute.xlu1 %3478 }
 0x773   :  { %5240 = vmatmul.mubr.msk.f32.gmra.mrb[18].mxu1 %vm653_vm4, %v3240_v23  ;;  %v4605_v23 = vld [vmem:[%s7857_s10 + $0x190] sm:$0xff] }
 0x774   :  { %5679 = vmatpush3.bf16.msra.mxu1 %v5676_v27  ;;  %5250 = vmatprep.mubr.msk.f32.mxu1 %vm653_vm4, %v3363_v40  ;;  %v5716_v22 = vpack.c.bf16 %v4606_v6, %v4605_v23  ;;  %v5728_v27 = vpack.c.bf16 %v4620_v31, %v4619_v30 }
 0x775   :  { %5681 = vmatprep.subr.bf16.mxu1 %v5680_v19  ;;  %v3583_v24 = vpop.permute.xlu0 %3582  ;;  %v3585_v34 = vpop.permute.xlu1 %3584 }
 0x777   :  { %5251 = vmatmul.mubr.msk.f32.vlgmr.msra.gmra.mrb[16].mxu1 %vm653_vm4, %v3365_v58  ;;  %v4612_v58 = vld [vmem:[%s7857_s10 + $0x1a8] sm:$0xff] }
 0x778   :  { %5253 = vmatprep.mubr.msk.f32.mxu1 %vm653_vm4, %v3367_v17  ;;  %5683 = vmatpush3.bf16.msra.mxu1 %v5680_v19  ;;  %v5720_v45 = vpack.c.bf16 %v4612_v58, %v4611_v57  ;;  %v4614_v17 = vld [vmem:[%s7857_s10 + $0x1b8] sm:$0xff] }
 0x779   :  { %5685 = vmatprep.subr.bf16.mxu1 %v5684_v2  ;;  %v3587_v48 = vpop.permute.xlu0 %3586  ;;  %v3589_v36 = vpop.permute.xlu1 %3588 }
 0x77b   :  { %5254 = vmatmul.mubr.msk.f32.gmra.mrb[18].mxu1 %vm653_vm4, %v3369_v26  ;;  %v5724_v26 = vpack.c.bf16 %v4614_v17, %v4613_v8 }
 0x77c   :  { %5687 = vmatpush3.bf16.msra.mxu1 %v5684_v2  ;;  %5264 = vmatprep.mubr.msk.f32.mxu1 %vm653_vm4, %v3473_v18 }
 0x77d   :  { %5689 = vmatprep.subr.bf16.mxu1 %v5688_v46  ;;  %v3693_v32 = vpop.permute.xlu0 %3692  ;;  %v3695_v12 = vpop.permute.xlu1 %3694 }
 0x77f   :  { %5265 = vmatmul.mubr.msk.f32.vlgmr.msra.gmra.mrb[16].mxu1 %vm653_vm4, %v3475_v50  ;;  %v4622_v50 = vld [vmem:[%s7857_s10 + $0x1d8] sm:$0xff] }
 0x780   :  { %5267 = vmatprep.mubr.msk.f32.mxu1 %vm653_vm4, %v3477_v21  ;;  %5691 = vmatpush3.bf16.msra.mxu1 %v5688_v46 }
 0x781   :  { %5693 = vmatprep.subr.bf16.mxu1 %v5692_v9  ;;  %v3697_v0 = vpop.permute.xlu0 %3696  ;;  %v3699_v11 = vpop.permute.xlu1 %3698 }
 0x783   :  { %5268 = vmatmul.mubr.msk.f32.gmra.mrb[18].mxu1 %vm653_vm4, %v3479_v39 }
 0x784   :  { %5695 = vmatpush3.bf16.msra.mxu1 %v5692_v9  ;;  %5278 = vmatprep.mubr.msk.f32.mxu1 %vm653_vm4, %v3583_v24 }
 0x785   :  { %5697 = vmatprep.subr.bf16.mxu1 %v5696_v53  ;;  %v3803_v3 = vpop.permute.xlu0 %3802  ;;  %v3805_v59 = vpop.permute.xlu1 %3804 }
 0x787   :  { %5279 = vmatmul.mubr.msk.f32.vlgmr.msra.gmra.mrb[16].mxu1 %vm653_vm4, %v3585_v34 }
 0x788   :  { %5281 = vmatprep.mubr.msk.f32.mxu1 %vm653_vm4, %v3587_v48  ;;  %5699 = vmatpush3.bf16.msra.mxu1 %v5696_v53 }
 0x789   :  { %5701 = vmatprep.subr.bf16.mxu1 %v5700_v60  ;;  %v3807_v40 = vpop.permute.xlu0 %3806  ;;  %v3809_v41 = vpop.permute.xlu1 %3808 }
 0x78b   :  { %5282 = vmatmul.mubr.msk.f32.gmra.mrb[18].mxu1 %vm653_vm4, %v3589_v36 }
 0x78c   :  { %5703 = vmatpush3.bf16.msra.mxu1 %v5700_v60  ;;  %5292 = vmatprep.mubr.msk.f32.mxu1 %vm653_vm4, %v3693_v32 }
 0x78d   :  { %5705 = vmatprep.subr.bf16.mxu1 %v5704_v55  ;;  %v4053_v62 = vpop.permute.xlu0 %4052  ;;  %v4055_v18 = vpop.permute.xlu1 %4054 }
 0x78f   :  { %5293 = vmatmul.mubr.msk.f32.vlgmr.msra.gmra.mrb[16].mxu1 %vm653_vm4, %v3695_v12 }
 0x790   :  { %5295 = vmatprep.mubr.msk.f32.mxu1 %vm653_vm4, %v3697_v0  ;;  %5707 = vmatpush3.bf16.msra.mxu1 %v5704_v55 }
 0x791   :  { %5709 = vmatprep.subr.bf16.mxu1 %v5708_v61  ;;  %v4059_v19 = vpop.permute.xlu1 %4058 }
 0x793   :  { %5296 = vmatmul.mubr.msk.f32.gmra.mrb[18].mxu1 %vm653_vm4, %v3699_v11 }
 0x794   :  { %5711 = vmatpush3.bf16.msra.mxu1 %v5708_v61  ;;  %5306 = vmatprep.mubr.msk.f32.mxu1 %vm653_vm4, %v3803_v3 }
 0x795   :  { %5713 = vmatprep.subr.bf16.mxu1 %v5712_v1  ;;  %v4165_v7 = vpop.permute.xlu1 %4164 }
 0x797   :  { %5307 = vmatmul.mubr.msk.f32.vlgmr.msra.gmra.mrb[16].mxu1 %vm653_vm4, %v3805_v59 }
 0x798   :  { %5309 = vmatprep.mubr.msk.f32.mxu1 %vm653_vm4, %v3807_v40  ;;  %5715 = vmatpush3.bf16.msra.mxu1 %v5712_v1 }
 0x799   :  { %5717 = vmatprep.subr.bf16.mxu1 %v5716_v22  ;;  %v4169_v21 = vpop.permute.xlu1 %4168 }
 0x79b   :  { %5310 = vmatmul.mubr.msk.f32.gmra.mrb[18].mxu1 %vm653_vm4, %v3809_v41 }
 0x79c   :  { %5719 = vmatpush3.bf16.msra.mxu1 %v5716_v22  ;;  %5320 = vmatprep.mubr.msk.f32.mxu1 %vm653_vm4, %v7500_v33 }
 0x79d   :  { %5721 = vmatprep.subr.bf16.mxu1 %v5720_v45 }
 0x79f   :  { %5321 = vmatmul.mubr.msk.f32.vlgmr.msra.gmra.mrb[16].mxu1 %vm653_vm4, %v7497_v54  ;;  %v4057_v54 = vpop.permute.xlu0 %4056 }
 0x7a0   :  { %5323 = vmatprep.mubr.msk.f32.mxu1 %vm653_vm4, %v7506_v10  ;;  %5723 = vmatpush3.bf16.msra.mxu1 %v5720_v45  ;;  %v5732_v10 = vpack.c.bf16 %v4622_v50, %v4621_v25 }
 0x7a1   :  { %v7790_v33 = vpop.f32.mrb[28].mxu0  ;;  %5725 = vmatprep.subr.bf16.mxu1 %v5724_v26 }
 0x7a2   :  { %v7792_v38 = vpop.f32.mrb[29].mxu0 }
 0x7a3   :  { %5324 = vmatmul.mubr.msk.f32.gmra.mrb[18].mxu1 %vm653_vm4, %v7503_v44  ;;  %v4163_v47 = vpop.permute.xlu0 %4162 }
 0x7a4   :  { %5727 = vmatpush3.bf16.msra.mxu1 %v5724_v26  ;;  %5334 = vmatprep.mubr.msk.f32.mxu1 %vm653_vm4, %v4053_v62 }
 0x7a5   :  { %5729 = vmatprep.subr.bf16.mxu1 %v5728_v27 }
 0x7a7   :  { %5335 = vmatmul.mubr.msk.f32.vlgmr.msra.gmra.mrb[16].mxu1 %vm653_vm4, %v4055_v18  ;;  %v4167_v44 = vpop.permute.xlu0 %4166 }
 0x7a8   :  { %5337 = vmatprep.mubr.msk.f32.mxu1 %vm653_vm4, %v4057_v54  ;;  %5731 = vmatpush3.bf16.msra.mxu1 %v5728_v27 }
 0x7a9   :  { %5733 = vmatprep.subr.bf16.mxu1 %v5732_v10 }
 0x7ab   :  { %5338 = vmatmul.mubr.msk.f32.gmra.mrb[18].mxu1 %vm653_vm4, %v4059_v19 }
 0x7ac   :  { %5735 = vmatpush3.bf16.msra.mxu1 %v5732_v10  ;;  %5348 = vmatprep.mubr.msk.f32.mxu1 %vm653_vm4, %v4163_v47 }
 0x7ad   :  { %5744 = vmatprep.subr.bf16.mxu1 %v7261_v29 }
 0x7af   :  { %5349 = vmatmul.mubr.msk.f32.vlgmr.msra.gmra.mrb[16].mxu1 %vm653_vm4, %v4165_v7 }
 0x7b0   :  { %5351 = vmatprep.mubr.msk.f32.mxu1 %vm653_vm4, %v4167_v44  ;;  %5746 = vmatpush3.bf16.msra.mxu1 %v7261_v29 }
 0x7b1   :  { %5745 = vmatprep.subr.bf16.mxu1 %v7266_v56 }
 0x7b3   :  { %5352 = vmatmul.mubr.msk.f32.gmra.mrb[18].mxu1 %vm653_vm4, %v4169_v21 }
 0x7b4   :  { %5365 = vmatprep.mubr.msk.f32.mxu1 %vm653_vm4, %v7519_v63  ;;  %5747 = vmatpush3.bf16.msra.mxu1 %v7266_v56 }
 0x7bb   :  { %5366 = vmatmul.mubr.msk.f32.vlgmr.msra.gmra.mrb[18].mxu1 %vm653_vm4, %v7522_v42 }
 0x7d3   :  { %v1200_v2 = vpop.xlane.xlu0 %1199 }
 0x7d4   :  { %v1201_v39 = vrot.slane %v1200_v2, 4 }
 0x7d6   :  { %v1202_v37 = vadd.f32 %v1201_v39, %v1200_v2 }
 0x7d8   :  { %v1203_v51 = vrot.slane %v1202_v37, 2 }
 0x7da   :  { %v1204_v24 = vadd.f32 %v1203_v51, %v1202_v37 }
 0x7dc   :  { %v1205_v46 = vrot.slane %v1204_v24, 1 }
 0x7de   :  { %v1206_v29 = vadd.f32 %v1205_v46, %v1204_v24 }
 0x7e0   :  { %5856 = vpush %v1206_v29 }
 0x811   :  { %s5857_s10 = spop %5856 }
 0x812   :  { %v1208_v28 = vstv %s5857_s10 }
 0x813   :  { %v1209_v16 = vmul.f32 0.0048828125, %v1208_v28 }
 0x815   :  { %1211 = vst.msk [vmem:[#allocation4] sm:$0x1] %vm1210_vm0, %v1209_v16 }
 0x816   :  { %5902 = shalt.err (!%p5899_p4)
}
 0x817   :  { %s5903_s1 = scalar_lea.hbm %s7861_s14, 16 }
 0x818   :  { %p5904_p5 = scmp.ne.s32.totalorder %s7861_s14, %s5903_s1  ;;  %p5907_p6 = scmp.lt.u32.totalorder %s5903_s1, %s7861_s14 }
 0x81a   :  { %p5909_p7 = pnand %p5907_p6, %p5904_p5 }
 0x81c   :  { %5912 = shalt.err (!%p5909_p7)
}
 0x81d   :  { %4414 = dma.vmem_to_hbm [thread:$0]  %s4412_s7, 16, %s7861_s14, [#allocation5]   ;;  %v4635_v63 = vld [vmem:[%s7858_s11] ss:$0 sm:$0xff] }
 0x882   :  { %v5350_v56 = vpop.f32.mrb[16].mxu1 }
 0x883   :  { %v5756_v42 = vadd.f32 %v7790_v33, %v5350_v56  ;;  %v4244_v34 = vpop.f32.mrb[17].mxu1 }
 0x884   :  { %v5757_v9 = vadd.f32 %v7792_v38, %v4244_v34 }
 0x885   :  { %v4396_v5 = vadd.f32 %v5756_v42, %v4635_v63 }
 0x886   :  { %v4395_v4 = vadd.f32 %v5757_v9, %v4635_v63 }
 0x887   :  { %4400 = vst [vmem:[%s7860_s13 + $0x8] sm:$0xff] %v4396_v5 }
 0x888   :  { %4399 = vst [vmem:[%s7860_s13] sm:$0xff] %v4395_v4 }
 0x88e   :  { %v5367_v48 = vpop.f32.mrb[18].mxu1 }
 0x88f   :  { %v4398_v53 = vadd.f32 %v5367_v48, %v4635_v63  ;;  %v4375_v36 = vpop.f32.mrb[19].mxu1 }
 0x890   :  { %v4397_v43 = vadd.f32 %v4635_v63, %v4375_v36 }
 0x891   :  { %4402 = vst [vmem:[%s7860_s13 + $0x18] sm:$0xff] %v4398_v53 }
 0x892   :  { %4401 = vst [vmem:[%s7860_s13 + $0x10] sm:$0xff] %v4397_v43 }
 0x893   :  { %5913 = dma.done.wait [#allocation5], 16  }
 0x894   :  { %5914 = vsyncadd [#allocation5], 4294967280 }
 0x895   :  { %4420 = vsyncpa [#allocation5], 1 }

</bundles_post_ra>
